<compile_context>
chip_gen: v7x
topology: tpu7x:2x2x1
jax: 0.10.0
libtpu: 0.0.40
codegen_flags: <defaults>
</compile_context>

<pallas_src>
import functools

import jax
import jax.numpy as jnp
from jax import lax
from jax.experimental import pallas as pl
from jax.experimental.pallas import tpu as pltpu


def _nac_kernel(x_ref, scale_ref, shift_ref, w_ref, o_ref,
                *, H, W, th, Cin, Cout, compute_dtype):
    # x_ref  : (1, 1, th+2, W+2, Cin)  row tile of the spatially pre-padded NHWC input
    # scale  : (1, Cin)   gamma / running_std
    # shift  : (1, Cin)   beta - gamma * running_mean / running_std
    # w_ref  : (9*Cin, Cout)  3x3 weights (1x1 folded into center tap), im2col order
    # o_ref  : (1, 1, th, W, Cout)
    Wp = W + 2
    hi = pl.program_id(1)

    x = x_ref[0, 0]                                   # (th+2, Wp, Cin), f32
    scale = scale_ref[...].reshape(1, 1, Cin)
    shift = shift_ref[...].reshape(1, 1, Cin)

    # BatchRenorm (eval) + affine fused into a single FMA.
    xn = x * scale + shift

    # Mish with a single transcendental:
    #   mish(x) = x * tanh(softplus(x)) = x * t/(t+2), t = e*(e+2), e = exp(x)
    e = jnp.exp(xn)
    t = e * (e + 2.0)
    a = xn * (t * pl.reciprocal(t + 2.0, approx=True))
    a = jnp.where(xn > 20.0, xn, a)                   # overflow guard (exp -> inf)

    # Re-zero the conv 'SAME' zero-padding positions (the wrapper's zero halo
    # would otherwise become mish(shift) != 0). Valid padded rows/cols are 1..H / 1..W.
    rows = lax.broadcasted_iota(jnp.int32, (th + 2, Wp, 1), 0) + hi * th
    cols = lax.broadcasted_iota(jnp.int32, (th + 2, Wp, 1), 1)
    valid = (rows >= 1) & (rows <= H) & (cols >= 1) & (cols <= W)
    a = jnp.where(valid, a, 0.0)                      # (th+2, Wp, Cin), f32

    # im2col: one (th*W, 9*Cin) x (9*Cin, Cout) MXU matmul, f32 accumulation.
    patches = jnp.concatenate(
        [a[kh:kh + th, kw:kw + W, :] for kh in range(3) for kw in range(3)],
        axis=-1,
    ).reshape(th * W, 9 * Cin).astype(compute_dtype)

    y = jnp.dot(patches, w_ref[...], preferred_element_type=jnp.float32)
    o_ref[...] = y.reshape(1, 1, th, W, Cout).astype(o_ref.dtype)


def norm_act_conv(x_nchw, running_mean, running_std, gamma, beta,
                  w3_torch, w1_torch, *, compute_dtype=jnp.bfloat16,
                  row_tile=None):
    """x_nchw: (B, Cin, H, W); w3_torch: (Cout, Cin, 3, 3); w1_torch: (Cout, Cin, 1, 1).

    compute_dtype: MXU operand dtype (bf16 recommended on v6e/v7x; accumulation
    is always f32).  row_tile: rows per grid step (must divide H); None = whole image.
    """
    B, Cin, H, W = x_nchw.shape
    Cout = w3_torch.shape[0]

    th = H if row_tile is None else int(row_tile)
    if H % th != 0:
        th = H  # TODO(synk): support ragged H row tiles (pl.BoundedSlice)
    nH = H // th
    Wp = W + 2

    # ---- wrapper-side layout / parameter plumbing (no per-element compute) ----
    scale = (gamma / running_std).astype(jnp.float32).reshape(1, Cin)
    shift = (beta - gamma * running_mean / running_std).astype(jnp.float32).reshape(1, Cin)

    # Fold the 1x1 conv into the 3x3 center tap, reshape to im2col order
    # (kh, kw, cin) x cout.
    w3f = w3_torch.at[:, :, 1, 1].add(w1_torch[:, :, 0, 0])
    w = jnp.transpose(w3f, (2, 3, 1, 0)).reshape(9 * Cin, Cout).astype(compute_dtype)

    x = jnp.transpose(x_nchw, (0, 2, 3, 1))                    # NHWC
    xp = jnp.pad(x, ((0, 0), (1, 1), (1, 1), (0, 0)))          # zero spatial halo
    # Row tiles with a 1-row halo on each side (duplicated in HBM; plain
    # blocked BlockSpecs then DMA non-overlapping tiles).
    ridx = jnp.arange(nH)[:, None] * th + jnp.arange(th + 2)[None, :]
    xt = xp[:, ridx]                                           # (B, nH, th+2, Wp, Cin)

    kernel = functools.partial(_nac_kernel, H=H, W=W, th=th, Cin=Cin, Cout=Cout,
                               compute_dtype=compute_dtype)

    out = pl.pallas_call(
        kernel,
        out_shape=jax.ShapeDtypeStruct((B, nH, th, W, Cout), x.dtype),
        grid_spec=pltpu.PrefetchScalarGridSpec(
            num_scalar_prefetch=0,
            grid=(B, nH),
            in_specs=[
                pl.BlockSpec((1, 1, th + 2, Wp, Cin), lambda b, h: (b, h, 0, 0, 0)),
                pl.BlockSpec((1, Cin), lambda b, h: (0, 0)),
                pl.BlockSpec((1, Cin), lambda b, h: (0, 0)),
                pl.BlockSpec((9 * Cin, Cout), lambda b, h: (0, 0)),
            ],
            out_specs=pl.BlockSpec((1, 1, th, W, Cout), lambda b, h: (b, h, 0, 0, 0)),
        ),
        compiler_params=pltpu.CompilerParams(
            dimension_semantics=("parallel", "parallel"),
            vmem_limit_bytes=32 * 1024 * 1024,
        ),
    )(xt, scale, shift, w)

    out = out.reshape(B, H, W, Cout)
    return jnp.transpose(out, (0, 3, 1, 2))                    # back to NCHW


def _reference(x_nchw, running_mean, running_std, gamma, beta, w3, w1):
    rm = running_mean[None, :, None, None]
    rs = running_std[None, :, None, None]
    g = gamma[None, :, None, None]
    b = beta[None, :, None, None]
    xn = g * ((x_nchw - rm) / rs) + b
    a = xn * jnp.tanh(jax.nn.softplus(xn))
    dn = ("NCHW", "OIHW", "NCHW")
    y3 = lax.conv_general_dilated(a, w3, (1, 1), "SAME", dimension_numbers=dn)
    y1 = lax.conv_general_dilated(a, w1, (1, 1), "SAME", dimension_numbers=dn)
    return y3 + y1


if __name__ == "__main__":
    B, Cin, Cout, H, W = 2, 4, 8, 16, 16
    key = jax.random.PRNGKey(0)
    ks = jax.random.split(key, 7)

    x = jax.random.normal(ks[0], (B, Cin, H, W), jnp.float32)
    running_mean = 0.1 * jax.random.normal(ks[1], (Cin,), jnp.float32)
    running_std = 0.8 + 0.2 * jnp.abs(jax.random.normal(ks[2], (Cin,), jnp.float32))
    gamma = 1.0 + 0.1 * jax.random.normal(ks[3], (Cin,), jnp.float32)
    beta = 0.1 * jax.random.normal(ks[4], (Cin,), jnp.float32)
    w3 = 0.1 * jax.random.normal(ks[5], (Cout, Cin, 3, 3), jnp.float32)
    w1 = 0.1 * jax.random.normal(ks[6], (Cout, Cin, 1, 1), jnp.float32)

    ref = _reference(x, running_mean, running_std, gamma, beta, w3, w1)

    # Full-precision MXU path, whole image per grid step.
    out_f32 = jax.block_until_ready(norm_act_conv(
        x, running_mean, running_std, gamma, beta, w3, w1,
        compute_dtype=jnp.float32, row_tile=None))
    assert out_f32.shape == (B, Cout, H, W)
    assert jnp.allclose(out_f32, ref, atol=5e-3, rtol=5e-3)

    # bf16 MXU path with H row tiling (v6e/v7x configuration).
    out_bf16 = jax.block_until_ready(norm_act_conv(
        x, running_mean, running_std, gamma, beta, w3, w1,
        compute_dtype=jnp.bfloat16, row_tile=8))
    assert out_bf16.shape == (B, Cout, H, W)
    assert jnp.allclose(out_bf16, ref, atol=3e-2, rtol=3e-2)

    print("KERNEL_OK")
</pallas_src>

<mosaic_0001>
module attributes {stable_mosaic.version = 11 : i64} {
  func.func @_nac_kernel(%arg0: i32, %arg1: i32, %arg2: memref<1x1x18x18x4xf32, #tpu.memory_space<vmem>>, %arg3: memref<1x4xf32, #tpu.memory_space<vmem>>, %arg4: memref<1x4xf32, #tpu.memory_space<vmem>>, %arg5: memref<36x8xf32, #tpu.memory_space<vmem>>, %arg6: memref<1x1x16x16x8xf32, #tpu.memory_space<vmem>>) attributes {dimension_semantics = [#tpu.dimension_semantics<parallel>, #tpu.dimension_semantics<parallel>], iteration_bounds = array<i64: 2, 1>, scalar_prefetch = 0 : i64, scratch_operands = 0 : i64, tpu.core_type = #tpu.core_type<tc>, window_params = [{transform_indices = @transform_0, window_bounds = array<i64: 1, 1, 18, 18, 4>}, {pipeline_mode = #tpu.pipeline_mode<synchronous>, transform_indices = @transform_1, window_bounds = array<i64: 1, 4>}, {pipeline_mode = #tpu.pipeline_mode<synchronous>, transform_indices = @transform_2, window_bounds = array<i64: 1, 4>}, {pipeline_mode = #tpu.pipeline_mode<synchronous>, transform_indices = @transform_3, window_bounds = array<i64: 36, 8>}, {transform_indices = @transform_4, window_bounds = array<i64: 1, 1, 16, 16, 8>}]} {
    %c0 = arith.constant 0 : index
    %c0_0 = arith.constant 0 : index
    %c0_1 = arith.constant 0 : index
    %c0_2 = arith.constant 0 : index
    %c0_3 = arith.constant 0 : index
    %0 = vector.load %arg2[%c0, %c0_0, %c0_1, %c0_2, %c0_3] : memref<1x1x18x18x4xf32, #tpu.memory_space<vmem>>, vector<1x1x18x18x4xf32>
    %1 = vector.shape_cast %0 : vector<1x1x18x18x4xf32> to vector<18x18x4xf32>
    %c0_4 = arith.constant 0 : index
    %c0_5 = arith.constant 0 : index
    %2 = vector.load %arg3[%c0_4, %c0_5] : memref<1x4xf32, #tpu.memory_space<vmem>>, vector<1x4xf32>
    %3 = vector.shape_cast %2 : vector<1x4xf32> to vector<1x1x4xf32>
    %c0_6 = arith.constant 0 : index
    %c0_7 = arith.constant 0 : index
    %4 = vector.load %arg4[%c0_6, %c0_7] : memref<1x4xf32, #tpu.memory_space<vmem>>, vector<1x4xf32>
    %5 = vector.shape_cast %4 : vector<1x4xf32> to vector<1x1x4xf32>
    %6 = vector.broadcast %3 : vector<1x1x4xf32> to vector<18x18x4xf32>
    %7 = arith.mulf %1, %6 : vector<18x18x4xf32>
    %8 = vector.broadcast %5 : vector<1x1x4xf32> to vector<18x18x4xf32>
    %9 = arith.addf %7, %8 : vector<18x18x4xf32>
    %10 = math.exp %9 : vector<18x18x4xf32>
    %cst = arith.constant 2.000000e+00 : f32
    %11 = vector.broadcast %cst : f32 to vector<18x18x4xf32>
    %12 = arith.addf %10, %11 : vector<18x18x4xf32>
    %13 = arith.mulf %10, %12 : vector<18x18x4xf32>
    %cst_8 = arith.constant 2.000000e+00 : f32
    %14 = vector.broadcast %cst_8 : f32 to vector<18x18x4xf32>
    %15 = arith.addf %13, %14 : vector<18x18x4xf32>
    %16 = tpu.reciprocal %15 {approx = true} : vector<18x18x4xf32> -> vector<18x18x4xf32>
    %17 = arith.mulf %13, %16 : vector<18x18x4xf32>
    %18 = arith.mulf %9, %17 : vector<18x18x4xf32>
    %cst_9 = arith.constant 2.000000e+01 : f32
    %19 = vector.broadcast %cst_9 : f32 to vector<18x18x4xf32>
    %20 = arith.cmpf ogt, %9, %19 : vector<18x18x4xf32>
    %21 = arith.select %20, %9, %18 : vector<18x18x4xi1>, vector<18x18x4xf32>
    %22 = tpu.iota {dimensions = array<i32: 0>} : vector<18x18x1xi32>
    %c16_i32 = arith.constant 16 : i32
    %23 = arith.muli %arg1, %c16_i32 : i32
    %24 = vector.broadcast %23 : i32 to vector<18x18x1xi32>
    %25 = arith.addi %22, %24 : vector<18x18x1xi32>
    %26 = tpu.iota {dimensions = array<i32: 1>} : vector<18x18x1xi32>
    %c1_i32 = arith.constant 1 : i32
    %27 = vector.broadcast %c1_i32 : i32 to vector<18x18x1xi32>
    %28 = arith.cmpi sge, %25, %27 : vector<18x18x1xi32>
    %c16_i32_10 = arith.constant 16 : i32
    %29 = vector.broadcast %c16_i32_10 : i32 to vector<18x18x1xi32>
    %30 = arith.cmpi sle, %25, %29 : vector<18x18x1xi32>
    %31 = arith.andi %28, %30 : vector<18x18x1xi1>
    %c1_i32_11 = arith.constant 1 : i32
    %32 = vector.broadcast %c1_i32_11 : i32 to vector<18x18x1xi32>
    %33 = arith.cmpi sge, %26, %32 : vector<18x18x1xi32>
    %34 = arith.andi %31, %33 : vector<18x18x1xi1>
    %c16_i32_12 = arith.constant 16 : i32
    %35 = vector.broadcast %c16_i32_12 : i32 to vector<18x18x1xi32>
    %36 = arith.cmpi sle, %26, %35 : vector<18x18x1xi32>
    %37 = arith.andi %34, %36 : vector<18x18x1xi1>
    %cst_13 = arith.constant 0.000000e+00 : f32
    %38 = vector.shape_cast %37 : vector<18x18x1xi1> to vector<18x18x1xi1>
    %39 = vector.broadcast %38 : vector<18x18x1xi1> to vector<18x18x4xi1>
    %40 = vector.broadcast %cst_13 : f32 to vector<18x18x4xf32>
    %41 = arith.select %39, %21, %40 : vector<18x18x4xi1>, vector<18x18x4xf32>
    %42 = vector.extract_strided_slice %41 {offsets = [0, 0, 0], sizes = [16, 16, 4], strides = [1, 1, 1]} : vector<18x18x4xf32> to vector<16x16x4xf32>
    %43 = vector.extract_strided_slice %41 {offsets = [0, 1, 0], sizes = [16, 16, 4], strides = [1, 1, 1]} : vector<18x18x4xf32> to vector<16x16x4xf32>
    %44 = vector.extract_strided_slice %41 {offsets = [0, 2, 0], sizes = [16, 16, 4], strides = [1, 1, 1]} : vector<18x18x4xf32> to vector<16x16x4xf32>
    %45 = vector.extract_strided_slice %41 {offsets = [1, 0, 0], sizes = [16, 16, 4], strides = [1, 1, 1]} : vector<18x18x4xf32> to vector<16x16x4xf32>
    %46 = vector.extract_strided_slice %41 {offsets = [1, 1, 0], sizes = [16, 16, 4], strides = [1, 1, 1]} : vector<18x18x4xf32> to vector<16x16x4xf32>
    %47 = vector.extract_strided_slice %41 {offsets = [1, 2, 0], sizes = [16, 16, 4], strides = [1, 1, 1]} : vector<18x18x4xf32> to vector<16x16x4xf32>
    %48 = vector.extract_strided_slice %41 {offsets = [2, 0, 0], sizes = [16, 16, 4], strides = [1, 1, 1]} : vector<18x18x4xf32> to vector<16x16x4xf32>
    %49 = vector.extract_strided_slice %41 {offsets = [2, 1, 0], sizes = [16, 16, 4], strides = [1, 1, 1]} : vector<18x18x4xf32> to vector<16x16x4xf32>
    %50 = vector.extract_strided_slice %41 {offsets = [2, 2, 0], sizes = [16, 16, 4], strides = [1, 1, 1]} : vector<18x18x4xf32> to vector<16x16x4xf32>
    %51 = tpu.concatenate %42, %43, %44, %45, %46, %47, %48, %49, %50 in 2 : vector<16x16x4xf32>, vector<16x16x4xf32>, vector<16x16x4xf32>, vector<16x16x4xf32>, vector<16x16x4xf32>, vector<16x16x4xf32>, vector<16x16x4xf32>, vector<16x16x4xf32>, vector<16x16x4xf32> -> vector<16x16x36xf32>
    %52 = vector.shape_cast %51 : vector<16x16x36xf32> to vector<256x36xf32>
    %c0_14 = arith.constant 0 : index
    %c0_15 = arith.constant 0 : index
    %53 = vector.load %arg5[%c0_14, %c0_15] : memref<36x8xf32, #tpu.memory_space<vmem>>, vector<36x8xf32>
    %cst_16 = arith.constant dense<0.000000e+00> : vector<256x8xf32>
    %54 = tpu.matmul %52, %53, %cst_16 {dimension_numbers = #tpu.dot_dimension_numbers<[1], [0], [0], [1], [0, 0, 1, 1], [], []>} : vector<256x36xf32>, vector<36x8xf32>, vector<256x8xf32> -> vector<256x8xf32>
    %55 = vector.shape_cast %54 : vector<256x8xf32> to vector<1x1x16x16x8xf32>
    %c0_17 = arith.constant 0 : index
    %c0_18 = arith.constant 0 : index
    %c0_19 = arith.constant 0 : index
    %c0_20 = arith.constant 0 : index
    %c0_21 = arith.constant 0 : index
    %56 = vector.load %arg6[%c0_17, %c0_18, %c0_19, %c0_20, %c0_21] : memref<1x1x16x16x8xf32, #tpu.memory_space<vmem>>, vector<1x1x16x16x8xf32>
    tpu.vector_store %arg6[%c0_17, %c0_18, %c0_19, %c0_20, %c0_21], %55 {strides = array<i32>} : memref<1x1x16x16x8xf32, #tpu.memory_space<vmem>>, vector<1x1x16x16x8xf32>,
    return
  }
  func.func @transform_0(%arg0: i32, %arg1: i32) -> (i32, i32, i32, i32, i32) {
    %c0_i32 = arith.constant 0 : i32
    %c0_i32_0 = arith.constant 0 : i32
    %c0_i32_1 = arith.constant 0 : i32
    %c0_i32_2 = arith.constant 0 : i32
    return %arg0, %arg1, %c0_i32, %c0_i32_0, %c0_i32_1 : i32, i32, i32, i32, i32
  }
  func.func @transform_1(%arg0: i32, %arg1: i32) -> (i32, i32) {
    %c0_i32 = arith.constant 0 : i32
    %c0_i32_0 = arith.constant 0 : i32
    %c0_i32_1 = arith.constant 0 : i32
    return %c0_i32, %c0_i32_0 : i32, i32
  }
  func.func @transform_2(%arg0: i32, %arg1: i32) -> (i32, i32) {
    %c0_i32 = arith.constant 0 : i32
    %c0_i32_0 = arith.constant 0 : i32
    %c0_i32_1 = arith.constant 0 : i32
    return %c0_i32, %c0_i32_0 : i32, i32
  }
  func.func @transform_3(%arg0: i32, %arg1: i32) -> (i32, i32) {
    %c0_i32 = arith.constant 0 : i32
    %c0_i32_0 = arith.constant 0 : i32
    %c0_i32_1 = arith.constant 0 : i32
    return %c0_i32, %c0_i32_0 : i32, i32
  }
  func.func @transform_4(%arg0: i32, %arg1: i32) -> (i32, i32, i32, i32, i32) {
    %c0_i32 = arith.constant 0 : i32
    %c0_i32_0 = arith.constant 0 : i32
    %c0_i32_1 = arith.constant 0 : i32
    %c0_i32_2 = arith.constant 0 : i32
    return %arg0, %arg1, %c0_i32, %c0_i32_0, %c0_i32_1 : i32, i32, i32, i32, i32
  }
}

</mosaic_0001>

<bundles_post_ra>
// kernel: tpu_custom_call.1
= control target key start
LH: loop header
LB: loop body
LE: loop exit
PB: predicated region body
PF: predicated region fallthrough
CT: control target
= control target key end

     0   :  { %s3494_s15 = smov 0   ;;  %s3496_s16 = smov 0   ;;  %s6045_s0 = inlined_call_operand.vmem [shape: f32[2,1,18,18,4], index: 0, kind: input, shape index: {}]   ;;  %s6046_s1 = inlined_call_operand.vmem [shape: f32[1,4], index: 1, kind: input, shape index: {}]   ;;  %s6047_s2 = inlined_call_operand.vmem [shape: f32[1,4], index: 2, kind: input, shape index: {}]   ;;  %s6048_s3 = inlined_call_operand.vmem [shape: f32[36,8], index: 3, kind: input, shape index: {}]   ;;  %s6049_s4 = inlined_call_operand.vmem [shape: f32[2,1,16,16,8], index: 4, kind: output, shape index: {}]  }
   0x1   :  { %s3498_s17 = smov 0  }
   0x2 LB: > { %s26_s18 = sadd.s32 1, %s3454_s16  ;;  %p3030_p0 = scmp.ge.s32.totalorder %s3458_s17, 1  ;;  %s3458_s17 = sphi %s3498_s17, %s14_s17   ;;  %s3454_s16 = sphi %s3496_s16, %s6485_s16   ;;  %s3450_s15 = sphi %s3494_s15, %s6484_s15  }
   0x3   : > { %p28_p1 = scmp.ge.s32.totalorder %s26_s18, 2  ;;  %p182_p2 = scmp.lt.s32.totalorder %s3458_s17, 3 }
   0x5   : > { %s6487_s18 = smov (%p28_p1, %s26_s18), 0  ;;  %p183_p3 = pnand %p3030_p0, %p182_p2 }
   0x7   : > { %186 = sbr.rel (%p183_p3) target bundleno = 977 (0x3d1), region = 36 }
   0xe   : > { %p216_p4 = scmp.lt.s32.totalorder %s3450_s15, 1  ;;  %v6050_v0 = vmov 0.0   ;;  %s3461_s20 = smov 4   ;;  %v3523_v3 = vld [vmem:[%s6046_s1] ss:$0 sm:$0xff]  ;;  %v969_v43 = vlaneseq  ;;  %vm1351_vm6 = vcmask 1046528  }
   0xf   : > { %v1352_v1 = vrot.slane %v6050_v0, 1  ;;  %v3533_v4 = vld [vmem:[%s6047_s2] ss:$0 sm:$0xff]  ;;  %s3462_s6 = smov 8   ;;  %s3463_s7 = smov 12  }
  0x10   : > { %s6489_s15 = smov (!%p216_p4, %s3450_s15), 1  ;;  %v3606_v55 = vshrl.u32 %v969_v43, 7  ;;  %s3464_s8 = smov 16  }
  0x11   : > { %v3515_v2 = vpack.i.bf16 %v1352_v1, %v1352_v1  ;;  %s3181_s19 = smul.u32 432, %s6489_s15  ;;  %s3465_s9 = smov 20  }
  0x12   : > { %vm1027_vm4 = vcmp.ge.s32.totalorder %v3606_v55, 1  ;;  %s3466_s10 = smov 24   ;;  %s3467_s11 = smov 28  }
  0x13   : > { %6183 = vst [vmem:[#allocation2_spill] sm:$0xff] %v3515_v2  ;;  %3216 = vrot.lane.b32.xlu0 %v3515_v2, %s3461_s20  ;;  %s3528_s25 = scalar_lea.vmem %s6045_s0, %s3181_s19  ;;  %s3468_s12 = smov 32  }
  0x14   : > { %v238_v5 = vld [vmem:[%s3528_s25 + $0x20] sm:$0xff]  ;;  %v239_v6 = vld [vmem:[%s3528_s25 + $0x28] sm:$0x3]  ;;  %v237_v7 = vld [vmem:[%s3528_s25 + $0x18] sm:$0xff]  ;;  %s3071_s5 = sshll.u32 %s6489_s15, 8 }
  0x15   : > { %v300_v8 = vmul.f32 %v3523_v3, %v238_v5  ;;  %v301_v9 = vmul.f32 %v3523_v3, %v239_v6  ;;  %v299_v10 = vmul.f32 %v3523_v3, %v237_v7  ;;  %v240_v11 = vld [vmem:[%s3528_s25 + $0x30] sm:$0xff]  ;;  %v241_v12 = vld [vmem:[%s3528_s25 + $0x38] sm:$0xff]  ;;  %v242_v13 = vld [vmem:[%s3528_s25 + $0x40] sm:$0x3]  ;;  %v3623_v7 = vadd.s32 16, %v3606_v55 }
  0x16   : > { %v302_v14 = vmul.f32 %v3523_v3, %v240_v11  ;;  %v303_v15 = vmul.f32 %v3523_v3, %v241_v12  ;;  %v304_v16 = vmul.f32 %v3523_v3, %v242_v13  ;;  %v243_v17 = vld [vmem:[%s3528_s25 + $0x48] sm:$0xff]  ;;  %v244_v18 = vld [vmem:[%s3528_s25 + $0x50] sm:$0xff]  ;;  %v245_v29 = vld [vmem:[%s3528_s25 + $0x58] sm:$0x3] }
  0x17   : > { %v3550_v19 = vadd.f32 %v3533_v4, %v300_v8  ;;  %v3553_v20 = vadd.f32 %v3533_v4, %v301_v9  ;;  %v3556_v21 = vadd.f32 %v3533_v4, %v299_v10  ;;  %v305_v22 = vmul.f32 %v3523_v3, %v243_v17  ;;  %v246_v32 = vld [vmem:[%s3528_s25 + $0x60] sm:$0xff]  ;;  %v247_v33 = vld [vmem:[%s3528_s25 + $0x68] sm:$0xff]  ;;  %v248_v41 = vld [vmem:[%s3528_s25 + $0x70] sm:$0x3]  ;;  %6184 = vst [vmem:[#allocation3_spill] sm:$0xff] %v3623_v7 }
  0x18   : > { %v3560_v23 = vadd.f32 %v3533_v4, %v302_v14  ;;  %v3563_v24 = vadd.f32 %v3533_v4, %v303_v15  ;;  %v3566_v25 = vadd.f32 %v3533_v4, %v304_v16  ;;  %v306_v26 = vmul.f32 %v3523_v3, %v244_v18  ;;  %v249_v42 = vld [vmem:[%s3528_s25 + $0x78] sm:$0xff]  ;;  %v250_v50 = vld [vmem:[%s3528_s25 + $0x80] sm:$0xff]  ;;  %v251_v54 = vld [vmem:[%s3528_s25 + $0x88] sm:$0x3] }
  0x19   : > { %v418_v27 = vmul.f32 1.442695, %v3550_v19  ;;  %v420_v28 = vmul.f32 1.442695, %v3553_v20  ;;  %v416_v30 = vmul.f32 1.442695, %v3556_v21  ;;  %v3579_v36 = vadd.f32 %v3533_v4, %v305_v22 }
  0x1a   : > { %v422_v31 = vmul.f32 1.442695, %v3560_v23  ;;  %v424_v34 = vmul.f32 1.442695, %v3563_v24  ;;  %v426_v35 = vmul.f32 1.442695, %v3566_v25  ;;  %v3582_v37 = vadd.f32 %v3533_v4, %v306_v26 }
  0x1b   : > { %3240 = vpow2.f32 %v418_v27  ;;  %v307_v38 = vmul.f32 %v3523_v3, %v245_v29  ;;  %v308_v39 = vmul.f32 %v3523_v3, %v246_v32  ;;  %v309_v40 = vmul.f32 %v3523_v3, %v247_v33  ;;  %v252_v61 = vld [vmem:[%s3528_s25 + $0x90] sm:$0xff]  ;;  %v253_v10 = vld [vmem:[%s3528_s25 + $0x98] sm:$0xff] }
  0x1c   : > { %3242 = vpow2.f32 %v420_v28  ;;  %v428_v44 = vmul.f32 1.442695, %v3579_v36  ;;  %v430_v45 = vmul.f32 1.442695, %v3582_v37  ;;  %v310_v49 = vmul.f32 %v3523_v3, %v248_v41 }
  0x1d   : > { %3244 = vpow2.f32 %v416_v30  ;;  %v3592_v46 = vadd.f32 %v3533_v4, %v307_v38  ;;  %v3595_v47 = vadd.f32 %v3533_v4, %v308_v39  ;;  %v3598_v48 = vadd.f32 %v3533_v4, %v309_v40 }
  0x1e   : > { %3246 = vpow2.f32 %v422_v31  ;;  %v311_v51 = vmul.f32 %v3523_v3, %v249_v42  ;;  %v3610_v57 = vadd.f32 %v3533_v4, %v310_v49  ;;  %v312_v58 = vmul.f32 %v3523_v3, %v250_v50 }
  0x1f   : > { %3248 = vpow2.f32 %v424_v34  ;;  %v432_v52 = vmul.f32 1.442695, %v3592_v46  ;;  %v434_v53 = vmul.f32 1.442695, %v3595_v47  ;;  %v436_v56 = vmul.f32 1.442695, %v3598_v48 }
  0x20   : > { %3250 = vpow2.f32 %v426_v35  ;;  %v3614_v59 = vadd.f32 %v3533_v4, %v311_v51  ;;  %v313_v60 = vmul.f32 %v3523_v3, %v251_v54  ;;  %v438_v63 = vmul.f32 1.442695, %v3610_v57 }
  0x21   : > { %3252 = vpow2.f32 %v428_v44  ;;  %v3620_v1 = vadd.f32 %v3533_v4, %v312_v58  ;;  %v314_v14 = vmul.f32 %v3523_v3, %v252_v61  ;;  %v315_v28 = vmul.f32 %v3523_v3, %v253_v10 }
  0x22   : > { %3254 = vpow2.f32 %v430_v45  ;;  %v440_v8 = vmul.f32 1.442695, %v3614_v59  ;;  %v3627_v9 = vadd.f32 %v3533_v4, %v313_v60  ;;  %vm846_vm0 = vcmp.gt.f32.partialorder %v3550_v19, 20.0 }
  0x23   : > { %3256 = vpow2.f32 %v432_v52  ;;  %v442_v13 = vmul.f32 1.442695, %v3620_v1  ;;  %v3645_v39 = vadd.f32 %v3533_v4, %v314_v14  ;;  %vm847_vm1 = vcmp.gt.f32.partialorder %v3553_v20, 20.0 }
  0x24   : > { %3258 = vpow2.f32 %v434_v53  ;;  %v444_v18 = vmul.f32 1.442695, %v3627_v9  ;;  %vm1086_vm2 = vcmp.le.s32.totalorder %v3623_v7, 16  ;;  %vm845_vm3 = vcmp.gt.f32.partialorder %v3556_v21, 20.0 }
  0x25   : > { %v3241_v62 = vpop.eup %3240  ;;  %3260 = vpow2.f32 %v436_v56  ;;  %vm848_vm5 = vcmp.gt.f32.partialorder %v3560_v23, 20.0  ;;  %vm849_vm7 = vcmp.gt.f32.partialorder %v3563_v24, 20.0  ;;  %vm850_vm8 = vcmp.gt.f32.partialorder %v3566_v25, 20.0 }
  0x26   : > { %v3243_v5 = vpop.eup %3242  ;;  %v522_v6 = vadd.f32 2.0, %v3241_v62  ;;  %3262 = vpow2.f32 %v438_v63  ;;  %vm851_vm9 = vcmp.gt.f32.partialorder %v3579_v36, 20.0  ;;  %vm852_vm10 = vcmp.gt.f32.partialorder %v3582_v37, 20.0 }
  0x27   : > { %v3245_v11 = vpop.eup %3244  ;;  %v523_v12 = vadd.f32 2.0, %v3243_v5  ;;  %3264 = vpow2.f32 %v440_v8  ;;  %vm853_vm11 = vcmp.gt.f32.partialorder %v3592_v46, 20.0  ;;  %vm854_vm12 = vcmp.gt.f32.partialorder %v3595_v47, 20.0 }
  0x28   : > { %v3247_v15 = vpop.eup %3246  ;;  %v3632_v16 = vmul.f32 %v3241_v62, %v522_v6  ;;  %v521_v17 = vadd.f32 2.0, %v3245_v11  ;;  %3266 = vpow2.f32 %v442_v13  ;;  %vm855_vm13 = vcmp.gt.f32.partialorder %v3598_v48, 20.0 }
  0x29   : > { %v3249_v22 = vpop.eup %3248  ;;  %v3635_v26 = vmul.f32 %v3243_v5, %v523_v12  ;;  %v524_v27 = vadd.f32 2.0, %v3247_v15  ;;  %3268 = vpow2.f32 %v444_v18  ;;  %vm856_vm14 = vcmp.gt.f32.partialorder %v3610_v57, 20.0 }
  0x2a   : > { %v3251_v29 = vpop.eup %3250  ;;  %v630_v30 = vadd.f32 2.0, %v3632_v16  ;;  %v3639_v31 = vmul.f32 %v3245_v11, %v521_v17  ;;  %v525_v32 = vadd.f32 2.0, %v3249_v22  ;;  %v3668_v11 = vadd.f32 %v3533_v4, %v315_v28 }
  0x2b   : > { %v3253_v33 = vpop.eup %3252  ;;  %v631_v34 = vadd.f32 2.0, %v3635_v26  ;;  %v3642_v35 = vmul.f32 %v3247_v15, %v524_v27  ;;  %v526_v38 = vadd.f32 2.0, %v3251_v29  ;;  %v446_v27 = vmul.f32 1.442695, %v3645_v39 }
  0x2c   : > { %v3255_v40 = vpop.eup %3254  ;;  %3270 = vrcp.f32 %v630_v30  ;;  %v629_v41 = vadd.f32 2.0, %v3639_v31  ;;  %v3648_v42 = vmul.f32 %v3249_v22, %v525_v32  ;;  %v527_v43 = vadd.f32 2.0, %v3253_v33 }
  0x2d   : > { %v3257_v44 = vpop.eup %3256  ;;  %3272 = vrcp.f32 %v631_v34  ;;  %v632_v45 = vadd.f32 2.0, %v3642_v35  ;;  %v3651_v49 = vmul.f32 %v3251_v29, %v526_v38  ;;  %v528_v50 = vadd.f32 2.0, %v3255_v40 }
  0x2e   : > { %v3259_v51 = vpop.eup %3258  ;;  %3274 = vrcp.f32 %v629_v41  ;;  %v633_v52 = vadd.f32 2.0, %v3648_v42  ;;  %v3654_v53 = vmul.f32 %v3253_v33, %v527_v43  ;;  %v529_v54 = vadd.f32 2.0, %v3257_v44 }
  0x2f   : > { %v3261_v56 = vpop.eup %3260  ;;  %3276 = vrcp.f32 %v632_v45  ;;  %v634_v58 = vadd.f32 2.0, %v3651_v49  ;;  %v3657_v60 = vmul.f32 %v3255_v40, %v528_v50  ;;  %v530_v61 = vadd.f32 2.0, %v3259_v51 }
  0x30   : > { %3278 = vrcp.f32 %v633_v52  ;;  %v635_v62 = vadd.f32 2.0, %v3654_v53  ;;  %v3661_v63 = vmul.f32 %v3257_v44, %v529_v54  ;;  %v531_v5 = vadd.f32 2.0, %v3261_v56  ;;  %v3263_v6 = vpop.eup %3262 }
  0x31   : > { %3280 = vrcp.f32 %v634_v58  ;;  %v636_v8 = vadd.f32 2.0, %v3657_v60  ;;  %v3665_v10 = vmul.f32 %v3259_v51, %v530_v61  ;;  %v3265_v12 = vpop.eup %3264  ;;  %v532_v15 = vadd.f32 2.0, %v3263_v6  ;;  %v254_v51 = vld [vmem:[%s3528_s25 + $0xa0] sm:$0x3] }
  0x32   : > { %3282 = vrcp.f32 %v635_v62  ;;  %v637_v13 = vadd.f32 2.0, %v3661_v63  ;;  %v3673_v14 = vmul.f32 %v3261_v56, %v531_v5  ;;  %v3267_v17 = vpop.eup %3266  ;;  %v533_v22 = vadd.f32 2.0, %v3265_v12 }
  0x33   : > { %3284 = vrcp.f32 %v636_v8  ;;  %v638_v18 = vadd.f32 2.0, %v3665_v10  ;;  %v3269_v28 = vpop.eup %3268  ;;  %v3680_v30 = vmul.f32 %v3263_v6, %v532_v15  ;;  %v534_v32 = vadd.f32 2.0, %v3267_v17 }
  0x34   : > { %3286 = vrcp.f32 %v637_v13  ;;  %v639_v29 = vadd.f32 2.0, %v3673_v14  ;;  %v3683_v33 = vmul.f32 %v3265_v12, %v533_v22  ;;  %v535_v34 = vadd.f32 2.0, %v3269_v28 }
  0x35   : > { %3288 = vrcp.f32 %v638_v18  ;;  %v640_v40 = vadd.f32 2.0, %v3680_v30  ;;  %v3687_v41 = vmul.f32 %v3267_v17, %v534_v32  ;;  %v3699_v58 = vmul.f32 1.442695, %v3668_v11 }
  0x36   : > { %v3271_v38 = vpop.eup %3270  ;;  %3290 = vrcp.f32 %v639_v29  ;;  %v641_v45 = vadd.f32 2.0, %v3683_v33  ;;  %v3691_v50 = vmul.f32 %v3269_v28, %v535_v34  ;;  %v3707_v12 = vmul.f32 %v3523_v3, %v254_v51 }
  0x37   : > { %v3273_v43 = vpop.eup %3272  ;;  %v738_v44 = vmul.f32 %v3271_v38, %v3632_v16  ;;  %3292 = vpow2.f32 %v446_v27  ;;  %v642_v56 = vadd.f32 2.0, %v3687_v41  ;;  %vm857_vm15 = vcmp.gt.f32.partialorder %v3614_v59, 20.0 }
  0x38   : > { %v3275_v52 = vpop.eup %3274  ;;  %v739_v54 = vmul.f32 %v3273_v43, %v3635_v26  ;;  %3294 = vrcp.f32 %v640_v40  ;;  %v643_v5 = vadd.f32 2.0, %v3691_v50 }
  0x39   : > { %v3277_v16 = vpop.eup %3276  ;;  %v792_v61 = vmul.f32 %v738_v44, %v3550_v19  ;;  %v737_v62 = vmul.f32 %v3275_v52, %v3639_v31  ;;  %3296 = vrcp.f32 %v641_v45 }
  0x3a   : > { %v3279_v6 = vpop.eup %3278  ;;  %v793_v26 = vmul.f32 %v739_v54, %v3553_v20  ;;  %v740_v8 = vmul.f32 %v3277_v16, %v3642_v35  ;;  %3298 = vrcp.f32 %v642_v56 }
  0x3b   : > { %v3281_v13 = vpop.eup %3280  ;;  %v3712_v15 = vsel %vm846_vm0, %v3550_v19, %v792_v61  ;;  %v791_v31 = vmul.f32 %v737_v62, %v3556_v21  ;;  %v741_v17 = vmul.f32 %v3279_v6, %v3648_v42  ;;  %3300 = vrcp.f32 %v643_v5 }
  0x3c   : > { %6185 = vst [vmem:[#allocation4_spill] sm:$0xff] %v3712_v15  ;;  %v3283_v18 = vpop.eup %3282  ;;  %v901_v35 = vsel %vm847_vm1, %v3553_v20, %v793_v26  ;;  %v1358_v22 = vrot.slane %v3712_v15, 1  ;;  %v794_v27 = vmul.f32 %v740_v8, %v3560_v23  ;;  %v742_v28 = vmul.f32 %v3281_v13, %v3651_v49 }
  0x3d   : > { %v3285_v19 = vpop.eup %3284  ;;  %v3727_v42 = vsel %vm1086_vm2, %v901_v35, 0.0  ;;  %v899_v29 = vsel %vm845_vm3, %v3556_v21, %v791_v31  ;;  %v795_v20 = vmul.f32 %v741_v17, %v3563_v24  ;;  %v743_v32 = vmul.f32 %v3283_v18, %v3654_v53 }
  0x3e   : > { %v3287_v49 = vpop.eup %3286  ;;  %v1360_v34 = vrot.slane %v3727_v42, 1  ;;  %v3738_v38 = vsel %vm1027_vm4, %v899_v29, 0.0  ;;  %v902_v40 = vsel %vm848_vm5, %v3560_v23, %v794_v27  ;;  %v796_v43 = vmul.f32 %v742_v28, %v3566_v25 }
  0x3f   : > { %v3289_v21 = vpop.eup %3288  ;;  %v1357_v44 = vrot.slane %v3738_v38, 1  ;;  %v3748_v53 = vsel %vm849_vm7, %v3563_v24, %v795_v20  ;;  %v3752_v45 = vsel %vm1027_vm4, %v902_v40, 0.0  ;;  %v744_v51 = vmul.f32 %v3285_v19, %v3657_v60 }
  0x40   : > { %v3291_v52 = vpop.eup %3290  ;;  %v3756_v54 = vsel %vm1351_vm6, %v1358_v22, %v1360_v34  ;;  %v1362_v23 = vrot.slane %v3752_v45, 1  ;;  %v1363_v56 = vrot.slane %v3748_v53, 1  ;;  %v904_v16 = vsel %vm850_vm8, %v3566_v25, %v796_v43 }
  0x41   : > { %6186 = vst [vmem:[#allocation5_spill] sm:$0xff] %v3756_v54  ;;  %vm858_vm0 = vcmp.gt.f32.partialorder %v3620_v1, 20.0  ;;  %v3765_v24 = vpop.eup %3292  ;;  %1438 = vrot.lane.b32.xlu1 %v3756_v54, %s3461_s20  ;;  %v3770_v60 = vsel %vm1351_vm6, %v1357_v44, %v1358_v22  ;;  %v3774_v61 = vsel %vm1086_vm2, %v904_v16, 0.0  ;;  %v797_v62 = vmul.f32 %v743_v32, %v3579_v36 }
  0x42   : > { %6187 = vst [vmem:[#allocation6_spill] sm:$0xff] %v3770_v60  ;;  %v798_v25 = vmul.f32 %v744_v51, %v3582_v37  ;;  %vm859_vm1 = vcmp.gt.f32.partialorder %v3627_v9, 20.0  ;;  %v3295_v5 = vpop.eup %3294  ;;  %1436 = vrot.lane.b32.xlu0 %v3770_v60, %s3461_s20  ;;  %v3782_v6 = vsel %vm1351_vm6, %v1362_v23, %v1363_v56  ;;  %v1365_v26 = vrot.slane %v3774_v61, 1 }
  0x43   : > { %6188 = vst [vmem:[#allocation7_spill] sm:$0xff] %v3782_v6  ;;  %v745_v8 = vmul.f32 %v3287_v49, %v3661_v63  ;;  %v746_v13 = vmul.f32 %v3289_v21, %v3665_v10  ;;  %v3297_v31 = vpop.eup %3296  ;;  %v905_v17 = vsel %vm851_vm9, %v3579_v36, %v797_v62  ;;  %v747_v35 = vmul.f32 %v3291_v52, %v3673_v14 }
  0x44   : > { %v3793_v18 = vsel %vm852_vm10, %v3582_v37, %v798_v25  ;;  %v748_v22 = vmul.f32 %v3295_v5, %v3680_v30  ;;  %v3299_v27 = vpop.eup %3298  ;;  %v3798_v28 = vsel %vm1351_vm6, %v1363_v56, %v1365_v26  ;;  %v3802_v63 = vsel %vm1027_vm4, %v905_v17, 0.0  ;;  %v255_v26 = vld [vmem:[%s3528_s25 + $0xa8] sm:$0xff] }
  0x45   : > { %6189 = vst [vmem:[#allocation8_spill] sm:$0xff] %v3793_v18  ;;  %6190 = vst [vmem:[#allocation9_spill] sm:$0xff] %v3798_v28  ;;  %v1368_v10 = vrot.slane %v3793_v18, 1  ;;  %v799_v36 = vmul.f32 %v745_v8, %v3592_v46  ;;  %v3301_v19 = vpop.eup %3300  ;;  %1440 = vrot.lane.b32.xlu1 %v3782_v6, %s3461_s20  ;;  %v1367_v37 = vrot.slane %v3802_v63, 1  ;;  %v800_v14 = vmul.f32 %v746_v13, %v3595_v47  ;;  %v257_v8 = vld [vmem:[%s3528_s25 + $0xb8] sm:$0x3] }
  0x46   : > { %6191 = vst [vmem:[#allocation10_spill] sm:$0xff] %v3802_v63  ;;  %v801_v30 = vmul.f32 %v747_v35, %v3598_v48  ;;  %v802_v29 = vmul.f32 %v748_v22, %v3610_v57  ;;  %1442 = vrot.lane.b32.xlu0 %v3798_v28, %s3461_s20  ;;  %v749_v32 = vmul.f32 %v3297_v31, %v3683_v33  ;;  %3302 = vpow2.f32 %v3699_v58  ;;  %v256_v58 = vld [vmem:[%s3528_s25 + $0xb0] sm:$0xff] }
  0x47   : > { %v907_v20 = vsel %vm853_vm11, %v3592_v46, %v799_v36  ;;  %v750_v49 = vmul.f32 %v3299_v27, %v3687_v41  ;;  %v751_v34 = vmul.f32 %v3301_v19, %v3691_v50  ;;  %v3821_v40 = vsel %vm1351_vm6, %v1367_v37, %v1368_v10  ;;  %v258_v37 = vld [vmem:[%s3528_s25 + $0xc0] sm:$0xff] }
  0x48   : > { %6192 = vst [vmem:[#allocation11_spill] sm:$0xff] %v3821_v40  ;;  %v3825_v43 = vsel %vm1086_vm2, %v907_v20, 0.0  ;;  %v908_v21 = vsel %vm854_vm12, %v3595_v47, %v800_v14  ;;  %v3833_v46 = vsel %vm855_vm13, %v3598_v48, %v801_v30  ;;  %v910_v44 = vsel %vm856_vm14, %v3610_v57, %v802_v29  ;;  %v259_v14 = vld [vmem:[%s3528_s25 + $0xc8] sm:$0xff]  ;;  %v260_v30 = vld [vmem:[%s3528_s25 + $0xd0] sm:$0x3] }
  0x49   : > { %6193 = vst [vmem:[#allocation12_spill] sm:$0xff] %v3833_v46  ;;  %v1370_v33 = vrot.slane %v3825_v43, 1  ;;  %v3838_v41 = vsel %vm1027_vm4, %v908_v21, 0.0  ;;  %v1373_v50 = vrot.slane %v3833_v46, 1  ;;  %1444 = vrot.lane.b32.xlu1 %v3821_v40, %s3461_s20  ;;  %v3849_v48 = vsel %vm1086_vm2, %v910_v44, 0.0  ;;  %v261_v44 = vld [vmem:[%s3528_s25 + $0xd8] sm:$0xff] }
  0x4a   : > { %6194 = vst [vmem:[#allocation13_spill] sm:$0xff] %v3838_v41  ;;  %v1372_v47 = vrot.slane %v3838_v41, 1  ;;  %v803_v51 = vmul.f32 %v749_v32, %v3614_v59  ;;  %v804_v52 = vmul.f32 %v750_v49, %v3620_v1  ;;  %v1375_v57 = vrot.slane %v3849_v48, 1 }
  0x4b   : > { %v3854_v23 = vsel %vm1351_vm6, %v1368_v10, %v1370_v33  ;;  %v805_v56 = vmul.f32 %v751_v34, %v3627_v9  ;;  %v536_v5 = vadd.f32 2.0, %v3765_v24  ;;  %v3899_v27 = vadd.f32 %v3533_v4, %v3707_v12 }
  0x4c   : > { %6195 = vst [vmem:[#allocation14_spill] sm:$0xff] %v3854_v23  ;;  %1446 = vrot.lane.b32.xlu0 %v3854_v23, %s3461_s20  ;;  %v3862_v16 = vsel %vm1351_vm6, %v1372_v47, %v1373_v50  ;;  %v911_v62 = vsel %vm857_vm15, %v3614_v59, %v803_v51  ;;  %v3870_v25 = vsel %vm858_vm0, %v3620_v1, %v804_v52  ;;  %vm860_vm3 = vcmp.gt.f32.partialorder %v3645_v39, 20.0 }
  0x4d   : > { %6196 = vst [vmem:[#allocation15_spill] sm:$0xff] %v3862_v16  ;;  %6197 = vst [vmem:[#allocation16_spill] sm:$0xff] %v3870_v25  ;;  %v3877_v13 = vsel %vm1351_vm6, %v1373_v50, %v1375_v57  ;;  %v3881_v31 = vsel %vm1027_vm4, %v911_v62, 0.0  ;;  %v1378_v59 = vrot.slane %v3870_v25, 1  ;;  %v913_v1 = vsel %vm859_vm1, %v3627_v9, %v805_v56  ;;  %1448 = vrot.lane.b32.xlu1 %v3862_v16, %s3461_s20 }
  0x4e   : > { %6198 = vst [vmem:[#allocation17_spill] sm:$0xff] %v3877_v13  ;;  %6199 = vst [vmem:[#allocation18_spill] sm:$0xff] %v3881_v31  ;;  %v1377_v17 = vrot.slane %v3881_v31, 1  ;;  %v3892_v35 = vsel %vm1086_vm2, %v913_v1, 0.0  ;;  %v3895_v22 = vmul.f32 %v3765_v24, %v536_v5  ;;  %v317_v9 = vmul.f32 %v3523_v3, %v255_v26  ;;  %v262_v26 = vld [vmem:[%s3528_s25 + $0xe0] sm:$0xff] }
  0x4f   : > { %v1380_v10 = vrot.slane %v3892_v35, 1  ;;  %v318_v36 = vmul.f32 %v3523_v3, %v256_v58  ;;  %v319_v19 = vmul.f32 %v3523_v3, %v257_v8  ;;  %v450_v29 = vmul.f32 1.442695, %v3899_v27  ;;  %v263_v1 = vld [vmem:[%s3528_s25 + $0xe8] sm:$0x3] }
  0x50   : > { %1450 = vrot.lane.b32.xlu0 %v3877_v13, %s3461_s20  ;;  %v3911_v24 = vsel %vm1351_vm6, %v1377_v17, %v1378_v59  ;;  %v644_v12 = vadd.f32 2.0, %v3895_v22  ;;  %v3919_v32 = vadd.f32 %v3533_v4, %v317_v9  ;;  %v320_v21 = vmul.f32 %v3523_v3, %v258_v37  ;;  %v3303_v56 = vpop.eup %3302  ;;  %v264_v17 = vld [vmem:[%s3528_s25 + $0xf0] sm:$0xff] }
  0x51   : > { %6200 = vst [vmem:[#allocation19_spill] sm:$0xff] %v3911_v24  ;;  %v3916_v20 = vsel %vm1351_vm6, %v1378_v59, %v1380_v10  ;;  %v3922_v49 = vadd.f32 %v3533_v4, %v318_v36  ;;  %v3925_v34 = vadd.f32 %v3533_v4, %v319_v19  ;;  %1452 = vrot.lane.b32.xlu1 %v3911_v24, %s3461_s20  ;;  %v537_v8 = vadd.f32 2.0, %v3303_v56  ;;  %v265_v36 = vld [vmem:[%s3528_s25 + $0xf8] sm:$0xff] }
  0x52   : > { %6201 = vst [vmem:[#allocation20_spill] sm:$0xff] %v3916_v20  ;;  %3304 = vrcp.f32 %v644_v12  ;;  %v321_v33 = vmul.f32 %v3523_v3, %v259_v14  ;;  %v322_v50 = vmul.f32 %v3523_v3, %v260_v30  ;;  %v452_v47 = vmul.f32 1.442695, %v3919_v32 }
  0x53   : > { %3306 = vpow2.f32 %v450_v29  ;;  %v454_v51 = vmul.f32 1.442695, %v3922_v49  ;;  %v456_v52 = vmul.f32 1.442695, %v3925_v34  ;;  %v3939_v57 = vadd.f32 %v3533_v4, %v320_v21 }
  0x54   : > { %1454 = vrot.lane.b32.xlu0 %v3916_v20, %s3461_s20  ;;  %3308 = vpow2.f32 %v452_v47  ;;  %v3942_v62 = vadd.f32 %v3533_v4, %v321_v33  ;;  %v3945_v5 = vadd.f32 %v3533_v4, %v322_v50  ;;  %v323_v58 = vmul.f32 %v3523_v3, %v261_v44 }
  0x55   : > { %3310 = vpow2.f32 %v454_v51  ;;  %v458_v59 = vmul.f32 1.442695, %v3939_v57  ;;  %v3955_v19 = vmul.f32 %v3303_v56, %v537_v8  ;;  %v324_v37 = vmul.f32 %v3523_v3, %v262_v26 }
  0x56   : > { %3312 = vpow2.f32 %v456_v52  ;;  %v460_v10 = vmul.f32 1.442695, %v3942_v62  ;;  %v462_v9 = vmul.f32 1.442695, %v3945_v5  ;;  %v3959_v14 = vadd.f32 %v3533_v4, %v323_v58 }
  0x57   : > { %3314 = vpow2.f32 %v458_v59  ;;  %v325_v30 = vmul.f32 %v3523_v3, %v263_v1  ;;  %v326_v12 = vmul.f32 %v3523_v3, %v264_v17  ;;  %v645_v29 = vadd.f32 2.0, %v3955_v19  ;;  %v266_v59 = vld [vmem:[%s3528_s25 + $0x100] sm:$0x3] }
  0x58   : > { %3316 = vpow2.f32 %v460_v10  ;;  %v3965_v21 = vadd.f32 %v3533_v4, %v324_v37  ;;  %v327_v33 = vmul.f32 %v3523_v3, %v265_v36  ;;  %v464_v50 = vmul.f32 1.442695, %v3959_v14 }
  0x59   : > { %3318 = vpow2.f32 %v462_v9  ;;  %v3970_v44 = vadd.f32 %v3533_v4, %v325_v30  ;;  %v3973_v47 = vadd.f32 %v3533_v4, %v326_v12  ;;  %v328_v12 = vmul.f32 %v3523_v3, %v266_v59 }
  0x5a   : > { %3320 = vrcp.f32 %v645_v29  ;;  %v466_v52 = vmul.f32 1.442695, %v3965_v21  ;;  %v3977_v56 = vadd.f32 %v3533_v4, %v327_v33  ;;  %v267_v29 = vld [vmem:[%s3528_s25 + $0x108] sm:$0xff]  ;;  %vm861_vm5 = vcmp.gt.f32.partialorder %v3668_v11, 20.0 }
  0x5b   : > { %3322 = vpow2.f32 %v464_v50  ;;  %v468_v8 = vmul.f32 1.442695, %v3970_v44  ;;  %v470_v17 = vmul.f32 1.442695, %v3973_v47  ;;  %v4004_v2 = vadd.f32 %v3533_v4, %v328_v12 }
  0x5c   : > { %v3305_v51 = vpop.eup %3304  ;;  %3324 = vpow2.f32 %v466_v52  ;;  %v472_v10 = vmul.f32 1.442695, %v3977_v56  ;;  %vm862_vm7 = vcmp.gt.f32.partialorder %v3899_v27, 20.0  ;;  %vm863_vm8 = vcmp.gt.f32.partialorder %v3919_v32, 20.0 }
  0x5d   : > { %v3307_v26 = vpop.eup %3306  ;;  %v752_v58 = vmul.f32 %v3305_v51, %v3895_v22  ;;  %3326 = vpow2.f32 %v468_v8  ;;  %vm864_vm9 = vcmp.gt.f32.partialorder %v3922_v49, 20.0  ;;  %vm865_vm10 = vcmp.gt.f32.partialorder %v3925_v34, 20.0 }
  0x5e   : > { %v538_v1 = vadd.f32 2.0, %v3307_v26  ;;  %v3309_v9 = vpop.eup %3308  ;;  %3328 = vpow2.f32 %v470_v17  ;;  %vm866_vm11 = vcmp.gt.f32.partialorder %v3939_v57, 20.0  ;;  %vm867_vm12 = vcmp.gt.f32.partialorder %v3942_v62, 20.0 }
  0x5f   : > { %v806_v36 = vmul.f32 %v752_v58, %v3645_v39  ;;  %v3311_v37 = vpop.eup %3310  ;;  %v539_v22 = vadd.f32 2.0, %v3309_v9  ;;  %3330 = vpow2.f32 %v472_v10  ;;  %vm868_vm13 = vcmp.gt.f32.partialorder %v3945_v5, 20.0 }
  0x60   : > { %v3986_v30 = vmul.f32 %v3307_v26, %v538_v1  ;;  %v3313_v33 = vpop.eup %3312  ;;  %v540_v51 = vadd.f32 2.0, %v3311_v37  ;;  %vm869_vm14 = vcmp.gt.f32.partialorder %v3959_v14, 20.0  ;;  %vm870_vm15 = vcmp.gt.f32.partialorder %v3965_v21, 20.0 }
  0x61   : > { %v914_v50 = vsel %vm860_vm3, %v3645_v39, %v806_v36  ;;  %v3315_v52 = vpop.eup %3314  ;;  %v3999_v8 = vmul.f32 %v3309_v9, %v539_v22  ;;  %v541_v59 = vadd.f32 2.0, %v3313_v33  ;;  %v329_v39 = vmul.f32 %v3523_v3, %v267_v29 }
  0x62   : > { %v3996_v58 = vsel %vm1027_vm4, %v914_v50, 0.0  ;;  %v646_v26 = vadd.f32 2.0, %v3986_v30  ;;  %v3317_v1 = vpop.eup %3316  ;;  %v4001_v17 = vmul.f32 %v3311_v37, %v540_v51  ;;  %v542_v0 = vadd.f32 2.0, %v3315_v52  ;;  %v268_v51 = vld [vmem:[%s3528_s25 + $0x110] sm:$0xff] }
  0x63   : > { %6202 = vst [vmem:[#allocation21_spill] sm:$0xff] %v3996_v58  ;;  %v3319_v10 = vpop.eup %3318  ;;  %v647_v36 = vadd.f32 2.0, %v3999_v8  ;;  %v4008_v50 = vmul.f32 %v3313_v33, %v541_v59  ;;  %v543_v20 = vadd.f32 2.0, %v3317_v1  ;;  %v1382_v9 = vrot.slane %v3996_v58, 1 }
  0x64   : > { %3332 = vrcp.f32 %v646_v26  ;;  %v648_v22 = vadd.f32 2.0, %v4001_v17  ;;  %v4012_v24 = vmul.f32 %v3315_v52, %v542_v0  ;;  %v544_v37 = vadd.f32 2.0, %v3319_v10  ;;  %v3321_v16 = vpop.eup %3320 }
  0x65   : > { %3334 = vrcp.f32 %v647_v36  ;;  %v649_v12 = vadd.f32 2.0, %v4008_v50  ;;  %v4016_v29 = vmul.f32 %v3317_v1, %v543_v20  ;;  %v474_v26 = vmul.f32 1.442695, %v4004_v2  ;;  %v3323_v40 = vpop.eup %3322 }
  0x66   : > { %v753_v33 = vmul.f32 %v3321_v16, %v3955_v19  ;;  %3336 = vrcp.f32 %v648_v22  ;;  %v650_v59 = vadd.f32 2.0, %v4012_v24  ;;  %v4021_v6 = vmul.f32 %v3319_v10, %v544_v37  ;;  %v3325_v0 = vpop.eup %3324 }
  0x67   : > { %3338 = vrcp.f32 %v649_v12  ;;  %v651_v52 = vadd.f32 2.0, %v4016_v29  ;;  %v545_v36 = vadd.f32 2.0, %v3323_v40  ;;  %v330_v20 = vmul.f32 %v3523_v3, %v268_v51  ;;  %v3327_v1 = vpop.eup %3326 }
  0x68   : > { %v807_v60 = vmul.f32 %v753_v33, %v3668_v11  ;;  %3340 = vrcp.f32 %v650_v59  ;;  %v652_v16 = vadd.f32 2.0, %v4021_v6  ;;  %v546_v19 = vadd.f32 2.0, %v3325_v0  ;;  %v3329_v22 = vpop.eup %3328 }
  0x69   : > { %3342 = vrcp.f32 %v651_v52  ;;  %v4029_v10 = vmul.f32 %v3323_v40, %v545_v36  ;;  %v547_v37 = vadd.f32 2.0, %v3327_v1  ;;  %v4032_v12 = vadd.f32 %v3533_v4, %v329_v39  ;;  %v3331_v13 = vpop.eup %3330 }
  0x6a   : > { %v4037_v51 = vsel %vm861_vm5, %v3668_v11, %v807_v60  ;;  %3344 = vrcp.f32 %v652_v16  ;;  %v4040_v33 = vmul.f32 %v3325_v0, %v546_v19  ;;  %v548_v59 = vadd.f32 2.0, %v3329_v22 }
  0x6b   : > { %v6068_v52 = vrot.slane %v4037_v51, 1  ;;  %v653_v40 = vadd.f32 2.0, %v4029_v10  ;;  %v4045_v39 = vmul.f32 %v3327_v1, %v547_v37  ;;  %v549_v36 = vadd.f32 2.0, %v3331_v13 }
  0x6c   : > { %v654_v11 = vadd.f32 2.0, %v4040_v33  ;;  %v4049_v60 = vmul.f32 %v3329_v22, %v548_v59  ;;  %3346 = vpow2.f32 %v474_v26  ;;  %v4052_v0 = vadd.f32 %v3533_v4, %v330_v20  ;;  %v269_v20 = vld [vmem:[%s3528_s25 + $0x118] sm:$0x3]  ;;  %v270_v59 = vld [vmem:[%s3528_s25 + $0x120] sm:$0xff] }
  0x6d   : > { %v4057_v19 = vsel %vm1351_vm6, %v1382_v9, %v6068_v52  ;;  %3348 = vrcp.f32 %v653_v40  ;;  %v655_v1 = vadd.f32 2.0, %v4045_v39  ;;  %v4060_v37 = vmul.f32 %v3331_v13, %v549_v36 }
  0x6e   : > { %v3333_v16 = vpop.eup %3332  ;;  %6203 = vst [vmem:[#allocation22_spill] sm:$0xff] %v4057_v19  ;;  %1456 = vrot.lane.b32.xlu1 %v4057_v19, %s3461_s20  ;;  %3350 = vrcp.f32 %v654_v11  ;;  %v656_v4 = vadd.f32 2.0, %v4049_v60  ;;  %v476_v26 = vmul.f32 1.442695, %v4032_v12  ;;  %v478_v13 = vmul.f32 1.442695, %v4052_v0 }
  0x6f   : > { %v754_v22 = vmul.f32 %v3333_v16, %v3986_v30  ;;  %v3335_v23 = vpop.eup %3334  ;;  %3352 = vrcp.f32 %v655_v1  ;;  %v657_v9 = vadd.f32 2.0, %v4060_v37  ;;  %v4078_v1 = vmul.f32 %v3523_v3, %v269_v20 }
  0x70   : > { %v3337_v40 = vpop.eup %3336  ;;  %v755_v30 = vmul.f32 %v3335_v23, %v3999_v8  ;;  %3354 = vrcp.f32 %v656_v4  ;;  %v4081_v52 = vmul.f32 %v3523_v3, %v270_v59  ;;  %vm871_vm0 = vcmp.gt.f32.partialorder %v3970_v44, 20.0 }
  0x71   : > { %v808_v36 = vmul.f32 %v754_v22, %v3899_v27  ;;  %v3339_v11 = vpop.eup %3338  ;;  %v756_v16 = vmul.f32 %v3337_v40, %v4001_v17  ;;  %3356 = vrcp.f32 %v657_v9  ;;  %vm872_vm1 = vcmp.gt.f32.partialorder %v3973_v47, 20.0 }
  0x72   : > { %v3341_v19 = vpop.eup %3340  ;;  %v809_v8 = vmul.f32 %v755_v30, %v3919_v32  ;;  %v757_v22 = vmul.f32 %v3339_v11, %v4008_v50  ;;  %3358 = vpow2.f32 %v476_v26  ;;  %vm873_vm3 = vcmp.gt.f32.partialorder %v3977_v56, 20.0 }
  0x73   : > { %v916_v23 = vsel %vm862_vm7, %v3899_v27, %v808_v36  ;;  %v3343_v17 = vpop.eup %3342  ;;  %v810_v3 = vmul.f32 %v756_v16, %v3922_v49  ;;  %v758_v20 = vmul.f32 %v3341_v19, %v4012_v24  ;;  %3360 = vpow2.f32 %v478_v13 }
  0x74   : > { %v4091_v4 = vsel %vm1086_vm2, %v916_v23, 0.0  ;;  %v3345_v59 = vpop.eup %3344  ;;  %v917_v50 = vsel %vm863_vm8, %v3919_v32, %v809_v8  ;;  %v811_v9 = vmul.f32 %v757_v22, %v3925_v34  ;;  %v759_v26 = vmul.f32 %v3343_v17, %v4016_v29 }
  0x75   : > { %v1385_v27 = vrot.slane %v4091_v4, 1  ;;  %v4105_v40 = vsel %vm864_vm9, %v3922_v49, %v810_v3  ;;  %v4109_v24 = vsel %vm1027_vm4, %v917_v50, 0.0  ;;  %v812_v19 = vmul.f32 %v758_v20, %v3939_v57 }
  0x76   : > { %6204 = vst [vmem:[#allocation23_spill] sm:$0xff] %v4105_v40  ;;  %6205 = vst [vmem:[#allocation24_spill] sm:$0xff] %v4109_v24  ;;  %v760_v13 = vmul.f32 %v3345_v59, %v4021_v6  ;;  %v3347_v32 = vpop.eup %3346  ;;  %v6206_v29 = vrot.slane %v4037_v51, 1  ;;  %v1387_v49 = vrot.slane %v4109_v24, 1  ;;  %v1388_v30 = vrot.slane %v4105_v40, 1 }
  0x77   : > { %v919_v11 = vsel %vm865_vm10, %v3925_v34, %v811_v9  ;;  %v3349_v16 = vpop.eup %3348  ;;  %v813_v23 = vmul.f32 %v759_v26, %v3942_v62  ;;  %v920_v8 = vsel %vm866_vm11, %v3939_v57, %v812_v19  ;;  %vm874_vm5 = vcmp.gt.f32.partialorder %v4004_v2, 20.0 }
  0x78   : > { %v4118_v36 = vsel %vm1351_vm6, %v6206_v29, %v1385_v27  ;;  %v4129_v6 = vsel %vm1086_vm2, %v919_v11, 0.0  ;;  %v814_v22 = vmul.f32 %v760_v13, %v3945_v5  ;;  %v3351_v17 = vpop.eup %3350  ;;  %v4137_v3 = vsel %vm1351_vm6, %v1387_v49, %v1388_v30 }
  0x79   : > { %6207 = vst [vmem:[#allocation25_spill] sm:$0xff] %v4118_v36  ;;  %1458 = vrot.lane.b32.xlu0 %v4118_v36, %s3461_s20  ;;  %6208 = vst [vmem:[#allocation26_spill] sm:$0xff] %v4137_v3  ;;  %v1390_v34 = vrot.slane %v4129_v6, 1  ;;  %v4142_v20 = vsel %vm1027_vm4, %v920_v8, 0.0  ;;  %v761_v59 = vmul.f32 %v3349_v16, %v4029_v10  ;;  %v3353_v27 = vpop.eup %3352  ;;  %1460 = vrot.lane.b32.xlu1 %v4137_v3, %s3461_s20  ;;  %v278_v36 = vld [vmem:[%s3528_s25 + $0x160] sm:$0x3] }
  0x7a   : > { %6209 = vst [vmem:[#allocation27_spill] sm:$0xff] %v4142_v20  ;;  %v4150_v57 = vsel %vm867_vm12, %v3942_v62, %v813_v23  ;;  %v1392_v50 = vrot.slane %v4142_v20, 1  ;;  %v922_v9 = vsel %vm868_vm13, %v3945_v5, %v814_v22  ;;  %v762_v26 = vmul.f32 %v3351_v17, %v4040_v33  ;;  %v3355_v19 = vpop.eup %3354 }
  0x7b   : > { %v4158_v10 = vsel %vm1351_vm6, %v1388_v30, %v1390_v34  ;;  %v1393_v13 = vrot.slane %v4150_v57, 1  ;;  %v4163_v29 = vsel %vm1086_vm2, %v922_v9, 0.0  ;;  %v815_v62 = vmul.f32 %v761_v59, %v3959_v14  ;;  %v3357_v49 = vpop.eup %3356 }
  0x7c   : > { %6210 = vst [vmem:[#allocation28_spill] sm:$0xff] %v4158_v10  ;;  %v1395_v5 = vrot.slane %v4163_v29, 1  ;;  %v816_v33 = vmul.f32 %v762_v26, %v3965_v21  ;;  %v763_v11 = vmul.f32 %v3353_v27, %v4045_v39  ;;  %v764_v30 = vmul.f32 %v3355_v19, %v4049_v60  ;;  %v3359_v16 = vpop.eup %3358 }
  0x7d   : > { %1462 = vrot.lane.b32.xlu0 %v4158_v10, %s3461_s20  ;;  %v4173_v23 = vsel %vm1351_vm6, %v1392_v50, %v1393_v13  ;;  %v923_v8 = vsel %vm869_vm14, %v3959_v14, %v815_v62  ;;  %v765_v22 = vmul.f32 %v3357_v49, %v4060_v37  ;;  %v550_v17 = vadd.f32 2.0, %v3347_v32  ;;  %v3361_v34 = vpop.eup %3360 }
  0x7e   : > { %6211 = vst [vmem:[#allocation29_spill] sm:$0xff] %v4173_v23  ;;  %1464 = vrot.lane.b32.xlu1 %v4173_v23, %s3461_s20  ;;  %v4182_v59 = vsel %vm1351_vm6, %v1393_v13, %v1395_v5  ;;  %v4187_v39 = vsel %vm870_vm15, %v3965_v21, %v816_v33  ;;  %v4191_v60 = vsel %vm1027_vm4, %v923_v8, 0.0  ;;  %v817_v14 = vmul.f32 %v763_v11, %v3970_v44  ;;  %v277_v23 = vld [vmem:[%s3528_s25 + $0x158] sm:$0xff] }
  0x7f   : > { %6212 = vst [vmem:[#allocation30_spill] sm:$0xff] %v4182_v59  ;;  %6213 = vst [vmem:[#allocation31_spill] sm:$0xff] %v4187_v39  ;;  %v1397_v37 = vrot.slane %v4191_v60, 1  ;;  %v1398_v27 = vrot.slane %v4187_v39, 1  ;;  %v818_v50 = vmul.f32 %v764_v30, %v3973_v47  ;;  %v819_v9 = vmul.f32 %v765_v22, %v3977_v56 }
  0x80   : > { %6214 = vst [vmem:[#allocation32_spill] sm:$0xff] %v4191_v60  ;;  %v925_v21 = vsel %vm871_vm0, %v3970_v44, %v817_v14  ;;  %v4203_v26 = vmul.f32 %v3347_v32, %v550_v17  ;;  %v551_v19 = vadd.f32 2.0, %v3359_v16  ;;  %v552_v13 = vadd.f32 2.0, %v3361_v34  ;;  %v271_v44 = vld [vmem:[%s3528_s25 + $0x128] sm:$0xff]  ;;  %v4238_v17 = vld [vmem:[%s6047_s2] ss:$0 sm:$0xff] }
  0x81   : > { %1466 = vrot.lane.b32.xlu0 %v4182_v59, %s3461_s20  ;;  %v4206_v62 = vsel %vm1351_vm6, %v1397_v37, %v1398_v27  ;;  %v4210_v49 = vsel %vm1086_vm2, %v925_v21, 0.0  ;;  %v926_v5 = vsel %vm872_vm1, %v3973_v47, %v818_v50  ;;  %v4218_v33 = vsel %vm873_vm3, %v3977_v56, %v819_v9  ;;  %6219 = vst [vmem:[#allocation37_spill] sm:$0xff] %v4238_v17  ;;  %v272_v9 = vld [vmem:[%s3528_s25 + $0x130] sm:$0x3]  ;;  %v273_v21 = vld [vmem:[%s3528_s25 + $0x138] sm:$0xff] }
  0x82   : > { %6215 = vst [vmem:[#allocation33_spill] sm:$0xff] %v4206_v62  ;;  %6216 = vst [vmem:[#allocation34_spill] sm:$0xff] %v4210_v49  ;;  %1468 = vrot.lane.b32.xlu1 %v4206_v62, %s3461_s20  ;;  %v1400_v32 = vrot.slane %v4210_v49, 1  ;;  %v4226_v11 = vsel %vm1027_vm4, %v926_v5, 0.0  ;;  %v6071_v47 = vrot.slane %v4218_v33, 1  ;;  %v658_v30 = vadd.f32 2.0, %v4203_v26 }
  0x83   : > { %6217 = vst [vmem:[#allocation35_spill] sm:$0xff] %v4218_v33  ;;  %6218 = vst [vmem:[#allocation36_spill] sm:$0xff] %v4226_v11  ;;  %v1402_v56 = vrot.slane %v4226_v11, 1  ;;  %v4231_v8 = vmul.f32 %v3359_v16, %v551_v19  ;;  %v4233_v22 = vmul.f32 %v3361_v34, %v552_v13  ;;  %v4242_v14 = vadd.f32 %v4238_v17, %v4078_v1  ;;  %v4250_v16 = vld [vmem:[%s6046_s1] ss:$0 sm:$0xff]  ;;  %v276_v59 = vld [vmem:[%s3528_s25 + $0x150] sm:$0xff] }
  0x84   : > { %v4245_v37 = vsel %vm1351_vm6, %v1398_v27, %v1400_v32  ;;  %3362 = vrcp.f32 %v658_v30  ;;  %6221 = vst [vmem:[#allocation39_spill] sm:$0xff] %v4250_v16  ;;  %v333_v34 = vmul.f32 %v4250_v16, %v271_v44  ;;  %v4255_v50 = vadd.f32 %v4238_v17, %v4081_v52  ;;  %v274_v1 = vld [vmem:[%s3528_s25 + $0x140] sm:$0xff]  ;;  %v275_v5 = vld [vmem:[%s3528_s25 + $0x148] sm:$0x3] }
  0x85   : > { %6220 = vst [vmem:[#allocation38_spill] sm:$0xff] %v4245_v37  ;;  %1470 = vrot.lane.b32.xlu0 %v4245_v37, %s3461_s20  ;;  %v4265_v27 = vsel %vm1351_vm6, %v1402_v56, %v6071_v47  ;;  %v659_v19 = vadd.f32 2.0, %v4231_v8  ;;  %v660_v13 = vadd.f32 2.0, %v4233_v22  ;;  %v480_v52 = vmul.f32 1.442695, %v4242_v14 }
  0x86   : > { %6222 = vst [vmem:[#allocation40_spill] sm:$0xff] %v4265_v27  ;;  %1472 = vrot.lane.b32.xlu1 %v4265_v27, %s3461_s20  ;;  %v4274_v44 = vadd.f32 %v4238_v17, %v333_v34  ;;  %v482_v32 = vmul.f32 1.442695, %v4255_v50  ;;  %v334_v30 = vmul.f32 %v4250_v16, %v272_v9  ;;  %v335_v56 = vmul.f32 %v4250_v16, %v273_v21 }
  0x87   : > { %3364 = vrcp.f32 %v659_v19  ;;  %v336_v47 = vmul.f32 %v4250_v16, %v274_v1  ;;  %v337_v34 = vmul.f32 %v4250_v16, %v275_v5  ;;  %v338_v19 = vmul.f32 %v4250_v16, %v276_v59 }
  0x88   : > { %3366 = vrcp.f32 %v660_v13  ;;  %v484_v10 = vmul.f32 1.442695, %v4274_v44  ;;  %v4285_v3 = vadd.f32 %v4238_v17, %v334_v30  ;;  %v4288_v9 = vadd.f32 %v4238_v17, %v335_v56  ;;  %v279_v30 = vld [vmem:[%s3528_s25 + $0x168] sm:$0xff]  ;;  %v280_v56 = vld [vmem:[%s3528_s25 + $0x170] sm:$0xff] }
  0x89   : > { %3368 = vpow2.f32 %v480_v52  ;;  %v4291_v21 = vadd.f32 %v4238_v17, %v336_v47  ;;  %v4294_v1 = vadd.f32 %v4238_v17, %v337_v34  ;;  %v339_v13 = vmul.f32 %v4250_v16, %v277_v23 }
  0x8a   : > { %3370 = vpow2.f32 %v482_v32  ;;  %v486_v52 = vmul.f32 1.442695, %v4285_v3  ;;  %v488_v5 = vmul.f32 1.442695, %v4288_v9  ;;  %v4306_v32 = vadd.f32 %v4238_v17, %v338_v19 }
  0x8b   : > { %3372 = vpow2.f32 %v484_v10  ;;  %v490_v27 = vmul.f32 1.442695, %v4291_v21  ;;  %v492_v47 = vmul.f32 1.442695, %v4294_v1  ;;  %v4309_v59 = vadd.f32 %v4238_v17, %v339_v13 }
  0x8c   : > { %3374 = vpow2.f32 %v486_v52  ;;  %v340_v10 = vmul.f32 %v4250_v16, %v278_v36  ;;  %v341_v34 = vmul.f32 %v4250_v16, %v279_v30  ;;  %v342_v62 = vmul.f32 %v4250_v16, %v280_v56 }
  0x8d   : > { %3376 = vpow2.f32 %v488_v5  ;;  %v494_v28 = vmul.f32 1.442695, %v4306_v32  ;;  %v496_v52 = vmul.f32 1.442695, %v4309_v59  ;;  %vm875_vm7 = vcmp.gt.f32.partialorder %v4032_v12, 20.0 }
  0x8e   : > { %v3363_v23 = vpop.eup %3362  ;;  %3378 = vpow2.f32 %v490_v27  ;;  %v4320_v19 = vadd.f32 %v4238_v17, %v340_v10  ;;  %v4324_v5 = vadd.f32 %v4238_v17, %v341_v34  ;;  %vm876_vm8 = vcmp.gt.f32.partialorder %v4052_v0, 20.0 }
  0x8f   : > { %v766_v37 = vmul.f32 %v3363_v23, %v4203_v26  ;;  %3380 = vpow2.f32 %v492_v47  ;;  %v4327_v26 = vadd.f32 %v4238_v17, %v342_v62  ;;  %vm877_vm9 = vcmp.gt.f32.partialorder %v4242_v14, 20.0 }
  0x90   : > { %3382 = vpow2.f32 %v494_v28  ;;  %v498_v56 = vmul.f32 1.442695, %v4320_v19  ;;  %v500_v28 = vmul.f32 1.442695, %v4324_v5  ;;  %vm878_vm10 = vcmp.gt.f32.partialorder %v4255_v50, 20.0 }
  0x91   : > { %v3365_v36 = vpop.eup %3364  ;;  %v820_v13 = vmul.f32 %v766_v37, %v4004_v2  ;;  %3384 = vpow2.f32 %v496_v52  ;;  %v502_v10 = vmul.f32 1.442695, %v4327_v26  ;;  %vm879_vm11 = vcmp.gt.f32.partialorder %v4274_v44, 20.0 }
  0x92   : > { %v3367_v27 = vpop.eup %3366  ;;  %v767_v30 = vmul.f32 %v3365_v36, %v4231_v8  ;;  %3386 = vpow2.f32 %v498_v56  ;;  %vm880_vm12 = vcmp.gt.f32.partialorder %v4285_v3, 20.0  ;;  %vm881_vm13 = vcmp.gt.f32.partialorder %v4288_v9, 20.0 }
  0x93   : > { %v3369_v47 = vpop.eup %3368  ;;  %v928_v23 = vsel %vm874_vm5, %v4004_v2, %v820_v13  ;;  %v768_v37 = vmul.f32 %v3367_v27, %v4233_v22  ;;  %3388 = vpow2.f32 %v500_v28  ;;  %vm882_vm14 = vcmp.gt.f32.partialorder %v4291_v21, 20.0 }
  0x94   : > { %v3371_v34 = vpop.eup %3370  ;;  %v4338_v62 = vsel %vm1086_vm2, %v928_v23, 0.0  ;;  %v821_v8 = vmul.f32 %v767_v30, %v4032_v12  ;;  %v553_v36 = vadd.f32 2.0, %v3369_v47  ;;  %3390 = vpow2.f32 %v502_v10 }
  0x95   : > { %6223 = vst [vmem:[#allocation41_spill] sm:$0xff] %v4338_v62  ;;  %v3373_v52 = vpop.eup %3372  ;;  %v1405_v54 = vrot.slane %v4338_v62, 1  ;;  %v822_v2 = vmul.f32 %v768_v37, %v4052_v0  ;;  %v554_v13 = vadd.f32 2.0, %v3371_v34  ;;  %v6224_v30 = vrot.slane %v4218_v33, 1  ;;  %v281_v33 = vld [vmem:[%s3528_s25 + $0x178] sm:$0x3] }
  0x96   : > { %v929_v22 = vsel %vm875_vm7, %v4032_v12, %v821_v8  ;;  %v4346_v27 = vmul.f32 %v3369_v47, %v553_v36  ;;  %v555_v11 = vadd.f32 2.0, %v3373_v52  ;;  %v3375_v23 = vpop.eup %3374  ;;  %vm883_vm15 = vcmp.gt.f32.partialorder %v4294_v1, 20.0 }
  0x97   : > { %v4351_v56 = vsel %vm1351_vm6, %v6224_v30, %v1405_v54  ;;  %v4356_v37 = vsel %vm876_vm8, %v4052_v0, %v822_v2  ;;  %v4360_v28 = vsel %vm1027_vm4, %v929_v22, 0.0  ;;  %v4362_v12 = vmul.f32 %v3371_v34, %v554_v13  ;;  %v3377_v47 = vpop.eup %3376 }
  0x98   : > { %6225 = vst [vmem:[#allocation42_spill] sm:$0xff] %v4351_v56  ;;  %6226 = vst [vmem:[#allocation43_spill] sm:$0xff] %v4356_v37  ;;  %1474 = vrot.lane.b32.xlu0 %v4351_v56, %s3461_s20  ;;  %v1407_v10 = vrot.slane %v4360_v28, 1  ;;  %v6106_v54 = vrot.slane %v4356_v37, 1  ;;  %v661_v8 = vadd.f32 2.0, %v4346_v27  ;;  %v4369_v36 = vmul.f32 %v3373_v52, %v555_v11  ;;  %v3379_v0 = vpop.eup %3378 }
  0x99   : > { %6227 = vst [vmem:[#allocation44_spill] sm:$0xff] %v4360_v28  ;;  %v662_v2 = vadd.f32 2.0, %v4362_v12  ;;  %v556_v22 = vadd.f32 2.0, %v3375_v23  ;;  %v557_v30 = vadd.f32 2.0, %v3377_v47  ;;  %v3381_v34 = vpop.eup %3380  ;;  %v558_v28 = vadd.f32 2.0, %v3379_v0 }
  0x9a   : > { %v4375_v13 = vsel %vm1351_vm6, %v1407_v10, %v6106_v54  ;;  %3392 = vrcp.f32 %v661_v8  ;;  %v663_v56 = vadd.f32 2.0, %v4369_v36  ;;  %v3383_v60 = vpop.eup %3382  ;;  %v559_v20 = vadd.f32 2.0, %v3381_v34 }
  0x9b   : > { %6228 = vst [vmem:[#allocation45_spill] sm:$0xff] %v4375_v13  ;;  %1476 = vrot.lane.b32.xlu1 %v4375_v13, %s3461_s20  ;;  %3394 = vrcp.f32 %v662_v2  ;;  %v4380_v11 = vmul.f32 %v3375_v23, %v556_v22  ;;  %v4382_v52 = vmul.f32 %v3377_v47, %v557_v30  ;;  %v3385_v24 = vpop.eup %3384  ;;  %v4385_v62 = vmul.f32 %v3379_v0, %v558_v28 }
  0x9c   : > { %3396 = vrcp.f32 %v663_v56  ;;  %v560_v10 = vadd.f32 2.0, %v3383_v60  ;;  %v4389_v39 = vmul.f32 %v3381_v34, %v559_v20  ;;  %v561_v58 = vadd.f32 2.0, %v3385_v24  ;;  %v3387_v13 = vpop.eup %3386  ;;  %v6252_v7 = vld [vmem:[#allocation41_spill] sm:$0xff] }
  0x9d   : > { %v664_v8 = vadd.f32 2.0, %v4380_v11  ;;  %v665_v54 = vadd.f32 2.0, %v4382_v52  ;;  %v666_v23 = vadd.f32 2.0, %v4385_v62  ;;  %v343_v47 = vmul.f32 %v4250_v16, %v281_v33  ;;  %v3389_v22 = vpop.eup %3388 }
  0x9e   : > { %v4392_v2 = vmul.f32 %v3383_v60, %v560_v10  ;;  %v667_v56 = vadd.f32 2.0, %v4389_v39  ;;  %v4396_v28 = vmul.f32 %v3385_v24, %v561_v58  ;;  %v562_v0 = vadd.f32 2.0, %v3387_v13  ;;  %v3391_v30 = vpop.eup %3390 }
  0x9f   : > { %3398 = vrcp.f32 %v664_v8  ;;  %v563_v34 = vadd.f32 2.0, %v3389_v22  ;;  %v4400_v49 = vadd.f32 %v4238_v17, %v343_v47  ;;  %v564_v33 = vadd.f32 2.0, %v3391_v30 }
  0xa0   : > { %3400 = vrcp.f32 %v665_v54  ;;  %v668_v20 = vadd.f32 2.0, %v4392_v2  ;;  %v669_v60 = vadd.f32 2.0, %v4396_v28  ;;  %v4403_v10 = vmul.f32 %v3387_v13, %v562_v0 }
  0xa1   : > { %3402 = vrcp.f32 %v666_v23  ;;  %v4405_v8 = vmul.f32 %v3389_v22, %v563_v34  ;;  %v4408_v24 = vmul.f32 %v3391_v30, %v564_v33  ;;  %v504_v47 = vmul.f32 1.442695, %v4400_v49 }
  0xa2   : > { %3404 = vrcp.f32 %v667_v56  ;;  %v670_v58 = vadd.f32 2.0, %v4403_v10  ;;  %vm884_vm0 = vcmp.gt.f32.partialorder %v4306_v32, 20.0  ;;  %vm885_vm1 = vcmp.gt.f32.partialorder %v4309_v59, 20.0 }
  0xa3   : > { %3406 = vrcp.f32 %v668_v20  ;;  %v671_v16 = vadd.f32 2.0, %v4405_v8  ;;  %v672_v13 = vadd.f32 2.0, %v4408_v24  ;;  %vm886_vm3 = vcmp.gt.f32.partialorder %v4320_v19, 20.0 }
  0xa4   : > { %v3393_v54 = vpop.eup %3392  ;;  %3408 = vrcp.f32 %v669_v60  ;;  %vm887_vm5 = vcmp.gt.f32.partialorder %v4324_v5, 20.0  ;;  %vm888_vm7 = vcmp.gt.f32.partialorder %v4327_v26, 20.0  ;;  %vm1528_vm8 = vcmask 1045504  }
  0xa5   : > { %v3395_v23 = vpop.eup %3394  ;;  %v769_v17 = vmul.f32 %v3393_v54, %v4346_v27  ;;  %3410 = vrcp.f32 %v670_v58 }
  0xa6   : > { %v3397_v22 = vpop.eup %3396  ;;  %v770_v56 = vmul.f32 %v3395_v23, %v4362_v12  ;;  %3412 = vrcp.f32 %v671_v16 }
  0xa7   : > { %v823_v0 = vmul.f32 %v769_v17, %v4242_v14  ;;  %v771_v30 = vmul.f32 %v3397_v22, %v4369_v36  ;;  %3414 = vrcp.f32 %v672_v13 }
  0xa8   : > { %v824_v27 = vmul.f32 %v770_v56, %v4255_v50  ;;  %3416 = vpow2.f32 %v504_v47 }
  0xa9   : > { %v3399_v12 = vpop.eup %3398  ;;  %v931_v20 = vsel %vm877_vm9, %v4242_v14, %v823_v0  ;;  %v825_v16 = vmul.f32 %v771_v30, %v4274_v44  ;;  %v6231_v0 = vrot.slane %v4356_v37, 1  ;;  %vm889_vm9 = vcmp.gt.f32.partialorder %v4400_v49, 20.0 }
  0xaa   : > { %v3401_v17 = vpop.eup %3400  ;;  %v4432_v36 = vsel %vm1086_vm2, %v931_v20, 0.0  ;;  %v932_v34 = vsel %vm878_vm10, %v4255_v50, %v824_v27  ;;  %v772_v60 = vmul.f32 %v3399_v12, %v4380_v11 }
  0xab   : > { %v3403_v14 = vpop.eup %3402  ;;  %v1410_v33 = vrot.slane %v4432_v36, 1  ;;  %v4443_v58 = vsel %vm879_vm11, %v4274_v44, %v825_v16  ;;  %v4447_v54 = vsel %vm1027_vm4, %v932_v34, 0.0  ;;  %v773_v47 = vmul.f32 %v3401_v17, %v4382_v52 }
  0xac   : > { %6229 = vst [vmem:[#allocation46_spill] sm:$0xff] %v4443_v58  ;;  %6230 = vst [vmem:[#allocation47_spill] sm:$0xff] %v4447_v54  ;;  %v3405_v23 = vpop.eup %3404  ;;  %v1412_v50 = vrot.slane %v4447_v54, 1  ;;  %v1413_v11 = vrot.slane %v4443_v58, 1  ;;  %v826_v13 = vmul.f32 %v772_v60, %v4285_v3  ;;  %v774_v22 = vmul.f32 %v3403_v14, %v4385_v62 }
  0xad   : > { %v3407_v56 = vpop.eup %3406  ;;  %v4457_v44 = vsel %vm1351_vm6, %v6231_v0, %v1410_v33  ;;  %v827_v30 = vmul.f32 %v773_v47, %v4288_v9  ;;  %v775_v27 = vmul.f32 %v3405_v23, %v4389_v39 }
  0xae   : > { %v3409_v52 = vpop.eup %3408  ;;  %1478 = vrot.lane.b32.xlu0 %v4457_v44, %s3461_s20  ;;  %v4465_v12 = vsel %vm1351_vm6, %v1412_v50, %v1413_v11  ;;  %v934_v62 = vsel %vm880_vm12, %v4285_v3, %v826_v13  ;;  %v828_v20 = vmul.f32 %v774_v22, %v4291_v21  ;;  %v776_v16 = vmul.f32 %v3407_v56, %v4392_v2 }
  0xaf   : > { %v3411_v17 = vpop.eup %3410  ;;  %1480 = vrot.lane.b32.xlu1 %v4465_v12, %s3461_s20  ;;  %v4476_v39 = vsel %vm1086_vm2, %v934_v62, 0.0  ;;  %v935_v34 = vsel %vm881_vm13, %v4288_v9, %v827_v30  ;;  %v829_v60 = vmul.f32 %v775_v27, %v4294_v1  ;;  %v777_v3 = vmul.f32 %v3409_v52, %v4396_v28 }
  0xb0   : > { %v3413_v14 = vpop.eup %3412  ;;  %v1415_v33 = vrot.slane %v4476_v39, 1  ;;  %v4487_v2 = vsel %vm882_vm14, %v4291_v21, %v828_v20  ;;  %v4491_v47 = vsel %vm1027_vm4, %v935_v34, 0.0  ;;  %v830_v23 = vmul.f32 %v776_v16, %v4306_v32 }
  0xb1   : > { %6232 = vst [vmem:[#allocation48_spill] sm:$0xff] %v4487_v2  ;;  %6233 = vst [vmem:[#allocation49_spill] sm:$0xff] %v4491_v47  ;;  %v3415_v50 = vpop.eup %3414  ;;  %v1417_v9 = vrot.slane %v4491_v47, 1  ;;  %v1418_v13 = vrot.slane %v4487_v2, 1  ;;  %v937_v28 = vsel %vm883_vm15, %v4294_v1, %v829_v60  ;;  %v831_v22 = vmul.f32 %v777_v3, %v4309_v59 }
  0xb2   : > { %v3417_v56 = vpop.eup %3416  ;;  %v4501_v21 = vsel %vm1351_vm6, %v1413_v11, %v1415_v33  ;;  %v4505_v0 = vsel %vm1086_vm2, %v937_v28, 0.0  ;;  %v938_v30 = vsel %vm884_vm0, %v4306_v32, %v830_v23  ;;  %v778_v27 = vmul.f32 %v3411_v17, %v4403_v10 }
  0xb3   : > { %1482 = vrot.lane.b32.xlu0 %v4501_v21, %s3461_s20  ;;  %v4514_v1 = vsel %vm1351_vm6, %v1417_v9, %v1418_v13  ;;  %v1420_v52 = vrot.slane %v4505_v0, 1  ;;  %v4520_v11 = vsel %vm885_vm1, %v4309_v59, %v831_v22  ;;  %v4524_v62 = vsel %vm1027_vm4, %v938_v30, 0.0 }
  0xb4   : > { %1484 = vrot.lane.b32.xlu1 %v4514_v1, %s3461_s20  ;;  %v1422_v32 = vrot.slane %v4524_v62, 1  ;;  %v1423_v10 = vrot.slane %v4520_v11, 1  ;;  %v832_v20 = vmul.f32 %v778_v27, %v4320_v19  ;;  %v779_v16 = vmul.f32 %v3413_v14, %v4405_v8 }
  0xb5   : > { %v4533_v17 = vsel %vm1351_vm6, %v1418_v13, %v1420_v52  ;;  %v780_v59 = vmul.f32 %v3415_v50, %v4408_v24  ;;  %v565_v34 = vadd.f32 2.0, %v3417_v56  ;;  %v6237_v28 = vmov 0.0  }
  0xb6   : > { %v4538_v60 = vsel %vm1351_vm6, %v1422_v32, %v1423_v10  ;;  %v940_v3 = vsel %vm886_vm3, %v4320_v19, %v832_v20  ;;  %v833_v33 = vmul.f32 %v779_v16, %v4324_v5  ;;  %v1529_v22 = vrot.slane %v6237_v28, 2 }
  0xb7   : > { %6234 = vst [vmem:[#allocation50_spill] sm:$0xff] %v4538_v60  ;;  %1486 = vrot.lane.b32.xlu0 %v4533_v17, %s3461_s20  ;;  %v4549_v8 = vsel %vm1086_vm2, %v940_v3, 0.0  ;;  %v834_v24 = vmul.f32 %v780_v59, %v4327_v26  ;;  %v619_v14 = vmul.f32 %v3417_v56, %v565_v34  ;;  %v1537_v52 = vrot.slane %v3727_v42, 2 }
  0xb8   : > { %1488 = vrot.lane.b32.xlu1 %v4538_v60, %s3461_s20  ;;  %v1425_v23 = vrot.slane %v4549_v8, 1  ;;  %v941_v19 = vsel %vm887_vm5, %v4324_v5, %v833_v33  ;;  %v1535_v32 = vrot.slane %v3712_v15, 2  ;;  %v1542_v20 = vrot.slane %v3774_v61, 2 }
  0xb9   : > { %v4557_v50 = vsel %vm888_vm7, %v4327_v26, %v834_v24  ;;  %v4561_v9 = vsel %vm1027_vm4, %v941_v19, 0.0  ;;  %v673_v13 = vadd.f32 2.0, %v619_v14  ;;  %v4576_v26 = vpack.i.bf16 %v1529_v22, %v1529_v22 }
  0xba   : > { %6235 = vst [vmem:[#allocation51_spill] sm:$0xff] %v4557_v50  ;;  %6236 = vst [vmem:[#allocation52_spill] sm:$0xff] %v4561_v9  ;;  %v4565_v30 = vsel %vm1351_vm6, %v1423_v10, %v1425_v23  ;;  %v1427_v56 = vrot.slane %v4561_v9, 1  ;;  %v1428_v27 = vrot.slane %v4557_v50, 1  ;;  %v4583_v10 = vsel %vm1528_vm8, %v1535_v32, %v1537_v52 }
  0xbb   : > { %6238 = vst [vmem:[#allocation53_spill] sm:$0xff] %v4565_v30  ;;  %1490 = vrot.lane.b32.xlu0 %v4565_v30, %s3461_s20  ;;  %3418 = vrcp.f32 %v673_v13  ;;  %6240 = vst [vmem:[#allocation55_spill] sm:$0xff] %v4576_v26  ;;  %v1540_v16 = vrot.slane %v3748_v53, 2  ;;  %v1547_v3 = vrot.slane %v3825_v43, 2  ;;  %v1545_v24 = vrot.slane %v3793_v18, 2 }
  0xbc   : > { %v4572_v5 = vsel %vm1351_vm6, %v1427_v56, %v1428_v27  ;;  %v1534_v13 = vrot.slane %v3738_v38, 2  ;;  %v1550_v22 = vrot.slane %v3833_v46, 2  ;;  %v1585_v30 = vrot.slane %v4356_v37, 2 }
  0xbd   : > { %6239 = vst [vmem:[#allocation54_spill] sm:$0xff] %v4572_v5  ;;  %1492 = vrot.lane.b32.xlu1 %v4572_v5, %s3461_s20  ;;  %v4590_v42 = vsel %vm1528_vm8, %v1540_v16, %v1542_v20  ;;  %v4600_v23 = vsel %vm1528_vm8, %v1545_v24, %v1547_v3  ;;  %v1539_v20 = vrot.slane %v3752_v45, 2  ;;  %v1560_v3 = vrot.slane %v4037_v51, 2 }
  0xbe   : > { %v4622_v52 = vsel %vm1528_vm8, %v1534_v13, %v1535_v32  ;;  %v1544_v32 = vrot.slane %v3802_v63, 2  ;;  %v1572_v13 = vrot.slane %v4163_v29, 2  ;;  %v4673_v29 = vpop.permute.xlu1 %1438  ;;  %v1590_v60 = vrot.slane %v4443_v58, 2 }
  0xbf   : > { %vm2307_vm12 = vcmask 31744   ;;  %vm2373_vm13 = vcmask 97280   ;;  %vm2340_vm14 = vcmask 64512   ;;  %vm2406_vm15 = vcmask 130048  }
  0xc0   : > { %vm2439_vm0 = vcmask 162816   ;;  %vm2472_vm1 = vcmask 195584   ;;  %vm2505_vm3 = vcmask 228352   ;;  %vm2538_vm5 = vcmask 261120  }
  0xc1   : > { %3221 = vrot.lane.b32.xlu1 %v4576_v26, %s3462_s6  ;;  %v6250_v26 = vld [vmem:[#allocation31_spill] sm:$0xff]  ;;  %vm2576_vm7 = vcmask 293888  }
  0xc2   : > { %v1575_v28 = vrot.slane %v6250_v26, 2 }
  0xc5   : > { %v3419_v59 = vpop.eup %3418  ;;  %1615 = vrot.lane.b32.xlu1 %v4583_v10, %s3462_s6 }
  0xc6   : > { %v781_v34 = vmul.f32 %v3419_v59, %v619_v14  ;;  %v1552_v14 = vrot.slane %v3849_v48, 2  ;;  %v1557_v48 = vrot.slane %v3892_v35, 2  ;;  %v1555_v59 = vrot.slane %v3870_v25, 2 }
  0xc7   : > { %v4635_v35 = vsel %vm1528_vm8, %v1539_v20, %v1540_v16  ;;  %v1549_v16 = vrot.slane %v3838_v41, 2 }
  0xc8   : > { %v835_v33 = vmul.f32 %v781_v34, %v4400_v49  ;;  %v4616_v56 = vsel %vm1528_vm8, %v1550_v22, %v1552_v14  ;;  %v1562_v34 = vrot.slane %v4091_v4, 2  ;;  %v4648_v4 = vsel %vm1528_vm8, %v1544_v32, %v1545_v24 }
  0xc9   : > { %1619 = vrot.lane.b32.xlu1 %v4590_v42, %s3462_s6  ;;  %v1565_v14 = vrot.slane %v4105_v40, 2  ;;  %v1554_v24 = vrot.slane %v3881_v31, 2 }
  0xca   : > { %v943_v61 = vsel %vm889_vm9, %v4400_v49, %v835_v33  ;;  %v4642_v33 = vsel %vm1528_vm8, %v1560_v3, %v1562_v34  ;;  %v6246_v34 = vld [vmem:[#allocation34_spill] sm:$0xff] }
  0xcb   : > { %v4605_v19 = vsel %vm1086_vm2, %v943_v61, 0.0  ;;  %6243 = vst [vmem:[#allocation58_spill] sm:$0xff] %v4642_v33  ;;  %v1567_v61 = vrot.slane %v4129_v6, 2  ;;  %v4661_v6 = vsel %vm1528_vm8, %v1549_v16, %v1550_v22  ;;  %v1577_v32 = vrot.slane %v6246_v34, 2  ;;  %6247 = vst [vmem:[#allocation34_spill] sm:$0xff] %v4673_v29 }
  0xcc   : > { %v1430_v43 = vrot.slane %v4605_v19, 1  ;;  %v4676_v22 = vsel %vm1528_vm8, %v1554_v24, %v1555_v59  ;;  %v1582_v34 = vrot.slane %v6252_v7, 2  ;;  %v1587_v7 = vrot.slane %v4432_v36, 2 }
  0xcd   : > { %1623 = vrot.lane.b32.xlu1 %v4600_v23, %s3462_s6  ;;  %6248 = vst [vmem:[#allocation61_spill] sm:$0xff] %v4676_v22  ;;  %v1592_v36 = vrot.slane %v4476_v39, 2  ;;  %v1597_v39 = vrot.slane %v4505_v0, 2  ;;  %v1602_v0 = vrot.slane %v4549_v8, 2  ;;  %v1607_v8 = vrot.slane %v4605_v19, 2 }
  0xce   : > { %v4613_v49 = vsel %vm1351_vm6, %v1428_v27, %v1430_v43  ;;  %v4629_v27 = vsel %vm1528_vm8, %v1555_v59, %v1557_v48  ;;  %v4655_v43 = vsel %vm1528_vm8, %v1565_v14, %v1567_v61  ;;  %v1570_v48 = vrot.slane %v4150_v57, 2  ;;  %v6249_v61 = vld [vmem:[#allocation21_spill] sm:$0xff]  ;;  %v6254_v59 = vld [vmem:[#allocation24_spill] sm:$0xff] }
  0xcf   : > { %6241 = vst [vmem:[#allocation56_spill] sm:$0xff] %v4613_v49  ;;  %1494 = vrot.lane.b32.xlu0 %v4613_v49, %s3461_s20  ;;  %6242 = vst [vmem:[#allocation57_spill] sm:$0xff] %v4629_v27  ;;  %v1559_v16 = vrot.slane %v6249_v61, 2  ;;  %v1564_v24 = vrot.slane %v6254_v59, 2  ;;  %v6255_v49 = vld [vmem:[#allocation35_spill] sm:$0xff] }
  0xd0   : > { %6244 = vst [vmem:[#allocation59_spill] sm:$0xff] %v4655_v43  ;;  %v4668_v20 = vsel %vm1528_vm8, %v1570_v48, %v1572_v13  ;;  %v4683_v13 = vsel %vm1528_vm8, %v1575_v28, %v1577_v32  ;;  %v1580_v5 = vrot.slane %v6255_v49, 2 }
  0xd1   : > { %1627 = vrot.lane.b32.xlu1 %v4616_v56, %s3462_s6  ;;  %6245 = vst [vmem:[#allocation60_spill] sm:$0xff] %v4668_v20  ;;  %6251 = vst [vmem:[#allocation21_spill] sm:$0xff] %v4683_v13 }
  0xd2   : > { %v4698_v32 = vsel %vm1528_vm8, %v1580_v5, %v1582_v34  ;;  %v4713_v34 = vsel %vm1528_vm8, %v1585_v30, %v1587_v7  ;;  %v4730_v7 = vsel %vm1528_vm8, %v1590_v60, %v1592_v36 }
  0xd3   : > { %1613 = vrot.lane.b32.xlu0 %v4622_v52, %s3462_s6 }
  0xd5   : > { %1631 = vrot.lane.b32.xlu1 %v4629_v27, %s3462_s6 }
  0xd7   : > { %1617 = vrot.lane.b32.xlu0 %v4635_v35, %s3462_s6 }
  0xd9   : > { %1635 = vrot.lane.b32.xlu1 %v4642_v33, %s3462_s6  ;;  %v4695_v33 = vpop.permute.xlu1 %1440 }
  0xda   : > { %6256 = vst [vmem:[#allocation62_spill] sm:$0xff] %v4695_v33 }
  0xdb   : > { %1621 = vrot.lane.b32.xlu0 %v4648_v4, %s3462_s6 }
  0xdd   : > { %1639 = vrot.lane.b32.xlu1 %v4655_v43, %s3462_s6  ;;  %v4689_v43 = vsel %vm1528_vm8, %v1559_v16, %v1560_v3  ;;  %v4706_v3 = vsel %vm1528_vm8, %v1564_v24, %v1565_v14  ;;  %v6259_v16 = vld [vmem:[#allocation27_spill] sm:$0xff]  ;;  %v4718_v33 = vpop.permute.xlu1 %1444  ;;  %v6262_v24 = vld [vmem:[#allocation32_spill] sm:$0xff] }
  0xde   : > { %6253 = vst [vmem:[#allocation41_spill] sm:$0xff] %v4689_v43  ;;  %6258 = vst [vmem:[#allocation64_spill] sm:$0xff] %v4706_v3  ;;  %v1569_v29 = vrot.slane %v6259_v16, 2 }
  0xdf   : > { %1625 = vrot.lane.b32.xlu0 %v4661_v6, %s3462_s6  ;;  %6260 = vst [vmem:[#allocation27_spill] sm:$0xff] %v4718_v33 }
  0xe0   : > { %v4721_v14 = vsel %vm1528_vm8, %v1569_v29, %v1570_v48  ;;  %v6265_v29 = vld [vmem:[#allocation36_spill] sm:$0xff] }
  0xe1   : > { %1643 = vrot.lane.b32.xlu1 %v4668_v20, %s3462_s6  ;;  %v4703_v20 = vpop.permute.xlu0 %3216  ;;  %6261 = vst [vmem:[#allocation65_spill] sm:$0xff] %v4721_v14  ;;  %v1579_v33 = vrot.slane %v6265_v29, 2 }
  0xe2   : > { %6257 = vst [vmem:[#allocation63_spill] sm:$0xff] %v4703_v20  ;;  %v1600_v20 = vrot.slane %v4520_v11, 2 }
  0xe3   : > { %1629 = vrot.lane.b32.xlu0 %v4676_v22, %s3462_s6  ;;  %v4742_v22 = vpop.permute.xlu1 %1448 }
  0xe4   : > { %6266 = vst [vmem:[#allocation67_spill] sm:$0xff] %v4742_v22 }
  0xe5   : > { %1647 = vrot.lane.b32.xlu1 %v4683_v13, %s3462_s6  ;;  %v4727_v27 = vpop.permute.xlu0 %1436 }
  0xe6   : > { %6263 = vst [vmem:[#allocation32_spill] sm:$0xff] %v4727_v27 }
  0xe7   : > { %1633 = vrot.lane.b32.xlu0 %v4689_v43, %s3462_s6  ;;  %v1574_v43 = vrot.slane %v6262_v24, 2  ;;  %v4765_v22 = vpop.permute.xlu1 %1452 }
  0xe8   : > { %6271 = vst [vmem:[#allocation70_spill] sm:$0xff] %v4765_v22  ;;  %v283_v22 = vld [vmem:[%s3528_s25 + $0x188] sm:$0xff] }
  0xe9   : > { %1651 = vrot.lane.b32.xlu1 %v4698_v32, %s3462_s6  ;;  %v4736_v48 = vsel %vm1528_vm8, %v1574_v43, %v1575_v28  ;;  %v4753_v28 = vsel %vm1528_vm8, %v1579_v33, %v1580_v5  ;;  %v6269_v43 = vld [vmem:[#allocation44_spill] sm:$0xff]  ;;  %v1589_v33 = vrot.slane %v4447_v54, 2 }
  0xea   : > { %6264 = vst [vmem:[#allocation66_spill] sm:$0xff] %v4736_v48  ;;  %v1584_v27 = vrot.slane %v6269_v43, 2 }
  0xeb   : > { %1637 = vrot.lane.b32.xlu0 %v4706_v3, %s3462_s6  ;;  %v1595_v3 = vrot.slane %v4487_v2, 2  ;;  %v4782_v19 = vsel %vm1528_vm8, %v1589_v33, %v1590_v60  ;;  %v1599_v60 = vrot.slane %v4524_v62, 2  ;;  %v6276_v33 = vld [vmem:[#allocation39_spill] sm:$0xff] }
  0xec   : > { %v4768_v5 = vsel %vm1528_vm8, %v1584_v27, %v1585_v30  ;;  %v1594_v30 = vrot.slane %v4491_v47, 2  ;;  %v4787_v27 = vpop.permute.xlu1 %1456 }
  0xed   : > { %1655 = vrot.lane.b32.xlu1 %v4713_v34, %s3462_s6  ;;  %v4745_v36 = vsel %vm1528_vm8, %v1595_v3, %v1597_v39  ;;  %v4760_v39 = vsel %vm1528_vm8, %v1600_v20, %v1602_v0  ;;  %6274 = vst [vmem:[#allocation73_spill] sm:$0xff] %v4787_v27 }
  0xee   : > { %6267 = vst [vmem:[#allocation68_spill] sm:$0xff] %v4745_v36  ;;  %6270 = vst [vmem:[#allocation44_spill] sm:$0xff] %v4760_v39 }
  0xef   : > { %1641 = vrot.lane.b32.xlu0 %v4721_v14, %s3462_s6  ;;  %v4750_v14 = vpop.permute.xlu0 %1442 }
  0xf0   : > { %6268 = vst [vmem:[#allocation69_spill] sm:$0xff] %v4750_v14  ;;  %v1605_v14 = vrot.slane %v4557_v50, 2  ;;  %v4803_v27 = vpop.permute.xlu1 %1460 }
  0xf1   : > { %1659 = vrot.lane.b32.xlu1 %v4730_v7, %s3462_s6  ;;  %6277 = vst [vmem:[#allocation39_spill] sm:$0xff] %v4803_v27  ;;  %v282_v27 = vld [vmem:[%s3528_s25 + $0x180] sm:$0xff] }
  0xf2   : > { %v4777_v0 = vsel %vm1528_vm8, %v1605_v14, %v1607_v8 }
  0xf3   : > { %1645 = vrot.lane.b32.xlu0 %v4736_v48, %s3462_s6  ;;  %6273 = vst [vmem:[#allocation72_spill] sm:$0xff] %v4777_v0 }
  0xf5   : > { %1663 = vrot.lane.b32.xlu1 %v4745_v36, %s3462_s6  ;;  %v4774_v36 = vpop.permute.xlu0 %1446 }
  0xf6   : > { %6272 = vst [vmem:[#allocation71_spill] sm:$0xff] %v4774_v36  ;;  %v4795_v36 = vsel %vm1528_vm8, %v1594_v30, %v1595_v3  ;;  %v6279_v3 = vld [vmem:[#allocation37_spill] sm:$0xff] }
  0xf7   : > { %1649 = vrot.lane.b32.xlu0 %v4753_v28, %s3462_s6 }
  0xf9   : > { %1667 = vrot.lane.b32.xlu1 %v4760_v39, %s3462_s6  ;;  %v4792_v8 = vpop.permute.xlu0 %1450  ;;  %v345_v39 = vmul.f32 %v6276_v33, %v283_v22 }
  0xfa   : > { %6275 = vst [vmem:[#allocation74_spill] sm:$0xff] %v4792_v8  ;;  %v1604_v8 = vrot.slane %v4561_v9, 2 }
  0xfb   : > { %1653 = vrot.lane.b32.xlu0 %v4768_v5, %s3462_s6  ;;  %v4810_v30 = vadd.f32 %v6279_v3, %v345_v39 }
  0xfd   : > { %1671 = vrot.lane.b32.xlu1 %v4777_v0, %s3462_s6  ;;  %v4806_v0 = vsel %vm1528_vm8, %v1599_v60, %v1600_v20  ;;  %v4814_v22 = vpop.permute.xlu0 %1454  ;;  %v508_v20 = vmul.f32 1.442695, %v4810_v30  ;;  %v4825_v60 = vpop.permute.xlu1 %1464  ;;  %vm891_vm10 = vcmp.gt.f32.partialorder %v4810_v30, 20.0 }
  0xfe   : > { %6278 = vst [vmem:[#allocation75_spill] sm:$0xff] %v4806_v0  ;;  %6280 = vst [vmem:[#allocation37_spill] sm:$0xff] %v4814_v22  ;;  %v344_v22 = vmul.f32 %v6276_v33, %v282_v27 }
  0xff   : > { %1657 = vrot.lane.b32.xlu0 %v4782_v19, %s3462_s6  ;;  %3420 = vpow2.f32 %v508_v20 }
 0x101   : > { %1709 = vrot.lane.b32.xlu1 %v3712_v15, %s3463_s7  ;;  %v4819_v15 = vsel %vm1528_vm8, %v1604_v8, %v1605_v14  ;;  %v4829_v39 = vpop.permute.xlu0 %1458  ;;  %v4836_v14 = vpop.permute.xlu1 %1468  ;;  %v4839_v8 = vadd.f32 %v6279_v3, %v344_v22 }
 0x102   : > { %6281 = vst [vmem:[#allocation76_spill] sm:$0xff] %v4819_v15  ;;  %6282 = vst [vmem:[#allocation77_spill] sm:$0xff] %v4829_v39 }
 0x103   : > { %1661 = vrot.lane.b32.xlu0 %v4795_v36, %s3462_s6  ;;  %6283 = vst [vmem:[#allocation78_spill] sm:$0xff] %v4836_v14  ;;  %v506_v27 = vmul.f32 1.442695, %v4839_v8  ;;  %vm890_vm11 = vcmp.gt.f32.partialorder %v4839_v8, 20.0 }
 0x105   : > { %1713 = vrot.lane.b32.xlu1 %v3748_v53, %s3463_s7  ;;  %v4850_v33 = vpop.permute.xlu1 %1472  ;;  %3422 = vpow2.f32 %v506_v27 }
 0x106   : > { %6285 = vst [vmem:[#allocation80_spill] sm:$0xff] %v4850_v33 }
 0x107   : > { %1665 = vrot.lane.b32.xlu0 %v4806_v0, %s3462_s6  ;;  %v4841_v0 = vpop.permute.xlu0 %1462 }
 0x108   : > { %6284 = vst [vmem:[#allocation79_spill] sm:$0xff] %v4841_v0 }
 0x109   : > { %1717 = vrot.lane.b32.xlu1 %v3793_v18, %s3463_s7  ;;  %v3421_v20 = vpop.eup %3420 }
 0x10a   : > { %v567_v22 = vadd.f32 2.0, %v3421_v20 }
 0x10b   : > { %1669 = vrot.lane.b32.xlu0 %v4819_v15, %s3462_s6  ;;  %v4854_v3 = vpop.permute.xlu0 %1466 }
 0x10c   : > { %v621_v33 = vmul.f32 %v3421_v20, %v567_v22 }
 0x10d   : > { %1721 = vrot.lane.b32.xlu1 %v3833_v46, %s3463_s7  ;;  %v4860_v0 = vpop.permute.xlu1 %1476 }
 0x10e   : > { %6286 = vst [vmem:[#allocation81_spill] sm:$0xff] %v4860_v0 }
 0x10f   : > { %1707 = vrot.lane.b32.xlu0 %v3738_v38, %s3463_s7  ;;  %v4862_v39 = vpop.permute.xlu0 %1470  ;;  %v3423_v15 = vpop.eup %3422 }
 0x110   : > { %v566_v14 = vadd.f32 2.0, %v3423_v15 }
 0x111   : > { %1725 = vrot.lane.b32.xlu1 %v3870_v25, %s3463_s7 }
 0x112   : > { %v620_v22 = vmul.f32 %v3423_v15, %v566_v14 }
 0x113   : > { %1711 = vrot.lane.b32.xlu0 %v3752_v45, %s3463_s7  ;;  %v4874_v0 = vpop.permute.xlu0 %1474 }
 0x114   : > { %6288 = vst [vmem:[#allocation83_spill] sm:$0xff] %v4874_v0  ;;  %v674_v0 = vadd.f32 2.0, %v620_v22 }
 0x115   : > { %1729 = vrot.lane.b32.xlu1 %v4037_v51, %s3463_s7 }
 0x117   : > { %1715 = vrot.lane.b32.xlu0 %v3802_v63, %s3463_s7 }
 0x119   : > { %1733 = vrot.lane.b32.xlu1 %v4105_v40, %s3463_s7  ;;  %v675_v40 = vadd.f32 2.0, %v621_v33 }
 0x11b   : > { %1719 = vrot.lane.b32.xlu0 %v3838_v41, %s3463_s7  ;;  %3424 = vrcp.f32 %v675_v40 }
 0x11c   : > { %3426 = vrcp.f32 %v674_v0 }
 0x11d   : > { %1737 = vrot.lane.b32.xlu1 %v4150_v57, %s3463_s7 }
 0x11f   : > { %1723 = vrot.lane.b32.xlu0 %v3881_v31, %s3463_s7 }
 0x121   : > { %1741 = vrot.lane.b32.xlu1 %v6250_v26, %s3463_s7  ;;  %v4870_v27 = vpop.permute.xlu1 %1480  ;;  %v4882_v26 = vpop.permute.xlu0 %1478 }
 0x122   : > { %6287 = vst [vmem:[#allocation82_spill] sm:$0xff] %v4870_v27  ;;  %6290 = vst [vmem:[#allocation85_spill] sm:$0xff] %v4882_v26 }
 0x123   : > { %1727 = vrot.lane.b32.xlu0 %v6249_v61, %s3463_s7 }
 0x125   : > { %1745 = vrot.lane.b32.xlu1 %v6255_v49, %s3463_s7  ;;  %v3425_v40 = vpop.eup %3424 }
 0x126   : > { %v4878_v20 = vpop.permute.xlu1 %1484  ;;  %v783_v14 = vmul.f32 %v3425_v40, %v621_v33  ;;  %v3427_v33 = vpop.eup %3426 }
 0x127   : > { %6289 = vst [vmem:[#allocation84_spill] sm:$0xff] %v4878_v20  ;;  %1731 = vrot.lane.b32.xlu0 %v6254_v59, %s3463_s7  ;;  %v4894_v20 = vpop.permute.xlu0 %1482 }
 0x128   : > { %6292 = vst [vmem:[#allocation87_spill] sm:$0xff] %v4894_v20  ;;  %v837_v59 = vmul.f32 %v783_v14, %v4810_v30 }
 0x129   : > { %1749 = vrot.lane.b32.xlu1 %v4356_v37, %s3463_s7 }
 0x12a   : > { %v4886_v27 = vpop.permute.xlu1 %1488  ;;  %v4917_v40 = vsel %vm891_vm10, %v4810_v30, %v837_v59  ;;  %v6300_v30 = vld [vmem:[#allocation5_spill] sm:$0xff] }
 0x12b   : > { %6291 = vst [vmem:[#allocation86_spill] sm:$0xff] %v4886_v27  ;;  %1735 = vrot.lane.b32.xlu0 %v6259_v16, %s3463_s7  ;;  %v4904_v26 = vpop.permute.xlu0 %1486  ;;  %6295 = vst [vmem:[#allocation90_spill] sm:$0xff] %v4917_v40 }
 0x12c   : > { %6294 = vst [vmem:[#allocation89_spill] sm:$0xff] %v4904_v26  ;;  %v782_v26 = vmul.f32 %v3427_v33, %v620_v22 }
 0x12d   : > { %1753 = vrot.lane.b32.xlu1 %v4443_v58, %s3463_s7 }
 0x12e   : > { %v836_v59 = vmul.f32 %v782_v26, %v4839_v8 }
 0x12f   : > { %1739 = vrot.lane.b32.xlu0 %v6262_v24, %s3463_s7  ;;  %v4896_v15 = vpop.permute.xlu1 %1492 }
 0x130   : > { %6293 = vst [vmem:[#allocation88_spill] sm:$0xff] %v4896_v15  ;;  %v4921_v15 = vpop.permute.xlu0 %1490 }
 0x131   : > { %1757 = vrot.lane.b32.xlu1 %v4487_v2, %s3463_s7  ;;  %6296 = vst [vmem:[#allocation91_spill] sm:$0xff] %v4921_v15  ;;  %v944_v15 = vsel %vm890_vm11, %v4839_v8, %v836_v59 }
 0x133   : > { %1743 = vrot.lane.b32.xlu0 %v6265_v29, %s3463_s7  ;;  %v4902_v27 = vpop.permute.xlu1 %3221 }
 0x135   : > { %1761 = vrot.lane.b32.xlu1 %v4520_v11, %s3463_s7 }
 0x137   : > { %1747 = vrot.lane.b32.xlu0 %v6269_v43, %s3463_s7  ;;  %v4911_v0 = vpop.permute.xlu1 %1615 }
 0x139   : > { %1765 = vrot.lane.b32.xlu1 %v4557_v50, %s3463_s7 }
 0x13b   : > { %1751 = vrot.lane.b32.xlu0 %v4447_v54, %s3463_s7  ;;  %v4923_v14 = vpop.permute.xlu1 %1619 }
 0x13c   : > { %6297 = vst [vmem:[#allocation92_spill] sm:$0xff] %v4923_v14  ;;  %v6313_v14 = vld [vmem:[#allocation38_spill] sm:$0xff] }
 0x13d   : > { %1769 = vrot.lane.b32.xlu1 %v4917_v40, %s3463_s7  ;;  %v6309_v40 = vld [vmem:[#allocation17_spill] sm:$0xff] }
 0x13f   : > { %1755 = vrot.lane.b32.xlu0 %v4491_v47, %s3463_s7  ;;  %v4929_v20 = vpop.permute.xlu1 %1623 }
 0x140   : > { %6298 = vst [vmem:[#allocation93_spill] sm:$0xff] %v4929_v20  ;;  %v6302_v20 = vld [vmem:[#allocation9_spill] sm:$0xff] }
 0x141   : > { %v4931_v50 = vpop.permute.xlu0 %1494  ;;  %1811 = vrot.lane.b32.xlu1 %v6300_v30, %s3464_s8  ;;  %v4952_v30 = vsel %vm1027_vm4, %v944_v15, 0.0  ;;  %vm2673_vm4 = vcmask 1043456  }
 0x142   : > { %6299 = vst [vmem:[#allocation94_spill] sm:$0xff] %v4931_v50  ;;  %6304 = vst [vmem:[#allocation95_spill] sm:$0xff] %v4952_v30 }
 0x143   : > { %1759 = vrot.lane.b32.xlu0 %v4524_v62, %s3463_s7  ;;  %v4939_v22 = vpop.permute.xlu1 %1627 }
 0x144   : > { %6301 = vst [vmem:[#allocation5_spill] sm:$0xff] %v4939_v22  ;;  %v6306_v22 = vld [vmem:[#allocation14_spill] sm:$0xff] }
 0x145   : > { %v4941_v33 = vpop.permute.xlu0 %1613  ;;  %1815 = vrot.lane.b32.xlu1 %v6302_v20, %s3464_s8 }
 0x147   : > { %1763 = vrot.lane.b32.xlu0 %v4561_v9, %s3463_s7  ;;  %v4948_v26 = vpop.permute.xlu1 %1631 }
 0x148   : > { %6303 = vst [vmem:[#allocation9_spill] sm:$0xff] %v4948_v26  ;;  %v6310_v26 = vld [vmem:[#allocation6_spill] sm:$0xff] }
 0x149   : > { %v4954_v50 = vpop.permute.xlu0 %1617  ;;  %1819 = vrot.lane.b32.xlu1 %v6306_v22, %s3464_s8 }
 0x14a   : > { %6305 = vst [vmem:[#allocation96_spill] sm:$0xff] %v4954_v50  ;;  %v6314_v50 = vld [vmem:[#allocation7_spill] sm:$0xff] }
 0x14b   : > { %1767 = vrot.lane.b32.xlu0 %v4952_v30, %s3463_s7  ;;  %v4960_v8 = vpop.permute.xlu1 %1635 }
 0x14c   : > { %6307 = vst [vmem:[#allocation14_spill] sm:$0xff] %v4960_v8 }
 0x14d   : > { %v4962_v59 = vpop.permute.xlu0 %1621  ;;  %1823 = vrot.lane.b32.xlu1 %v6309_v40, %s3464_s8 }
 0x14e   : > { %6308 = vst [vmem:[#allocation97_spill] sm:$0xff] %v4962_v59 }
 0x14f   : > { %1809 = vrot.lane.b32.xlu0 %v6310_v26, %s3464_s8  ;;  %v4968_v55 = vpop.permute.xlu1 %1639  ;;  %v6316_v26 = vld [vmem:[#allocation11_spill] sm:$0xff] }
 0x150   : > { %6311 = vst [vmem:[#allocation17_spill] sm:$0xff] %v4968_v55 }
 0x151   : > { %v4970_v15 = vpop.permute.xlu0 %1625  ;;  %1843 = vrot.lane.b32.xlu1 %v6313_v14, %s3464_s8  ;;  %v6318_v14 = vld [vmem:[#allocation15_spill] sm:$0xff] }
 0x152   : > { %6312 = vst [vmem:[#allocation6_spill] sm:$0xff] %v4970_v15 }
 0x153   : > { %1813 = vrot.lane.b32.xlu0 %v6314_v50, %s3464_s8  ;;  %v4976_v30 = vpop.permute.xlu1 %1643 }
 0x155   : > { %v4978_v8 = vpop.permute.xlu0 %1629  ;;  %1942 = vrot.lane.b32.xlu1 %v4736_v48, %s3465_s9  ;;  %v6321_v48 = vld [vmem:[#allocation33_spill] sm:$0xff] }
 0x156   : > { %6315 = vst [vmem:[#allocation7_spill] sm:$0xff] %v4978_v8 }
 0x157   : > { %1817 = vrot.lane.b32.xlu0 %v6316_v26, %s3464_s8  ;;  %v4984_v55 = vpop.permute.xlu1 %1647 }
 0x159   : > { %v4986_v15 = vpop.permute.xlu0 %1633  ;;  %1944 = vrot.lane.b32.xlu1 %v4683_v13, %s3465_s9 }
 0x15a   : > { %6317 = vst [vmem:[#allocation11_spill] sm:$0xff] %v4986_v15 }
 0x15b   : > { %1821 = vrot.lane.b32.xlu0 %v6318_v14, %s3464_s8  ;;  %v4992_v59 = vpop.permute.xlu1 %1651 }
 0x15c   : > { %6319 = vst [vmem:[#allocation15_spill] sm:$0xff] %v4992_v59  ;;  %v6324_v59 = vld [vmem:[#allocation40_spill] sm:$0xff] }
 0x15d   : > { %v4994_v8 = vpop.permute.xlu0 %1637  ;;  %2040 = vrot.lane.b32.xlu1 %v6265_v29, %s3466_s10  ;;  %v2573_v29 = vld [vmem:[%s6048_s3 + $0x10] sm:$0xff] }
 0x15e   : > { %6320 = vst [vmem:[#allocation98_spill] sm:$0xff] %v4994_v8 }
 0x15f   : > { %1841 = vrot.lane.b32.xlu0 %v6321_v48, %s3464_s8  ;;  %v5000_v9 = vpop.permute.xlu1 %1655 }
 0x160   : > { %6322 = vst [vmem:[#allocation99_spill] sm:$0xff] %v5000_v9 }
 0x161   : > { %v5002_v15 = vpop.permute.xlu0 %1641  ;;  %2042 = vrot.lane.b32.xlu1 %v6255_v49, %s3466_s10  ;;  %v2574_v49 = vld [vmem:[%s6048_s3 + $0x18] sm:$0xff] }
 0x163   : > { %1910 = vrot.lane.b32.xlu0 %v4622_v52, %s3465_s9  ;;  %v5008_v13 = vpop.permute.xlu1 %1659 }
 0x164   : > { %6323 = vst [vmem:[#allocation100_spill] sm:$0xff] %v5008_v13 }
 0x165   : > { %v5010_v8 = vpop.permute.xlu0 %1645  ;;  %2142 = vrot.lane.b32.xlu1 %v6324_v59, %s3467_s11 }
 0x167   : > { %1912 = vrot.lane.b32.xlu0 %v4583_v10, %s3465_s9  ;;  %v5016_v48 = vpop.permute.xlu1 %1663  ;;  %v2571_v10 = vld [vmem:[%s6048_s3] sm:$0xff] }
 0x168   : > { %6325 = vst [vmem:[#allocation40_spill] sm:$0xff] %v5016_v48  ;;  %v2572_v48 = vld [vmem:[%s6048_s3 + $0x8] sm:$0xff] }
 0x169   : > { %v5018_v9 = vpop.permute.xlu0 %1649  ;;  %2112 = vrot.lane.b32.xlu1 %v6302_v20, %s3467_s11 }
 0x16a   : > { %6326 = vst [vmem:[#allocation101_spill] sm:$0xff] %v5018_v9 }
 0x16b   : > { %2008 = vrot.lane.b32.xlu0 %v3752_v45, %s3466_s10  ;;  %v5024_v52 = vpop.permute.xlu1 %1667 }
 0x16c   : > { %6327 = vst [vmem:[#allocation102_spill] sm:$0xff] %v5024_v52  ;;  %v3167_v52 = vpack.c.bf16 %v2572_v48, %v2571_v10  ;;  %v3171_v10 = vpack.c.bf16 %v2574_v49, %v2573_v29 }
 0x16d   : > { %v5026_v13 = vpop.permute.xlu0 %1653  ;;  %2211 = vrot.lane.b32.xlu1 %v4635_v35, %s3468_s12 }
 0x16e   : > { %6328 = vst [vmem:[#allocation103_spill] sm:$0xff] %v5026_v13  ;;  %v6331_v13 = vld [vmem:[#allocation42_spill] sm:$0xff]  ;;  %3168 = vmatprep.subr.bf16.mxu0 %v3167_v52  ;;  %3175 = vmatprep.subr.bf16.mxu1 %v3167_v52 }
 0x16f   : > { %2010 = vrot.lane.b32.xlu0 %v3748_v53, %s3466_s10  ;;  %v5038_v20 = vpop.permute.xlu1 %1671  ;;  %3170 = vmatpush3.bf16.msra.mxu0 %v3167_v52 }
 0x170   : > { %6329 = vst [vmem:[#allocation104_spill] sm:$0xff] %v5038_v20  ;;  %3178 = vmatpush3.bf16.msra.mxu1 %v3167_v52  ;;  %3172 = vmatprep.subr.bf16.mxu0 %v3171_v10 }
 0x171   : > { %v5040_v9 = vpop.permute.xlu0 %1657  ;;  %1847 = vrot.lane.b32.xlu1 %v6331_v13, %s3464_s8  ;;  %3176 = vmatprep.subr.bf16.mxu1 %v3171_v10 }
 0x172   : > { %6330 = vst [vmem:[#allocation105_spill] sm:$0xff] %v5040_v9 }
 0x173   : > { %2110 = vrot.lane.b32.xlu0 %v6314_v50, %s3467_s11  ;;  %v5052_v48 = vpop.permute.xlu1 %1709  ;;  %3174 = vmatpush3.bf16.msra.mxu0 %v3171_v10  ;;  %v2575_v50 = vld [vmem:[%s6048_s3 + $0x20] sm:$0xf] }
 0x174   : > { %3179 = vmatpush3.bf16.msra.mxu1 %v3171_v10  ;;  %3117 = vmatprep.subr.msk.mxu0 %vm2673_vm4, %v2575_v50 }
 0x175   : > { %v5054_v20 = vpop.permute.xlu0 %1661  ;;  %1946 = vrot.lane.b32.xlu1 %v4753_v28, %s3465_s9  ;;  %3177 = vmatprep.subr.msk.mxu1 %vm2673_vm4, %v2575_v50 }
 0x176   : > { %6332 = vst [vmem:[#allocation42_spill] sm:$0xff] %v5054_v20 }
 0x177   : > { %1845 = vrot.lane.b32.xlu0 %v6324_v59, %s3464_s8  ;;  %v5060_v9 = vpop.permute.xlu1 %1713  ;;  %3118 = vmatpush3.msk.msra.mxu0 %vm2673_vm4, %v2575_v50 }
 0x178   : > { %3180 = vmatpush3.msk.msra.mxu1 %vm2673_vm4, %v2575_v50 }
 0x179   : > { %v5065_v49 = vpop.permute.xlu0 %1665  ;;  %2245 = vrot.lane.b32.xlu1 %v4698_v32, %s3468_s12 }
 0x17a   : > { %6333 = vst [vmem:[#allocation106_spill] sm:$0xff] %v5065_v49 }
 0x17b   : > { %2144 = vrot.lane.b32.xlu0 %v6331_v13, %s3467_s11  ;;  %v5071_v29 = vpop.permute.xlu1 %1717 }
 0x17d   : > { %v5073_v59 = vpop.permute.xlu0 %1669  ;;  %1948 = vrot.lane.b32.xlu1 %v4698_v32, %s3465_s9 }
 0x17e   : > { %6334 = vst [vmem:[#allocation107_spill] sm:$0xff] %v5073_v59  ;;  %v6338_v59 = vld [vmem:[#allocation45_spill] sm:$0xff] }
 0x17f   : > { %2243 = vrot.lane.b32.xlu0 %v4753_v28, %s3468_s12  ;;  %v5079_v52 = vpop.permute.xlu1 %1721 }
 0x180   : > { %6335 = vst [vmem:[#allocation108_spill] sm:$0xff] %v5079_v52  ;;  %v3223_v52 = vunpack.i.l.bf16 %v4902_v27 }
 0x181   : > { %v5081_v10 = vpop.permute.xlu0 %1707  ;;  %2044 = vrot.lane.b32.xlu1 %v6269_v43, %s3466_s10 }
 0x183   : > { %1914 = vrot.lane.b32.xlu0 %v4635_v35, %s3465_s9  ;;  %v5087_v13 = vpop.permute.xlu1 %1725 }
 0x184   : > { %6336 = vst [vmem:[#allocation109_spill] sm:$0xff] %v5087_v13 }
 0x185   : > { %v5089_v50 = vpop.permute.xlu0 %1711  ;;  %2046 = vrot.lane.b32.xlu1 %v4356_v37, %s3466_s10 }
 0x187   : > { %2213 = vrot.lane.b32.xlu0 %v4590_v42, %s3468_s12  ;;  %v5095_v32 = vpop.permute.xlu1 %1729 }
 0x188   : > { %6337 = vst [vmem:[#allocation110_spill] sm:$0xff] %v5095_v32 }
 0x189   : > { %v5097_v28 = vpop.permute.xlu0 %1715  ;;  %2146 = vrot.lane.b32.xlu1 %v6338_v59, %s3467_s11 }
 0x18b   : > { %1916 = vrot.lane.b32.xlu0 %v4590_v42, %s3465_s9  ;;  %v5103_v35 = vpop.permute.xlu1 %1733 }
 0x18c   : > { %6339 = vst [vmem:[#allocation45_spill] sm:$0xff] %v5103_v35 }
 0x18d   : > { %v5105_v49 = vpop.permute.xlu0 %1719  ;;  %2116 = vrot.lane.b32.xlu1 %v6306_v22, %s3467_s11 }
 0x18e   : > { %6340 = vst [vmem:[#allocation111_spill] sm:$0xff] %v5105_v49 }
 0x18f   : > { %2012 = vrot.lane.b32.xlu0 %v3802_v63, %s3466_s10  ;;  %v5111_v20 = vpop.permute.xlu1 %1737 }
 0x190   : > { %6341 = vst [vmem:[#allocation112_spill] sm:$0xff] %v5111_v20 }
 0x191   : > { %v5113_v32 = vpop.permute.xlu0 %1723  ;;  %2215 = vrot.lane.b32.xlu1 %v4648_v4, %s3468_s12 }
 0x192   : > { %6342 = vst [vmem:[#allocation113_spill] sm:$0xff] %v5113_v32 }
 0x193   : > { %2014 = vrot.lane.b32.xlu0 %v3793_v18, %s3466_s10  ;;  %v5119_v42 = vpop.permute.xlu1 %1741 }
 0x195   : > { %v5121_v35 = vpop.permute.xlu0 %1727  ;;  %1851 = vrot.lane.b32.xlu1 %v4457_v44, %s3464_s8 }
 0x196   : > { %6343 = vst [vmem:[#allocation114_spill] sm:$0xff] %v5121_v35 }
 0x197   : > { %2114 = vrot.lane.b32.xlu0 %v6316_v26, %s3467_s11  ;;  %v5127_v22 = vpop.permute.xlu1 %1745 }
 0x199   : > { %v5129_v20 = vpop.permute.xlu0 %1731  ;;  %1950 = vrot.lane.b32.xlu1 %v4768_v5, %s3465_s9 }
 0x19a   : > { %6344 = vst [vmem:[#allocation115_spill] sm:$0xff] %v5129_v20 }
 0x19b   : > { %1849 = vrot.lane.b32.xlu0 %v6338_v59, %s3464_s8  ;;  %v5135_v13 = vpop.permute.xlu1 %1749 }
 0x19d   : > { %v5137_v32 = vpop.permute.xlu0 %1735  ;;  %2249 = vrot.lane.b32.xlu1 %v4713_v34, %s3468_s12 }
 0x19e   : > { %6345 = vst [vmem:[#allocation116_spill] sm:$0xff] %v5137_v32 }
 0x19f   : > { %2148 = vrot.lane.b32.xlu0 %v4457_v44, %s3467_s11  ;;  %v5143_v26 = vpop.permute.xlu1 %1753 }
 0x1a0   : > { %6346 = vst [vmem:[#allocation117_spill] sm:$0xff] %v5143_v26 }
 0x1a1   : > { %v5145_v35 = vpop.permute.xlu0 %1739  ;;  %1952 = vrot.lane.b32.xlu1 %v4713_v34, %s3465_s9 }
 0x1a3   : > { %2247 = vrot.lane.b32.xlu0 %v4768_v5, %s3468_s12  ;;  %v5151_v59 = vpop.permute.xlu1 %1757 }
 0x1a4   : > { %6347 = vst [vmem:[#allocation118_spill] sm:$0xff] %v5151_v59 }
 0x1a5   : > { %v5153_v20 = vpop.permute.xlu0 %1743  ;;  %2048 = vrot.lane.b32.xlu1 %v4447_v54, %s3466_s10 }
 0x1a7   : > { %1918 = vrot.lane.b32.xlu0 %v4648_v4, %s3465_s9  ;;  %v5159_v44 = vpop.permute.xlu1 %1761 }
 0x1a8   : > { %6348 = vst [vmem:[#allocation119_spill] sm:$0xff] %v5159_v44 }
 0x1a9   : > { %v5161_v32 = vpop.permute.xlu0 %1747  ;;  %2050 = vrot.lane.b32.xlu1 %v4443_v58, %s3466_s10 }
 0x1ab   : > { %2217 = vrot.lane.b32.xlu0 %v4600_v23, %s3468_s12  ;;  %v5167_v34 = vpop.permute.xlu1 %1765 }
 0x1ac   : > { %6349 = vst [vmem:[#allocation120_spill] sm:$0xff] %v5167_v34 }
 0x1ad   : > { %v5169_v5 = vpop.permute.xlu0 %1751  ;;  %2150 = vrot.lane.b32.xlu1 %v4465_v12, %s3467_s11 }
 0x1af   : > { %1920 = vrot.lane.b32.xlu0 %v4600_v23, %s3465_s9  ;;  %v5175_v4 = vpop.permute.xlu1 %1769 }
 0x1b0   : > { %6350 = vst [vmem:[#allocation121_spill] sm:$0xff] %v5175_v4 }
 0x1b1   : > { %v5177_v44 = vpop.permute.xlu0 %1755  ;;  %2120 = vrot.lane.b32.xlu1 %v6309_v40, %s3467_s11 }
 0x1b2   : > { %6351 = vst [vmem:[#allocation122_spill] sm:$0xff] %v5177_v44 }
 0x1b3   : > { %2016 = vrot.lane.b32.xlu0 %v3838_v41, %s3466_s10  ;;  %v5183_v59 = vpop.permute.xlu1 %1811 }
 0x1b5   : > { %v5185_v34 = vpop.permute.xlu0 %1759  ;;  %2219 = vrot.lane.b32.xlu1 %v4661_v6, %s3468_s12 }
 0x1b6   : > { %6352 = vst [vmem:[#allocation123_spill] sm:$0xff] %v5185_v34 }
 0x1b7   : > { %2018 = vrot.lane.b32.xlu0 %v3833_v46, %s3466_s10  ;;  %v5191_v23 = vpop.permute.xlu1 %1815 }
 0x1b9   : > { %v5193_v4 = vpop.permute.xlu0 %1763  ;;  %1855 = vrot.lane.b32.xlu1 %v4501_v21, %s3464_s8 }
 0x1ba   : > { %6353 = vst [vmem:[#allocation124_spill] sm:$0xff] %v5193_v4 }
 0x1bb   : > { %2118 = vrot.lane.b32.xlu0 %v6318_v14, %s3467_s11  ;;  %v5199_v40 = vpop.permute.xlu1 %1819 }
 0x1bd   : > { %v5201_v41 = vpop.permute.xlu0 %1767  ;;  %1954 = vrot.lane.b32.xlu1 %v4782_v19, %s3465_s9 }
 0x1be   : > { %6354 = vst [vmem:[#allocation125_spill] sm:$0xff] %v5201_v41 }
 0x1bf   : > { %1853 = vrot.lane.b32.xlu0 %v4465_v12, %s3464_s8  ;;  %v5207_v34 = vpop.permute.xlu1 %1823 }
 0x1c0   : > { %6355 = vst [vmem:[#allocation126_spill] sm:$0xff] %v5207_v34 }
 0x1c1   : > { %v1810_v46 = vpop.permute.xlu0 %1809  ;;  %2253 = vrot.lane.b32.xlu1 %v4730_v7, %s3468_s12 }
 0x1c3   : > { %2152 = vrot.lane.b32.xlu0 %v4501_v21, %s3467_s11  ;;  %v5213_v14 = vpop.permute.xlu1 %1843 }
 0x1c5   : > { %v5215_v4 = vpop.permute.xlu0 %1813  ;;  %1956 = vrot.lane.b32.xlu1 %v4730_v7, %s3465_s9 }
 0x1c7   : > { %2251 = vrot.lane.b32.xlu0 %v4782_v19, %s3468_s12  ;;  %v5221_v12 = vpop.permute.xlu1 %1942 }
 0x1c9   : > { %v5223_v41 = vpop.permute.xlu0 %1817  ;;  %2052 = vrot.lane.b32.xlu1 %v4491_v47, %s3466_s10 }
 0x1cb   : > { %1922 = vrot.lane.b32.xlu0 %v4661_v6, %s3465_s9  ;;  %v5229_v21 = vpop.permute.xlu1 %1944 }
 0x1cd   : > { %v5231_v58 = vpop.permute.xlu0 %1821  ;;  %2054 = vrot.lane.b32.xlu1 %v4487_v2, %s3466_s10 }
 0x1ce   : > { %6356 = vst [vmem:[#allocation127_spill] sm:$0xff] %v5231_v58 }
 0x1cf   : > { %2221 = vrot.lane.b32.xlu0 %v4616_v56, %s3468_s12  ;;  %v5237_v7 = vpop.permute.xlu1 %2040 }
 0x1d1   : > { %v1842_v19 = vpop.permute.xlu0 %1841  ;;  %2154 = vrot.lane.b32.xlu1 %v4514_v1, %s3467_s11 }
 0x1d3   : > { %1924 = vrot.lane.b32.xlu0 %v4616_v56, %s3465_s9  ;;  %v2043_v6 = vpop.permute.xlu1 %2042  ;;  %v6357_v56 = vld [vmem:[#allocation63_spill] sm:$0xff] }
 0x1d4   : > { %v3218_v34 = vunpack.i.l.bf16 %v6357_v56 }
 0x1d5   : > { %v1911_v47 = vpop.permute.xlu0 %1910  ;;  %1857 = vrot.lane.b32.xlu1 %v4514_v1, %s3464_s8 }
 0x1d6   : > { %v2308_v58 = vsel %vm2307_vm12, 0.0, %v3218_v34 }
 0x1d7   : > { %2020 = vrot.lane.b32.xlu0 %v3881_v31, %s3466_s10  ;;  %v2143_v2 = vpop.permute.xlu1 %2142  ;;  %v6358_v31 = vld [vmem:[#allocation19_spill] sm:$0xff] }
 0x1d9   : > { %v5247_v44 = vpop.permute.xlu0 %1912  ;;  %2156 = vrot.lane.b32.xlu1 %v4533_v17, %s3467_s11 }
 0x1db   : > { %2022 = vrot.lane.b32.xlu0 %v3870_v25, %s3466_s10  ;;  %v5253_v54 = vpop.permute.xlu1 %2112  ;;  %v2341_v25 = vsel %vm2340_vm14, %v2308_v58, %v3223_v52 }
 0x1dc   : > { %v2374_v26 = vsel %vm2373_vm13, %v2341_v25, %v5081_v10  ;;  %v6361_v10 = vld [vmem:[#allocation61_spill] sm:$0xff] }
 0x1dd   : > { %v2009_v1 = vpop.permute.xlu0 %2008  ;;  %2255 = vrot.lane.b32.xlu1 %v4795_v36, %s3468_s12  ;;  %v2407_v63 = vsel %vm2406_vm15, %v2374_v26, %v1810_v46  ;;  %v6359_v46 = vld [vmem:[#allocation20_spill] sm:$0xff] }
 0x1de   : > { %v2440_v37 = vsel %vm2439_vm0, %v2407_v63, %v1911_v47  ;;  %v2325_v47 = vsel %vm2307_vm12, %v4150_v57, %v4854_v3 }
 0x1df   : > { %2122 = vrot.lane.b32.xlu0 %v6358_v31, %s3467_s11  ;;  %v2212_v18 = vpop.permute.xlu1 %2211  ;;  %v2473_v58 = vsel %vm2472_vm1, %v2440_v37, %v2009_v1  ;;  %v6360_v37 = vld [vmem:[#allocation68_spill] sm:$0xff] }
 0x1e1   : > { %v2011_v49 = vpop.permute.xlu0 %2010  ;;  %1859 = vrot.lane.b32.xlu1 %v4533_v17, %s3464_s8 }
 0x1e3   : > { %1825 = vrot.lane.b32.xlu0 %v6358_v31, %s3464_s8  ;;  %v5270_v34 = vpop.permute.xlu1 %1847 }
 0x1e5   : > { %v2111_v52 = vpop.permute.xlu0 %2110  ;;  %1958 = vrot.lane.b32.xlu1 %v4795_v36, %s3465_s9  ;;  %v2324_v36 = vsel %vm2307_vm12, %v6259_v16, %v4825_v60 }
 0x1e6   : > { %v2506_v25 = vsel %vm2505_vm3, %v2473_v58, %v2111_v52  ;;  %v2357_v1 = vsel %vm2340_vm14, %v2324_v36, %v5002_v15  ;;  %v3219_v15 = vunpack.i.h.bf16 %v6357_v56 }
 0x1e7   : > { %2124 = vrot.lane.b32.xlu0 %v6359_v46, %s3467_s11  ;;  %v2539_v31 = vsel %vm2538_vm5, %v2506_v25, %v2212_v18  ;;  %v5280_v17 = vpop.permute.xlu1 %1946  ;;  %v2358_v18 = vsel %vm2340_vm14, %v2325_v47, %v4976_v30  ;;  %v2390_v3 = vsel %vm2373_vm13, %v2357_v1, %v5145_v35 }
 0x1e8   : > { %3119 = vmatprep.mubr.msk.f32.mxu0 %vm2576_vm7, %v2539_v31  ;;  %v2391_v58 = vsel %vm2373_vm13, %v2358_v18, %v5119_v42  ;;  %v2423_v30 = vsel %vm2406_vm15, %v2390_v3, %v1842_v19  ;;  %v6363_v3 = vld [vmem:[#allocation50_spill] sm:$0xff] }
 0x1e9   : > { %v5283_v63 = vpop.permute.xlu0 %1845  ;;  %2257 = vrot.lane.b32.xlu1 %v6360_v37, %s3468_s12  ;;  %v2424_v52 = vsel %vm2406_vm15, %v2391_v58, %v5213_v14  ;;  %v2456_v42 = vsel %vm2439_vm0, %v2423_v30, %v5221_v12  ;;  %v3224_v14 = vunpack.i.h.bf16 %v4902_v27 }
 0x1ea   : > { %v2457_v25 = vsel %vm2439_vm0, %v2424_v52, %v5229_v21  ;;  %v2489_v19 = vsel %vm2472_vm1, %v2456_v42, %v5237_v7 }
 0x1eb   : > { %2223 = vrot.lane.b32.xlu0 %v6361_v10, %s3468_s12  ;;  %v2246_v26 = vpop.permute.xlu1 %2245  ;;  %v2490_v31 = vsel %vm2472_vm1, %v2457_v25, %v2043_v6  ;;  %v2522_v21 = vsel %vm2505_vm3, %v2489_v19, %v2143_v2  ;;  %v2309_v6 = vsel %vm2307_vm12, 0.0, %v3219_v15  ;;  %v6365_v25 = vld [vmem:[#allocation32_spill] sm:$0xff] }
 0x1ec   : > { %v2342_v7 = vsel %vm2340_vm14, %v2309_v6, %v3224_v14  ;;  %v2310_v15 = vsel %vm2307_vm12, %v3738_v38, %v6365_v25  ;;  %v6366_v14 = vld [vmem:[#allocation75_spill] sm:$0xff] }
 0x1ed   : > { %v2145_v60 = vpop.permute.xlu0 %2144  ;;  %1960 = vrot.lane.b32.xlu1 %v6360_v37, %s3465_s9  ;;  %v2375_v2 = vsel %vm2373_vm13, %v2342_v7, %v5052_v48  ;;  %v2343_v42 = vsel %vm2340_vm14, %v2310_v15, %v4941_v33 }
 0x1ee   : > { %v2523_v37 = vsel %vm2505_vm3, %v2490_v31, %v2145_v60  ;;  %v2408_v36 = vsel %vm2406_vm15, %v2375_v2, %v5183_v59  ;;  %v6364_v60 = vld [vmem:[#allocation53_spill] sm:$0xff]  ;;  %v2376_v19 = vsel %vm2373_vm13, %v2343_v42, %v5089_v50  ;;  %v3434_v50 = vld [vmem:[%s6046_s1] ss:$0 sm:$0xff]  ;;  %v6371_v42 = vld [vmem:[#allocation44_spill] sm:$0xff] }
 0x1ef   : > { %1827 = vrot.lane.b32.xlu0 %v6359_v46, %s3464_s8  ;;  %v5316_v35 = vpop.permute.xlu1 %1948  ;;  %v2556_v47 = vsel %vm2538_vm5, %v2523_v37, %v2246_v26  ;;  %v2441_v18 = vsel %vm2439_vm0, %v2408_v36, %v5247_v44  ;;  %v2409_v37 = vsel %vm2406_vm15, %v2376_v19, %v5215_v4  ;;  %v6368_v36 = vld [vmem:[#allocation31_spill] sm:$0xff]  ;;  %v6372_v19 = vld [vmem:[#allocation41_spill] sm:$0xff] }
 0x1f0   : > { %v2474_v1 = vsel %vm2472_vm1, %v2441_v18, %v2011_v49  ;;  %v2327_v18 = vsel %vm2307_vm12, %v6368_v36, %v4862_v39 }
 0x1f1   : > { %v2244_v56 = vpop.permute.xlu0 %2243  ;;  %2056 = vrot.lane.b32.xlu1 %v4524_v62, %s3466_s10  ;;  %v2507_v58 = vsel %vm2505_vm3, %v2474_v1, %v5253_v54 }
 0x1f2   : > { %v2555_v12 = vsel %vm2538_vm5, %v2522_v21, %v2244_v56  ;;  %v6367_v21 = vld [vmem:[#allocation22_spill] sm:$0xff] }
 0x1f3   : > { %1926 = vrot.lane.b32.xlu0 %v6361_v10, %s3465_s9  ;;  %3143 = vmatprep.mubr.msk.f32.mxu1 %vm2576_vm7, %v2555_v12  ;;  %v5331_v27 = vpop.permute.xlu1 %2044  ;;  %v6362_v10 = vld [vmem:[#allocation57_spill] sm:$0xff] }
 0x1f4   : > { %3144 = vmatmul.mubr.msk.f32.vlgmr.msra.gmra.mrb[0].mxu1 %vm2576_vm7, %v2556_v47  ;;  %v284_v47 = vld [vmem:[%s3528_s25 + $0x190] sm:$0x3] }
 0x1f5   : > { %v1915_v46 = vpop.permute.xlu0 %1914  ;;  %2058 = vrot.lane.b32.xlu1 %v4520_v11, %s3466_s10  ;;  %v346_v4 = vmul.f32 %v3434_v50, %v284_v47  ;;  %v6375_v50 = vld [vmem:[#allocation52_spill] sm:$0xff] }
 0x1f6   : > { %v2442_v38 = vsel %vm2439_vm0, %v2409_v37, %v1915_v46 }
 0x1f7   : > { %2225 = vrot.lane.b32.xlu0 %v6362_v10, %s3468_s12  ;;  %v2047_v26 = vpop.permute.xlu1 %2046 }
 0x1f9   : > { %v2214_v48 = vpop.permute.xlu0 %2213  ;;  %2158 = vrot.lane.b32.xlu1 %v6363_v3, %s3467_s11 }
 0x1fa   : > { %v2540_v52 = vsel %vm2538_vm5, %v2507_v58, %v2214_v48  ;;  %v6369_v58 = vld [vmem:[#allocation78_spill] sm:$0xff] }
 0x1fb   : > { %1928 = vrot.lane.b32.xlu0 %v6362_v10, %s3465_s9  ;;  %3120 = vmatmul.mubr.msk.f32.vlgmr.msra.gmra.mrb[0].mxu0 %vm2576_vm7, %v2540_v52  ;;  %v2147_v59 = vpop.permute.xlu1 %2146  ;;  %v3435_v10 = vld [vmem:[%s6047_s2] ss:$0 sm:$0xff]  ;;  %v2326_v48 = vsel %vm2307_vm12, %v6262_v24, %v6369_v58  ;;  %v6370_v52 = vld [vmem:[#allocation25_spill] sm:$0xff]  ;;  %v6376_v58 = vld [vmem:[#allocation51_spill] sm:$0xff] }
 0x1fc   : > { %v5406_v1 = vadd.f32 %v3435_v10, %v346_v4  ;;  %v2359_v39 = vsel %vm2340_vm14, %v2326_v48, %v5010_v8 }
 0x1fd   : > { %v5354_v44 = vpop.permute.xlu0 %1916  ;;  %1861 = vrot.lane.b32.xlu1 %v6363_v3, %s3464_s8  ;;  %v2360_v3 = vsel %vm2340_vm14, %v2327_v18, %v4984_v55 }
 0x1fe   : > { %v510_v8 = vmul.f32 1.442695, %v5406_v1  ;;  %vm892_vm9 = vcmp.gt.f32.partialorder %v5406_v1, 20.0 }
 0x1ff   : > { %2024 = vrot.lane.b32.xlu0 %v6249_v61, %s3466_s10  ;;  %v5360_v54 = vpop.permute.xlu1 %2116 }
 0x200   : > { %3428 = vpow2.f32 %v510_v8 }
 0x201   : > { %v2013_v49 = vpop.permute.xlu0 %2012  ;;  %2160 = vrot.lane.b32.xlu1 %v6364_v60, %s3467_s11 }
 0x202   : > { %v2475_v33 = vsel %vm2472_vm1, %v2442_v38, %v2013_v49  ;;  %v6374_v38 = vld [vmem:[#allocation4_spill] sm:$0xff] }
 0x203   : > { %2026 = vrot.lane.b32.xlu0 %v4037_v51, %s3466_s10  ;;  %v2216_v30 = vpop.permute.xlu1 %2215 }
 0x205   : > { %v2015_v31 = vpop.permute.xlu0 %2014  ;;  %2259 = vrot.lane.b32.xlu1 %v6366_v14, %s3468_s12 }
 0x207   : > { %2126 = vrot.lane.b32.xlu0 %v6367_v21, %s3467_s11  ;;  %v5379_v56 = vpop.permute.xlu1 %1851 }
 0x209   : > { %v2115_v12 = vpop.permute.xlu0 %2114  ;;  %1863 = vrot.lane.b32.xlu1 %v6364_v60, %s3464_s8  ;;  %v2393_v60 = vsel %vm2373_vm13, %v2360_v3, %v5127_v22 }
 0x20a   : > { %v2508_v6 = vsel %vm2505_vm3, %v2475_v33, %v2115_v12  ;;  %v2426_v25 = vsel %vm2406_vm15, %v2393_v60, %v5270_v34  ;;  %v3429_v3 = vpop.eup %3428  ;;  %v6379_v60 = vld [vmem:[#allocation24_spill] sm:$0xff] }
 0x20b   : > { %1829 = vrot.lane.b32.xlu0 %v6367_v21, %s3464_s8  ;;  %v2541_v7 = vsel %vm2538_vm5, %v2508_v6, %v2216_v30  ;;  %v5393_v2 = vpop.permute.xlu1 %1950  ;;  %v2392_v30 = vsel %vm2373_vm13, %v2359_v39, %v5153_v20 }
 0x20c   : > { %3122 = vmatprep.mubr.msk.f32.mxu0 %vm2576_vm7, %v2541_v7  ;;  %v2425_v55 = vsel %vm2406_vm15, %v2392_v30, %v5283_v63 }
 0x20d   : > { %v5396_v46 = vpop.permute.xlu0 %1849  ;;  %1962 = vrot.lane.b32.xlu1 %v6366_v14, %s3465_s9  ;;  %v2459_v14 = vsel %vm2439_vm0, %v2426_v25, %v5316_v35  ;;  %v2458_v22 = vsel %vm2439_vm0, %v2425_v55, %v5280_v17  ;;  %v6381_v55 = vld [vmem:[#allocation96_spill] sm:$0xff] }
 0x20e   : > { %v2492_v20 = vsel %vm2472_vm1, %v2459_v14, %v2047_v26  ;;  %v2491_v37 = vsel %vm2472_vm1, %v2458_v22, %v5331_v27  ;;  %v6373_v26 = vld [vmem:[#allocation34_spill] sm:$0xff]  ;;  %v6382_v22 = vld [vmem:[#allocation56_spill] sm:$0xff] }
 0x20f   : > { %2128 = vrot.lane.b32.xlu0 %v6370_v52, %s3467_s11  ;;  %v2250_v49 = vpop.permute.xlu1 %2249  ;;  %v2524_v21 = vsel %vm2505_vm3, %v2491_v37, %v2147_v59  ;;  %v2311_v33 = vsel %vm2307_vm12, %v6374_v38, %v6373_v26  ;;  %v6383_v37 = vld [vmem:[#allocation23_spill] sm:$0xff] }
 0x210   : > { %v2344_v59 = vsel %vm2340_vm14, %v2311_v33, %v4911_v0 }
 0x211   : > { %v2149_v15 = vpop.permute.xlu0 %2148  ;;  %2261 = vrot.lane.b32.xlu1 %v6371_v42, %s3468_s12  ;;  %v2377_v12 = vsel %vm2373_vm13, %v2344_v59, %v5060_v9  ;;  %v6386_v59 = vld [vmem:[#allocation83_spill] sm:$0xff] }
 0x212   : > { %v2525_v63 = vsel %vm2505_vm3, %v2492_v20, %v2149_v15  ;;  %v2410_v4 = vsel %vm2406_vm15, %v2377_v12, %v5191_v23  ;;  %v6377_v23 = vld [vmem:[#allocation58_spill] sm:$0xff]  ;;  %v6387_v12 = vld [vmem:[#allocation35_spill] sm:$0xff] }
 0x213   : > { %2227 = vrot.lane.b32.xlu0 %v6372_v19, %s3468_s12  ;;  %v5435_v34 = vpop.permute.xlu1 %1952  ;;  %v2558_v47 = vsel %vm2538_vm5, %v2525_v63, %v2250_v49  ;;  %v2443_v7 = vsel %vm2439_vm0, %v2410_v4, %v5354_v44  ;;  %v568_v49 = vadd.f32 2.0, %v3429_v3  ;;  %v6380_v15 = vld [vmem:[#allocation62_spill] sm:$0xff]  ;;  %v6388_v4 = vld [vmem:[#allocation80_spill] sm:$0xff] }
 0x214   : > { %v2476_v0 = vsel %vm2472_vm1, %v2443_v7, %v2015_v31  ;;  %v6378_v31 = vld [vmem:[#allocation54_spill] sm:$0xff]  ;;  %v6389_v7 = vld [vmem:[#allocation36_spill] sm:$0xff] }
 0x215   : > { %v2248_v35 = vpop.permute.xlu0 %2247  ;;  %1964 = vrot.lane.b32.xlu1 %v6371_v42, %s3465_s9  ;;  %v2509_v10 = vsel %vm2505_vm3, %v2476_v0, %v5360_v54  ;;  %v622_v25 = vmul.f32 %v3429_v3, %v568_v49  ;;  %v2312_v42 = vsel %vm2307_vm12, %v3752_v45, %v6380_v15  ;;  %v2328_v0 = vsel %vm2307_vm12, %v6389_v7, %v6388_v4  ;;  %v6397_v4 = vld [vmem:[#allocation95_spill] sm:$0xff] }
 0x216   : > { %v2557_v17 = vsel %vm2538_vm5, %v2524_v21, %v2248_v35  ;;  %v2345_v14 = vsel %vm2340_vm14, %v2312_v42, %v6381_v55 }
 0x217   : > { %1831 = vrot.lane.b32.xlu0 %v6370_v52, %s3464_s8  ;;  %3146 = vmatprep.mubr.msk.f32.mxu1 %vm2576_vm7, %v2557_v17  ;;  %v5451_v27 = vpop.permute.xlu1 %2048  ;;  %v2378_v20 = vsel %vm2373_vm13, %v2345_v14, %v5097_v28  ;;  %v676_v21 = vadd.f32 2.0, %v622_v25  ;;  %v6384_v17 = vld [vmem:[#allocation76_spill] sm:$0xff]  ;;  %v6385_v28 = vld [vmem:[#allocation26_spill] sm:$0xff] }
 0x218   : > { %3147 = vmatmul.mubr.msk.f32.gmra.mrb[2].mxu1 %vm2576_vm7, %v2558_v47 }
 0x219   : > { %v1919_v6 = vpop.permute.xlu0 %1918  ;;  %2060 = vrot.lane.b32.xlu1 %v6375_v50, %s3466_s10  ;;  %3430 = vrcp.f32 %v676_v21  ;;  %v6394_v21 = vld [vmem:[#allocation69_spill] sm:$0xff] }
 0x21b   : > { %1930 = vrot.lane.b32.xlu0 %v6372_v19, %s3465_s9  ;;  %v2051_v18 = vpop.permute.xlu1 %2050  ;;  %v2411_v19 = vsel %vm2406_vm15, %v2378_v20, %v5223_v41 }
 0x21c   : > { %v2444_v45 = vsel %vm2439_vm0, %v2411_v19, %v1919_v6  ;;  %v2329_v6 = vsel %vm2307_vm12, %v6387_v12, %v6386_v59 }
 0x21d   : > { %v2218_v9 = vpop.permute.xlu0 %2217  ;;  %2062 = vrot.lane.b32.xlu1 %v6376_v58, %s3466_s10 }
 0x21e   : > { %v2542_v48 = vsel %vm2538_vm5, %v2509_v10, %v2218_v9  ;;  %v6390_v10 = vld [vmem:[#allocation15_spill] sm:$0xff] }
 0x21f   : > { %2229 = vrot.lane.b32.xlu0 %v6377_v23, %s3468_s12  ;;  %3123 = vmatmul.mubr.msk.f32.gmra.mrb[2].mxu0 %vm2576_vm7, %v2542_v48  ;;  %v2151_v44 = vpop.permute.xlu1 %2150  ;;  %v2362_v9 = vsel %vm2340_vm14, %v2329_v6, %v6390_v10 }
 0x221   : > { %v5475_v52 = vpop.permute.xlu0 %1920  ;;  %2162 = vrot.lane.b32.xlu1 %v6378_v31, %s3467_s11 }
 0x223   : > { %1932 = vrot.lane.b32.xlu0 %v6377_v23, %s3465_s9  ;;  %v5481_v54 = vpop.permute.xlu1 %2120  ;;  %v6391_v23 = vld [vmem:[#allocation101_spill] sm:$0xff]  ;;  %v3431_v20 = vpop.eup %3430 }
 0x224   : > { %v2361_v3 = vsel %vm2340_vm14, %v2328_v0, %v6391_v23 }
 0x225   : > { %v2017_v39 = vpop.permute.xlu0 %2016  ;;  %1865 = vrot.lane.b32.xlu1 %v6378_v31, %s3464_s8  ;;  %v2395_v31 = vsel %vm2373_vm13, %v2362_v9, %v5135_v13  ;;  %v2394_v49 = vsel %vm2373_vm13, %v2361_v3, %v5161_v32  ;;  %v6392_v32 = vld [vmem:[#allocation28_spill] sm:$0xff] }
 0x226   : > { %v2477_v35 = vsel %vm2472_vm1, %v2444_v45, %v2017_v39  ;;  %v2428_v39 = vsel %vm2406_vm15, %v2395_v31, %v5379_v56  ;;  %v2427_v15 = vsel %vm2406_vm15, %v2394_v49, %v5396_v46  ;;  %v2313_v45 = vsel %vm2307_vm12, %v3748_v53, %v6394_v21  ;;  %v6401_v49 = vld [vmem:[#allocation81_spill] sm:$0xff] }
 0x227   : > { %2028 = vrot.lane.b32.xlu0 %v6379_v60, %s3466_s10  ;;  %v2220_v30 = vpop.permute.xlu1 %2219  ;;  %v2461_v42 = vsel %vm2439_vm0, %v2428_v39, %v5435_v34  ;;  %v2460_v55 = vsel %vm2439_vm0, %v2427_v15, %v5393_v2  ;;  %v6393_v2 = vld [vmem:[#allocation72_spill] sm:$0xff]  ;;  %v2330_v39 = vsel %vm2307_vm12, %v6269_v43, %v6401_v49  ;;  %v6403_v21 = vld [vmem:[#allocation85_spill] sm:$0xff] }
 0x228   : > { %v2494_v13 = vsel %vm2472_vm1, %v2461_v42, %v2051_v18  ;;  %v2493_v56 = vsel %vm2472_vm1, %v2460_v55, %v5451_v27 }
 0x229   : > { %v2019_v8 = vpop.permute.xlu0 %2018  ;;  %2164 = vrot.lane.b32.xlu1 %v6382_v22, %s3467_s11  ;;  %v2526_v46 = vsel %vm2505_vm3, %v2493_v56, %v2151_v44 }
 0x22b   : > { %2030 = vrot.lane.b32.xlu0 %v6383_v37, %s3466_s10  ;;  %v5500_v63 = vpop.permute.xlu1 %1855 }
 0x22d   : > { %v2119_v47 = vpop.permute.xlu0 %2118  ;;  %2263 = vrot.lane.b32.xlu1 %v6384_v17, %s3468_s12 }
 0x22e   : > { %v2510_v26 = vsel %vm2505_vm3, %v2477_v35, %v2119_v47  ;;  %v6395_v35 = vld [vmem:[#allocation64_spill] sm:$0xff] }
 0x22f   : > { %2130 = vrot.lane.b32.xlu0 %v6385_v28, %s3467_s11  ;;  %v2543_v41 = vsel %vm2538_vm5, %v2510_v26, %v2220_v30  ;;  %v5510_v38 = vpop.permute.xlu1 %1954  ;;  %v6396_v47 = vld [vmem:[#allocation92_spill] sm:$0xff] }
 0x230   : > { %3125 = vmatprep.mubr.msk.f32.mxu0 %vm2576_vm7, %v2543_v41  ;;  %v2346_v44 = vsel %vm2340_vm14, %v2313_v45, %v6396_v47  ;;  %v6404_v45 = vld [vmem:[#allocation43_spill] sm:$0xff] }
 0x231   : > { %v5513_v33 = vpop.permute.xlu0 %1853  ;;  %1867 = vrot.lane.b32.xlu1 %v6382_v22, %s3464_s8  ;;  %v2379_v26 = vsel %vm2373_vm13, %v2346_v44, %v5071_v29  ;;  %v6406_v44 = vld [vmem:[#allocation27_spill] sm:$0xff] }
 0x232   : > { %v2412_v53 = vsel %vm2406_vm15, %v2379_v26, %v5199_v40  ;;  %v1804_v40 = vrot.slane %v6397_v4, 1 }
 0x233   : > { %1833 = vrot.lane.b32.xlu0 %v6385_v28, %s3464_s8  ;;  %v2254_v48 = vpop.permute.xlu1 %2253  ;;  %v2445_v41 = vsel %vm2439_vm0, %v2412_v53, %v5475_v52  ;;  %v6398_v52 = vld [vmem:[#allocation90_spill] sm:$0xff]  ;;  %v6408_v53 = vld [vmem:[#allocation117_spill] sm:$0xff] }
 0x234   : > { %v1805_v7 = vrot.slane %v6398_v52, 1 }
 0x235   : > { %v2153_v30 = vpop.permute.xlu0 %2152  ;;  %1966 = vrot.lane.b32.xlu1 %v6384_v17, %s3465_s9  ;;  %v784_v17 = vmul.f32 %v3431_v20, %v622_v25  ;;  %v2478_v25 = vsel %vm2472_vm1, %v2445_v41, %v2019_v8  ;;  %v1906_v20 = vrot.slane %v6398_v52, 2  ;;  %v6409_v41 = vld [vmem:[#allocation29_spill] sm:$0xff] }
 0x236   : > { %v2527_v22 = vsel %vm2505_vm3, %v2494_v13, %v2153_v30  ;;  %v2511_v29 = vsel %vm2505_vm3, %v2478_v25, %v5481_v54  ;;  %v1806_v9 = vsel %vm1351_vm6, %v1804_v40, %v1805_v7  ;;  %v6402_v30 = vld [vmem:[#allocation103_spill] sm:$0xff] }
 0x237   : > { %2132 = vrot.lane.b32.xlu0 %v6392_v32, %s3467_s11  ;;  %v5546_v14 = vpop.permute.xlu1 %1956  ;;  %v2560_v34 = vsel %vm2538_vm5, %v2527_v22, %v2254_v48  ;;  %v838_v12 = vmul.f32 %v784_v17, %v5406_v1  ;;  %v6399_v48 = vld [vmem:[#allocation59_spill] sm:$0xff]  ;;  %v2363_v15 = vsel %vm2340_vm14, %v2330_v39, %v6402_v30  ;;  %v1905_v22 = vrot.slane %v6397_v4, 2  ;;  %v6407_v17 = vld [vmem:[#allocation10_spill] sm:$0xff] }
 0x238   : > { %v2396_v55 = vsel %vm2373_vm13, %v2363_v15, %v5169_v5  ;;  %v2314_v26 = vsel %vm2307_vm12, %v6407_v17, %v6406_v44  ;;  %v6421_v17 = vld [vmem:[#allocation33_spill] sm:$0xff] }
 0x239   : > { %v2252_v19 = vpop.permute.xlu0 %2251  ;;  %2265 = vrot.lane.b32.xlu1 %v6393_v2, %s3468_s12  ;;  %v946_v54 = vsel %vm892_vm9, %v5406_v1, %v838_v12  ;;  %v6410_v12 = vld [vmem:[#allocation97_spill] sm:$0xff] }
 0x23a   : > { %v2559_v18 = vsel %vm2538_vm5, %v2526_v46, %v2252_v19  ;;  %v1299_v31 = vsel %vm1086_vm2, %v946_v54, 0.0 }
 0x23b   : > { %2231 = vrot.lane.b32.xlu0 %v6395_v35, %s3468_s12  ;;  %3149 = vmatprep.mubr.msk.f32.mxu1 %vm2576_vm7, %v2559_v18  ;;  %v2053_v27 = vpop.permute.xlu1 %2052  ;;  %v1807_v42 = vrot.slane %v1299_v31, 1 }
 0x23c   : > { %3150 = vmatmul.mubr.msk.f32.gmra.mrb[4].mxu1 %vm2576_vm7, %v2560_v34 }
 0x23d   : > { %v5567_v28 = vpop.permute.xlu0 %1922  ;;  %1968 = vrot.lane.b32.xlu1 %v6393_v2, %s3465_s9  ;;  %v1808_v5 = vsel %vm1351_vm6, %v1805_v7, %v1807_v42  ;;  %v1907_v2 = vsel %vm1528_vm8, %v1905_v22, %v1906_v20  ;;  %v6414_v42 = vld [vmem:[#allocation71_spill] sm:$0xff]  ;;  %v6417_v22 = vld [vmem:[#allocation93_spill] sm:$0xff] }
 0x23f   : > { %1835 = vrot.lane.b32.xlu0 %v6392_v32, %s3464_s8  ;;  %v2055_v59 = vpop.permute.xlu1 %2054  ;;  %v2429_v32 = vsel %vm2406_vm15, %v2396_v55, %v5513_v33  ;;  %v6415_v55 = vld [vmem:[#allocation8_spill] sm:$0xff] }
 0x240   : > { %v2462_v43 = vsel %vm2439_vm0, %v2429_v32, %v5510_v38  ;;  %v6416_v32 = vld [vmem:[#allocation65_spill] sm:$0xff] }
 0x241   : > { %v2222_v6 = vpop.permute.xlu0 %2221  ;;  %2064 = vrot.lane.b32.xlu1 %v6397_v4, %s3466_s10  ;;  %v2495_v46 = vsel %vm2472_vm1, %v2462_v43, %v2053_v27  ;;  %v6405_v27 = vld [vmem:[#allocation99_spill] sm:$0xff] }
 0x242   : > { %v2544_v0 = vsel %vm2538_vm5, %v2511_v29, %v2222_v6  ;;  %v2347_v29 = vsel %vm2340_vm14, %v2314_v26, %v6410_v12  ;;  %v6411_v4 = vld [vmem:[#allocation111_spill] sm:$0xff] }
 0x243   : > { %1934 = vrot.lane.b32.xlu0 %v6395_v35, %s3465_s9  ;;  %3126 = vmatmul.mubr.msk.f32.gmra.mrb[4].mxu0 %vm2576_vm7, %v2544_v0  ;;  %v2155_v8 = vpop.permute.xlu1 %2154  ;;  %v2380_v40 = vsel %vm2373_vm13, %v2347_v29, %v6411_v4  ;;  %v6412_v0 = vld [vmem:[#allocation127_spill] sm:$0xff]  ;;  %v6425_v29 = vld [vmem:[#allocation38_spill] sm:$0xff] }
 0x244   : > { %v2528_v19 = vsel %vm2505_vm3, %v2495_v46, %v2155_v8  ;;  %v2413_v8 = vsel %vm2406_vm15, %v2380_v40, %v6412_v0  ;;  %v6418_v46 = vld [vmem:[#allocation108_spill] sm:$0xff]  ;;  %v6427_v40 = vld [vmem:[#allocation122_spill] sm:$0xff] }
 0x245   : > { %v5591_v10 = vpop.permute.xlu0 %1924  ;;  %2066 = vrot.lane.b32.xlu1 %v6398_v52, %s3466_s10 }
 0x247   : > { %2233 = vrot.lane.b32.xlu0 %v6399_v48, %s3468_s12  ;;  %v5598_v23 = vpop.permute.xlu1 %1857 }
 0x249   : > { %v2021_v1 = vpop.permute.xlu0 %2020  ;;  %2166 = vrot.lane.b32.xlu1 %v1806_v9, %s3467_s11 }
 0x24b   : > { %1936 = vrot.lane.b32.xlu0 %v6399_v48, %s3465_s9  ;;  %v2157_v13 = vpop.permute.xlu1 %2156  ;;  %v2446_v48 = vsel %vm2439_vm0, %v2413_v8, %v5567_v28 }
 0x24d   : > { %v2023_v56 = vpop.permute.xlu0 %2022  ;;  %1869 = vrot.lane.b32.xlu1 %v1806_v9, %s3464_s8  ;;  %v1908_v9 = vrot.slane %v1299_v31, 2  ;;  %v6413_v31 = vld [vmem:[#allocation30_spill] sm:$0xff] }
 0x24f   : > { %2032 = vrot.lane.b32.xlu0 %v6259_v16, %s3466_s10  ;;  %v2256_v33 = vpop.permute.xlu1 %2255  ;;  %v2331_v16 = vsel %vm2307_vm12, %v6404_v45, %v6403_v21  ;;  %v1909_v28 = vsel %vm1528_vm8, %v1906_v20, %v1908_v9  ;;  %v6428_v9 = vld [vmem:[#allocation55_spill] sm:$0xff] }
 0x250   : > { %v2561_v34 = vsel %vm2538_vm5, %v2528_v19, %v2256_v33  ;;  %v2364_v47 = vsel %vm2340_vm14, %v2331_v16, %v6405_v27  ;;  %v6419_v33 = vld [vmem:[#allocation126_spill] sm:$0xff]  ;;  %v6420_v27 = vmov 0.0  }
 0x251   : > { %v2123_v38 = vpop.permute.xlu0 %2122  ;;  %2168 = vrot.lane.b32.xlu1 %v1808_v5, %s3467_s11  ;;  %3152 = vmatprep.mubr.msk.f32.mxu1 %vm2576_vm7, %v2561_v34 }
 0x253   : > { %2034 = vrot.lane.b32.xlu0 %v4150_v57, %s3466_s10  ;;  %v5630_v18 = vpop.permute.xlu1 %1859  ;;  %v2397_v57 = vsel %vm2373_vm13, %v2364_v47, %v6408_v53  ;;  %v6423_v53 = vld [vmem:[#allocation82_spill] sm:$0xff] }
 0x254   : > { %v2430_v6 = vsel %vm2406_vm15, %v2397_v57, %v5500_v63  ;;  %v6424_v57 = vld [vmem:[#allocation47_spill] sm:$0xff] }
 0x255   : > { %v5635_v35 = vpop.permute.xlu0 %1825  ;;  %2267 = vrot.lane.b32.xlu1 %v1907_v2, %s3468_s12  ;;  %v2463_v52 = vsel %vm2439_vm0, %v2430_v6, %v5546_v14  ;;  %v2479_v14 = vsel %vm2472_vm1, %v2446_v48, %v2021_v1  ;;  %v6426_v6 = vld [vmem:[#allocation105_spill] sm:$0xff] }
 0x256   : > { %v2496_v54 = vsel %vm2472_vm1, %v2463_v52, %v2055_v59  ;;  %v2512_v39 = vsel %vm2505_vm3, %v2479_v14, %v2123_v38 }
 0x257   : > { %2134 = vrot.lane.b32.xlu0 %v6409_v41, %s3467_s11  ;;  %v1959_v25 = vpop.permute.xlu1 %1958  ;;  %v2529_v63 = vsel %vm2505_vm3, %v2496_v54, %v2157_v13  ;;  %v2315_v13 = vsel %vm2307_vm12, %v6415_v55, %v6414_v42  ;;  %v6433_v42 = vld [vmem:[#allocation13_spill] sm:$0xff] }
 0x258   : > { %v2348_v20 = vsel %vm2340_vm14, %v2315_v13, %v6417_v22  ;;  %v6434_v13 = vld [vmem:[#allocation118_spill] sm:$0xff] }
 0x259   : > { %v2125_v7 = vpop.permute.xlu0 %2124  ;;  %1871 = vrot.lane.b32.xlu1 %v1808_v5, %s3464_s8  ;;  %v2381_v5 = vsel %vm2373_vm13, %v2348_v20, %v6418_v46  ;;  %v6436_v22 = vld [vmem:[#allocation6_spill] sm:$0xff] }
 0x25a   : > { %v2414_v34 = vsel %vm2406_vm15, %v2381_v5, %v6419_v33  ;;  %v6437_v5 = vld [vmem:[#allocation113_spill] sm:$0xff] }
 0x25b   : > { %1837 = vrot.lane.b32.xlu0 %v6409_v41, %s3464_s8  ;;  %v2258_v3 = vpop.permute.xlu1 %2257  ;;  %v2447_v38 = vsel %vm2439_vm0, %v2414_v34, %v5591_v10  ;;  %v2332_v41 = vsel %vm2307_vm12, %v6424_v57, %v6423_v53  ;;  %v6440_v57 = vld [vmem:[#allocation74_spill] sm:$0xff] }
 0x25c   : > { %v2562_v49 = vsel %vm2538_vm5, %v2529_v63, %v2258_v3  ;;  %v2480_v21 = vsel %vm2472_vm1, %v2447_v38, %v2023_v56  ;;  %v6422_v56 = vld [vmem:[#allocation60_spill] sm:$0xff]  ;;  %v2365_v4 = vsel %vm2340_vm14, %v2332_v41, %v6426_v6  ;;  %v6442_v6 = vld [vmem:[#allocation5_spill] sm:$0xff] }
 0x25d   : > { %v2224_v30 = vpop.permute.xlu0 %2223  ;;  %1970 = vrot.lane.b32.xlu1 %v1907_v2, %s3465_s9  ;;  %3153 = vmatmul.mubr.msk.f32.gmra.mrb[6].mxu1 %vm2576_vm7, %v2562_v49  ;;  %v2513_v45 = vsel %vm2505_vm3, %v2480_v21, %v2125_v7  ;;  %v2398_v52 = vsel %vm2373_vm13, %v2365_v4, %v6427_v40  ;;  %v6441_v41 = vld [vmem:[#allocation12_spill] sm:$0xff]  ;;  %v6443_v40 = vld [vmem:[#allocation109_spill] sm:$0xff] }
 0x25e   : > { %v2545_v59 = vsel %vm2538_vm5, %v2512_v39, %v2224_v30  ;;  %v2431_v0 = vsel %vm2406_vm15, %v2398_v52, %v5598_v23  ;;  %v6430_v39 = vld [vmem:[#allocation46_spill] sm:$0xff] }
 0x25f   : > { %2136 = vrot.lane.b32.xlu0 %v6413_v31, %s3467_s11  ;;  %3128 = vmatprep.mubr.msk.f32.mxu0 %vm2576_vm7, %v2545_v59  ;;  %v1961_v15 = vpop.permute.xlu1 %1960  ;;  %v2464_v8 = vsel %vm2439_vm0, %v2431_v0, %v1959_v25  ;;  %v6429_v25 = vld [vmem:[#allocation87_spill] sm:$0xff] }
 0x260   : > { %v2333_v30 = vsel %vm2307_vm12, %v6430_v39, %v6429_v25 }
 0x261   : > { %v5674_v1 = vpop.permute.xlu0 %1827  ;;  %2269 = vrot.lane.b32.xlu1 %v1909_v28, %s3468_s12 }
 0x263   : > { %2235 = vrot.lane.b32.xlu0 %v6416_v32, %s3468_s12  ;;  %v2057_v43 = vpop.permute.xlu1 %2056 }
 0x264   : > { %v2497_v48 = vsel %vm2472_vm1, %v2464_v8, %v2057_v43 }
 0x265   : > { %v1927_v19 = vpop.permute.xlu0 %1926  ;;  %1972 = vrot.lane.b32.xlu1 %v1909_v28, %s3465_s9 }
 0x267   : > { %1839 = vrot.lane.b32.xlu0 %v6413_v31, %s3464_s8  ;;  %v2059_v2 = vpop.permute.xlu1 %2058  ;;  %v6432_v31 = vld [vmem:[#allocation67_spill] sm:$0xff]  ;;  %s5867_s8 = scalar_lea.vmem %s6049_s4, %s3071_s5 }
 0x268   : > { %v2316_v55 = vsel %vm2307_vm12, %v6433_v42, %v6432_v31 }
 0x269   : > { %v2226_v16 = vpop.permute.xlu0 %2225  ;;  %3226 = vrot.lane.b32.xlu1 %v6420_v27, %s3466_s10  ;;  %v2349_v20 = vsel %vm2340_vm14, %v2316_v55, %v6436_v22  ;;  %v6438_v27 = vld [vmem:[#allocation66_spill] sm:$0xff] }
 0x26a   : > { %v2546_v47 = vsel %vm2538_vm5, %v2513_v45, %v2226_v16  ;;  %v2382_v33 = vsel %vm2373_vm13, %v2349_v20, %v6437_v5 }
 0x26b   : > { %1938 = vrot.lane.b32.xlu0 %v6416_v32, %s3465_s9  ;;  %3129 = vmatmul.mubr.msk.f32.gmra.mrb[6].mxu0 %vm2576_vm7, %v2546_v47  ;;  %v2159_v10 = vpop.permute.xlu1 %2158  ;;  %v2415_v21 = vsel %vm2406_vm15, %v2382_v33, %v5635_v35 }
 0x26c   : > { %v2530_v63 = vsel %vm2505_vm3, %v2497_v48, %v2159_v10  ;;  %v2448_v16 = vsel %vm2439_vm0, %v2415_v21, %v1927_v19  ;;  %v6449_v21 = vld [vmem:[#allocation48_spill] sm:$0xff] }
 0x26d   : > { %v1929_v44 = vpop.permute.xlu0 %1928  ;;  %2138 = vrot.lane.b32.xlu1 %v6421_v17, %s3467_s11 }
 0x26f   : > { %2237 = vrot.lane.b32.xlu0 %v6422_v56, %s3468_s12  ;;  %v5705_v26 = vpop.permute.xlu1 %1861 }
 0x271   : > { %v2025_v12 = vpop.permute.xlu0 %2024  ;;  %2140 = vrot.lane.b32.xlu1 %v6425_v29, %s3467_s11 }
 0x273   : > { %1940 = vrot.lane.b32.xlu0 %v6422_v56, %s3465_s9  ;;  %v2161_v7 = vpop.permute.xlu1 %2160 }
 0x275   : > { %v2027_v54 = vpop.permute.xlu0 %2026  ;;  %3236 = vrot.lane.b32.xlu1 %v6428_v9, %s3468_s12 }
 0x277   : > { %2036 = vrot.lane.b32.xlu0 %v6262_v24, %s3466_s10  ;;  %v2260_v3 = vpop.permute.xlu1 %2259  ;;  %v6431_v24 = vld [vmem:[#allocation100_spill] sm:$0xff] }
 0x278   : > { %v2563_v14 = vsel %vm2538_vm5, %v2530_v63, %v2260_v3  ;;  %v2366_v28 = vsel %vm2340_vm14, %v2333_v30, %v6431_v24  ;;  %v6444_v30 = vld [vmem:[#allocation84_spill] sm:$0xff]  ;;  %v6445_v24 = vld [vmem:[#allocation49_spill] sm:$0xff] }
 0x279   : > { %v2127_v49 = vpop.permute.xlu0 %2126  ;;  %3155 = vmatprep.mubr.msk.f32.mxu1 %vm2576_vm7, %v2563_v14  ;;  %v2399_v32 = vsel %vm2373_vm13, %v2366_v28, %v6434_v13 }
 0x27a   : > { %v2432_v46 = vsel %vm2406_vm15, %v2399_v32, %v5630_v18  ;;  %v2481_v18 = vsel %vm2472_vm1, %v2448_v16, %v2025_v12  ;;  %v2317_v12 = vsel %vm2307_vm12, %v6441_v41, %v6440_v57  ;;  %v6455_v57 = vld [vmem:[#allocation114_spill] sm:$0xff] }
 0x27b   : > { %2038 = vrot.lane.b32.xlu0 %v6368_v36, %s3466_s10  ;;  %v5731_v23 = vpop.permute.xlu1 %1863  ;;  %v6435_v36 = vld [vmem:[#allocation2_spill] sm:$0xff]  ;;  %v2465_v34 = vsel %vm2439_vm0, %v2432_v46, %v1961_v15  ;;  %v2514_v15 = vsel %vm2505_vm3, %v2481_v18, %v2127_v49  ;;  %v2350_v4 = vsel %vm2340_vm14, %v2317_v12, %v6442_v6  ;;  %v6453_v18 = vld [vmem:[#allocation119_spill] sm:$0xff] }
 0x27c   : > { %v2498_v45 = vsel %vm2472_vm1, %v2465_v34, %v2059_v2  ;;  %v6439_v2 = vld [vmem:[#allocation21_spill] sm:$0xff]  ;;  %v2383_v52 = vsel %vm2373_vm13, %v2350_v4, %v6443_v40 }
 0x27d   : > { %v5736_v59 = vpop.permute.xlu0 %1829  ;;  %v2531_v47 = vsel %vm2505_vm3, %v2498_v45, %v2161_v7  ;;  %v2416_v0 = vsel %vm2406_vm15, %v2383_v52, %v5674_v1  ;;  %v2334_v1 = vsel %vm2307_vm12, %v6445_v24, %v6444_v30  ;;  %v6458_v30 = vld [vmem:[#allocation9_spill] sm:$0xff] }
 0x27e   : > { %v2449_v8 = vsel %vm2439_vm0, %v2416_v0, %v1929_v44  ;;  %v6446_v44 = vld [vmem:[#allocation42_spill] sm:$0xff] }
 0x27f   : > { %3231 = vrot.lane.b32.xlu0 %v6435_v36, %s3467_s11  ;;  %v1963_v43 = vpop.permute.xlu1 %1962  ;;  %v2482_v48 = vsel %vm2472_vm1, %v2449_v8, %v2027_v54  ;;  %v2367_v31 = vsel %vm2340_vm14, %v2334_v1, %v6446_v44  ;;  %v6447_v54 = vld [vmem:[#allocation123_spill] sm:$0xff]  ;;  %v6459_v1 = vld [vmem:[#allocation110_spill] sm:$0xff] }
 0x280   : > { %v2400_v42 = vsel %vm2373_vm13, %v2367_v31, %v6447_v54 }
 0x281   : > { %v2129_v38 = vpop.permute.xlu0 %2128  ;;  %v2433_v13 = vsel %vm2406_vm15, %v2400_v42, %v5705_v26 }
 0x282   : > { %v2515_v63 = vsel %vm2505_vm3, %v2482_v48, %v2129_v38  ;;  %v2466_v32 = vsel %vm2439_vm0, %v2433_v13, %v1963_v43  ;;  %v6448_v38 = vld [vmem:[#allocation89_spill] sm:$0xff]  ;;  %v6450_v43 = vld [vmem:[#allocation40_spill] sm:$0xff] }
 0x283   : > { %2239 = vrot.lane.b32.xlu0 %v6438_v27, %s3468_s12  ;;  %v2262_v10 = vpop.permute.xlu1 %2261  ;;  %v2335_v45 = vsel %vm2307_vm12, %v6449_v21, %v6448_v38  ;;  %v6451_v27 = vld [vmem:[#allocation70_spill] sm:$0xff] }
 0x284   : > { %v2564_v17 = vsel %vm2538_vm5, %v2531_v47, %v2262_v10  ;;  %v2368_v16 = vsel %vm2340_vm14, %v2335_v45, %v6450_v43  ;;  %v6452_v47 = vld [vmem:[#allocation18_spill] sm:$0xff] }
 0x285   : > { %v2228_v56 = vpop.permute.xlu0 %2227  ;;  %3156 = vmatmul.mubr.msk.f32.gmra.mrb[8].mxu1 %vm2576_vm7, %v2564_v17  ;;  %v2318_v10 = vsel %vm2307_vm12, %v6452_v47, %v6451_v27  ;;  %v2401_v17 = vsel %vm2373_vm13, %v2368_v16, %v6453_v18  ;;  %v6461_v38 = vld [vmem:[#allocation106_spill] sm:$0xff] }
 0x286   : > { %v2547_v35 = vsel %vm2538_vm5, %v2514_v15, %v2228_v56  ;;  %v6454_v56 = vld [vmem:[#allocation7_spill] sm:$0xff] }
 0x287   : > { %2241 = vrot.lane.b32.xlu0 %v6439_v2, %s3468_s12  ;;  %3131 = vmatprep.mubr.msk.f32.mxu0 %vm2576_vm7, %v2547_v35  ;;  %v1965_v19 = vpop.permute.xlu1 %1964  ;;  %v2351_v35 = vsel %vm2340_vm14, %v2318_v10, %v6454_v56  ;;  %v2434_v2 = vsel %vm2406_vm15, %v2401_v17, %v5731_v23 }
 0x288   : > { %v2384_v41 = vsel %vm2373_vm13, %v2351_v35, %v6455_v57  ;;  %v2467_v12 = vsel %vm2439_vm0, %v2434_v2, %v1965_v19  ;;  %v6463_v2 = vld [vmem:[#allocation91_spill] sm:$0xff] }
 0x289   : > { %v5769_v53 = vpop.permute.xlu0 %1831  ;;  %v2417_v6 = vsel %vm2406_vm15, %v2384_v41, %v5736_v59  ;;  %v2337_v57 = vsel %vm2307_vm12, %v4520_v11, %v6463_v2  ;;  %v6475_v2 = vld [vmem:[#allocation98_spill] sm:$0xff] }
 0x28b   : > { %v2061_v29 = vpop.permute.xlu1 %2060 }
 0x28c   : > { %v2499_v22 = vsel %vm2472_vm1, %v2466_v32, %v2061_v29 }
 0x28d   : > { %v1931_v7 = vpop.permute.xlu0 %1930 }
 0x28e   : > { %v2450_v40 = vsel %vm2439_vm0, %v2417_v6, %v1931_v7  ;;  %v6456_v7 = vld [vmem:[#allocation37_spill] sm:$0xff] }
 0x28f   : > { %v2063_v9 = vpop.permute.xlu1 %2062 }
 0x290   : > { %v2500_v4 = vsel %vm2472_vm1, %v2467_v12, %v2063_v9  ;;  %v6464_v12 = vld [vmem:[#allocation102_spill] sm:$0xff] }
 0x291   : > { %v2230_v3 = vpop.permute.xlu0 %2229 }
 0x292   : > { %v2548_v14 = vsel %vm2538_vm5, %v2515_v63, %v2230_v3  ;;  %v6457_v3 = vld [vmem:[#allocation16_spill] sm:$0xff] }
 0x293   : > { %3132 = vmatmul.mubr.msk.f32.gmra.mrb[8].mxu0 %vm2576_vm7, %v2548_v14  ;;  %v2163_v49 = vpop.permute.xlu1 %2162  ;;  %v2319_v14 = vsel %vm2307_vm12, %v6457_v3, %v6456_v7 }
 0x294   : > { %v2532_v20 = vsel %vm2505_vm3, %v2499_v22, %v2163_v49  ;;  %v2352_v24 = vsel %vm2340_vm14, %v2319_v14, %v6458_v30 }
 0x295   : > { %v1933_v25 = vpop.permute.xlu0 %1932 }
 0x297   : > { %v5785_v39 = vpop.permute.xlu1 %1865 }
 0x299   : > { %v2029_v28 = vpop.permute.xlu0 %2028 }
 0x29a   : > { %v2483_v8 = vsel %vm2472_vm1, %v2450_v40, %v2029_v28  ;;  %v2385_v28 = vsel %vm2373_vm13, %v2352_v24, %v6459_v1 }
 0x29b   : > { %v2165_v55 = vpop.permute.xlu1 %2164  ;;  %v2418_v31 = vsel %vm2406_vm15, %v2385_v28, %v5769_v53 }
 0x29c   : > { %v2533_v52 = vsel %vm2505_vm3, %v2500_v4, %v2165_v55  ;;  %v2451_v54 = vsel %vm2439_vm0, %v2418_v31, %v1933_v25  ;;  %v6465_v4 = vld [vmem:[#allocation73_spill] sm:$0xff] }
 0x29d   : > { %v2031_v36 = vpop.permute.xlu0 %2030  ;;  %v2320_v40 = vsel %vm2307_vm12, %v6249_v61, %v6465_v4  ;;  %v6477_v4 = vld [vmem:[#allocation104_spill] sm:$0xff] }
 0x29e   : > { %v2484_v55 = vsel %vm2472_vm1, %v2451_v54, %v2031_v36  ;;  %v6462_v36 = vld [vmem:[#allocation124_spill] sm:$0xff] }
 0x29f   : > { %v2264_v46 = vpop.permute.xlu1 %2263 }
 0x2a0   : > { %v2565_v5 = vsel %vm2538_vm5, %v2532_v20, %v2264_v46 }
 0x2a1   : > { %v2131_v33 = vpop.permute.xlu0 %2130  ;;  %3158 = vmatprep.mubr.msk.f32.mxu1 %vm2576_vm7, %v2565_v5 }
 0x2a2   : > { %v2516_v48 = vsel %vm2505_vm3, %v2483_v8, %v2131_v33  ;;  %v6460_v33 = vld [vmem:[#allocation86_spill] sm:$0xff] }
 0x2a3   : > { %v5801_v34 = vpop.permute.xlu1 %1867  ;;  %v2336_v53 = vsel %vm2307_vm12, %v4524_v62, %v6460_v33 }
 0x2a4   : > { %v2369_v21 = vsel %vm2340_vm14, %v2336_v53, %v6461_v38 }
 0x2a5   : > { %v5806_v26 = vpop.permute.xlu0 %1833  ;;  %v2402_v45 = vsel %vm2373_vm13, %v2369_v21, %v6462_v36 }
 0x2a6   : > { %v2435_v16 = vsel %vm2406_vm15, %v2402_v45, %v5785_v39 }
 0x2a7   : > { %v1967_v15 = vpop.permute.xlu1 %1966 }
 0x2a8   : > { %v2468_v27 = vsel %vm2439_vm0, %v2435_v16, %v1967_v15 }
 0x2a9   : > { %v2133_v29 = vpop.permute.xlu0 %2132 }
 0x2aa   : > { %v2517_v13 = vsel %vm2505_vm3, %v2484_v55, %v2133_v29  ;;  %v2370_v29 = vsel %vm2340_vm14, %v2337_v57, %v6464_v12  ;;  %v6469_v55 = vld [vmem:[#allocation77_spill] sm:$0xff]  ;;  %v6476_v12 = vld [vmem:[#allocation107_spill] sm:$0xff] }
 0x2ab   : > { %v2266_v0 = vpop.permute.xlu1 %2265 }
 0x2ac   : > { %v2566_v23 = vsel %vm2538_vm5, %v2533_v52, %v2266_v0  ;;  %v6466_v52 = vld [vmem:[#allocation120_spill] sm:$0xff] }
 0x2ad   : > { %v2232_v63 = vpop.permute.xlu0 %2231  ;;  %3159 = vmatmul.mubr.msk.f32.gmra.mrb[10].mxu1 %vm2576_vm7, %v2566_v23  ;;  %v2403_v0 = vsel %vm2373_vm13, %v2370_v29, %v6466_v52 }
 0x2ae   : > { %v2549_v19 = vsel %vm2538_vm5, %v2516_v48, %v2232_v63  ;;  %v6467_v48 = vld [vmem:[#allocation11_spill] sm:$0xff]  ;;  %v2436_v63 = vsel %vm2406_vm15, %v2403_v0, %v5801_v34 }
 0x2af   : > { %3134 = vmatprep.mubr.msk.f32.mxu0 %vm2576_vm7, %v2549_v19  ;;  %v1969_v59 = vpop.permute.xlu1 %1968  ;;  %v2353_v11 = vsel %vm2340_vm14, %v2320_v40, %v6467_v48  ;;  %v6468_v19 = vld [vmem:[#allocation115_spill] sm:$0xff]  ;;  %v6478_v40 = vld [vmem:[#allocation125_spill] sm:$0xff] }
 0x2b0   : > { %v2386_v7 = vsel %vm2373_vm13, %v2353_v11, %v6468_v19  ;;  %v2469_v61 = vsel %vm2439_vm0, %v2436_v63, %v1969_v59  ;;  %v6480_v11 = vld [vmem:[#allocation121_spill] sm:$0xff] }
 0x2b1   : > { %v5833_v9 = vpop.permute.xlu0 %1835  ;;  %v2419_v14 = vsel %vm2406_vm15, %v2386_v7, %v5806_v26 }
 0x2b3   : > { %v2065_v49 = vpop.permute.xlu1 %2064 }
 0x2b4   : > { %v2501_v10 = vsel %vm2472_vm1, %v2468_v27, %v2065_v49 }
 0x2b5   : > { %v1935_v44 = vpop.permute.xlu0 %1934 }
 0x2b6   : > { %v2452_v30 = vsel %vm2439_vm0, %v2419_v14, %v1935_v44  ;;  %v2321_v44 = vsel %vm2307_vm12, %v4037_v51, %v6469_v55 }
 0x2b7   : > { %v2067_v42 = vpop.permute.xlu1 %2066 }
 0x2b8   : > { %v2502_v49 = vsel %vm2472_vm1, %v2469_v61, %v2067_v42 }
 0x2b9   : > { %v2234_v32 = vpop.permute.xlu0 %2233 }
 0x2ba   : > { %v2550_v22 = vsel %vm2538_vm5, %v2517_v13, %v2234_v32  ;;  %v6470_v13 = vld [vmem:[#allocation14_spill] sm:$0xff] }
 0x2bb   : > { %3135 = vmatmul.mubr.msk.f32.gmra.mrb[10].mxu0 %vm2576_vm7, %v2550_v22  ;;  %v2167_v20 = vpop.permute.xlu1 %2166  ;;  %v2354_v32 = vsel %vm2340_vm14, %v2321_v44, %v6470_v13  ;;  %v6483_v44 = vld [vmem:[#allocation112_spill] sm:$0xff] }
 0x2bc   : > { %v2534_v18 = vsel %vm2505_vm3, %v2501_v10, %v2167_v20  ;;  %v6471_v20 = vld [vmem:[#allocation45_spill] sm:$0xff] }
 0x2bd   : > { %v1937_v46 = vpop.permute.xlu0 %1936  ;;  %v2387_v33 = vsel %vm2373_vm13, %v2354_v32, %v6471_v20 }
 0x2bf   : > { %v5849_v5 = vpop.permute.xlu1 %1869 }
 0x2c1   : > { %v2033_v25 = vpop.permute.xlu0 %2032 }
 0x2c2   : > { %v2485_v34 = vsel %vm2472_vm1, %v2452_v30, %v2033_v25  ;;  %v2420_v25 = vsel %vm2406_vm15, %v2387_v33, %v5833_v9 }
 0x2c3   : > { %v2169_v43 = vpop.permute.xlu1 %2168  ;;  %v2453_v38 = vsel %vm2439_vm0, %v2420_v25, %v1937_v46 }
 0x2c4   : > { %v2535_v24 = vsel %vm2505_vm3, %v2502_v49, %v2169_v43 }
 0x2c5   : > { %v2035_v47 = vpop.permute.xlu0 %2034 }
 0x2c6   : > { %v2486_v21 = vsel %vm2472_vm1, %v2453_v38, %v2035_v47  ;;  %v6473_v47 = vld [vmem:[#allocation88_spill] sm:$0xff] }
 0x2c7   : > { %v3145_v62 = vpop.f32.mrb[0].mxu1  ;;  %v2268_v17 = vpop.permute.xlu1 %2267 }
 0x2c8   : > { %2919 = vst.msk [vmem:[%s5867_s8 + $0x88] sm:$0xff] %vm2340_vm14, %v3145_v62  ;;  %v2823_v39 = vpop.f32.mrb[1].mxu1  ;;  %v2567_v15 = vsel %vm2538_vm5, %v2534_v18, %v2268_v17  ;;  %v6472_v62 = vld [vmem:[#allocation39_spill] sm:$0xff]  ;;  %v2338_v17 = vsel %vm2307_vm12, %v6375_v50, %v6473_v47 }
 0x2c9   : > { %v2135_v56 = vpop.permute.xlu0 %2134  ;;  %2918 = vst.msk [vmem:[%s5867_s8 + $0x80] sm:$0xff] %vm2340_vm14, %v2823_v39  ;;  %3161 = vmatprep.mubr.msk.f32.mxu1 %vm2576_vm7, %v2567_v15  ;;  %v2322_v46 = vsel %vm2307_vm12, %v6379_v60, %v6472_v62  ;;  %v6474_v15 = vld [vmem:[#allocation94_spill] sm:$0xff]  ;;  %v2371_v29 = vsel %vm2340_vm14, %v2338_v17, %v6476_v12 }
 0x2ca   : > { %v2518_v31 = vsel %vm2505_vm3, %v2485_v34, %v2135_v56  ;;  %v2339_v56 = vsel %vm2307_vm12, %v6376_v58, %v6474_v15  ;;  %v2355_v57 = vsel %vm2340_vm14, %v2322_v46, %v6475_v2  ;;  %v2404_v50 = vsel %vm2373_vm13, %v2371_v29, %v6478_v40 }
 0x2cb   : > { %v5875_v35 = vpop.permute.xlu1 %1871  ;;  %v2372_v60 = vsel %vm2340_vm14, %v2339_v56, %v6477_v4  ;;  %v2437_v63 = vsel %vm2406_vm15, %v2404_v50, %v5849_v5 }
 0x2cc   : > { %v2405_v58 = vsel %vm2373_vm13, %v2372_v60, %v6480_v11 }
 0x2cd   : > { %v5880_v41 = vpop.permute.xlu0 %1837  ;;  %v2438_v7 = vsel %vm2406_vm15, %v2405_v58, %v5875_v35 }
 0x2ce   : > { %v3121_v6 = vpop.f32.mrb[0].mxu0 }
 0x2cf   : > { %2903 = vst.msk [vmem:[%s5867_s8 + $0x8] sm:$0xff] %vm2340_vm14, %v3121_v6  ;;  %v2743_v8 = vpop.f32.mrb[1].mxu0  ;;  %v1971_v23 = vpop.permute.xlu1 %1970 }
 0x2d0   : > { %2902 = vst.msk [vmem:[%s5867_s8] sm:$0xff] %vm2340_vm14, %v2743_v8  ;;  %v6479_v8 = vld [vmem:[#allocation116_spill] sm:$0xff]  ;;  %v2470_v49 = vsel %vm2439_vm0, %v2437_v63, %v1971_v23 }
 0x2d1   : > { %v2137_v3 = vpop.permute.xlu0 %2136  ;;  %v2388_v48 = vsel %vm2373_vm13, %v2355_v57, %v6479_v8 }
 0x2d2   : > { %v2519_v36 = vsel %vm2505_vm3, %v2486_v21, %v2137_v3  ;;  %v2421_v19 = vsel %vm2406_vm15, %v2388_v48, %v5880_v41 }
 0x2d3   : > { %v2270_v1 = vpop.permute.xlu1 %2269 }
 0x2d4   : > { %v2568_v28 = vsel %vm2538_vm5, %v2535_v24, %v2270_v1 }
 0x2d5   : > { %v2236_v54 = vpop.permute.xlu0 %2235  ;;  %3162 = vmatmul.mubr.msk.f32.gmra.mrb[12].mxu1 %vm2576_vm7, %v2568_v28  ;;  %v6481_v28 = vld [vmem:[#allocation79_spill] sm:$0xff] }
 0x2d6   : > { %v2551_v59 = vsel %vm2538_vm5, %v2518_v31, %v2236_v54  ;;  %v2323_v5 = vsel %vm2307_vm12, %v6383_v37, %v6481_v28 }
 0x2d7   : > { %3137 = vmatprep.mubr.msk.f32.mxu0 %vm2576_vm7, %v2551_v59  ;;  %v1973_v26 = vpop.permute.xlu1 %1972  ;;  %v6482_v59 = vld [vmem:[#allocation17_spill] sm:$0xff] }
 0x2d8   : > { %v2471_v30 = vsel %vm2439_vm0, %v2438_v7, %v1973_v26  ;;  %v2356_v23 = vsel %vm2340_vm14, %v2323_v5, %v6482_v59 }
 0x2d9   : > { %v1840_v42 = vpop.permute.xlu0 %1839  ;;  %v2389_v13 = vsel %vm2373_vm13, %v2356_v23, %v6483_v44 }
 0x2db   : > { %v3227_v22 = vpop.permute.xlu1 %3226 }
 0x2dc   : > { %v3229_v52 = vunpack.i.h.bf16 %v3227_v22  ;;  %v3228_v0 = vunpack.i.l.bf16 %v3227_v22 }
 0x2dd   : > { %v1939_v53 = vpop.permute.xlu0 %1938 }
 0x2de   : > { %v2454_v41 = vsel %vm2439_vm0, %v2421_v19, %v1939_v53  ;;  %v2503_v31 = vsel %vm2472_vm1, %v2470_v49, %v3228_v0  ;;  %v2504_v35 = vsel %vm2472_vm1, %v2471_v30, %v3229_v52  ;;  %v2422_v53 = vsel %vm2406_vm15, %v2389_v13, %v1840_v42 }
 0x2df   : > { %v2139_v43 = vpop.permute.xlu1 %2138 }
 0x2e1   : > { %v2238_v51 = vpop.permute.xlu0 %2237 }
 0x2e2   : > { %v2552_v45 = vsel %vm2538_vm5, %v2519_v36, %v2238_v51 }
 0x2e3   : > { %3138 = vmatmul.mubr.msk.f32.gmra.mrb[12].mxu0 %vm2576_vm7, %v2552_v45  ;;  %v2141_v27 = vpop.permute.xlu1 %2140 }
 0x2e5   : > { %v1941_v16 = vpop.permute.xlu0 %1940 }
 0x2e6   : > { %v2455_v38 = vsel %vm2439_vm0, %v2422_v53, %v1941_v16 }
 0x2e7   : > { %v3237_v6 = vpop.permute.xlu1 %3236 }
 0x2e8   : > { %v3239_v3 = vunpack.i.h.bf16 %v3237_v6  ;;  %v3238_v14 = vunpack.i.l.bf16 %v3237_v6 }
 0x2e9   : > { %v2037_v10 = vpop.permute.xlu0 %2036 }
 0x2ea   : > { %v2487_v26 = vsel %vm2472_vm1, %v2454_v41, %v2037_v10 }
 0x2eb   : > { %v3148_v18 = vpop.f32.mrb[2].mxu1  ;;  %v2520_v32 = vsel %vm2505_vm3, %v2487_v26, %v2139_v43 }
 0x2ec   : > { %2921 = vst.msk [vmem:[%s5867_s8 + $0x98] sm:$0xff] %vm2340_vm14, %v3148_v18  ;;  %v2833_v9 = vpop.f32.mrb[3].mxu1 }
 0x2ed   : > { %v2039_v39 = vpop.permute.xlu0 %2038  ;;  %2920 = vst.msk [vmem:[%s5867_s8 + $0x90] sm:$0xff] %vm2340_vm14, %v2833_v9 }
 0x2ee   : > { %v2488_v21 = vsel %vm2472_vm1, %v2455_v38, %v2039_v39 }
 0x2ef   : > { %v2521_v36 = vsel %vm2505_vm3, %v2488_v21, %v2141_v27 }
 0x2f1   : > { %v3232_v61 = vpop.permute.xlu0 %3231 }
 0x2f2   : > { %v3234_v24 = vunpack.i.h.bf16 %v3232_v61  ;;  %v3233_v1 = vunpack.i.l.bf16 %v3232_v61  ;;  %v3124_v34 = vpop.f32.mrb[2].mxu0 }
 0x2f3   : > { %2905 = vst.msk [vmem:[%s5867_s8 + $0x18] sm:$0xff] %vm2340_vm14, %v3124_v34  ;;  %v2753_v54 = vpop.f32.mrb[3].mxu0 }
 0x2f4   : > { %2904 = vst.msk [vmem:[%s5867_s8 + $0x10] sm:$0xff] %vm2340_vm14, %v2753_v54  ;;  %v2536_v55 = vsel %vm2505_vm3, %v2503_v31, %v3233_v1  ;;  %v2537_v37 = vsel %vm2505_vm3, %v2504_v35, %v3234_v24 }
 0x2f5   : > { %v2240_v22 = vpop.permute.xlu0 %2239  ;;  %v2569_v20 = vsel %vm2538_vm5, %v2536_v55, %v3238_v14  ;;  %v2570_v33 = vsel %vm2538_vm5, %v2537_v37, %v3239_v3 }
 0x2f6   : > { %v2553_v25 = vsel %vm2538_vm5, %v2520_v32, %v2240_v22  ;;  %3164 = vmatprep.mubr.msk.f32.mxu1 %vm2576_vm7, %v2569_v20 }
 0x2f7   : > { %3140 = vmatprep.mubr.msk.f32.mxu0 %vm2576_vm7, %v2553_v25  ;;  %3165 = vmatmul.mubr.msk.f32.gmra.mrb[14].mxu1 %vm2576_vm7, %v2570_v33 }
 0x2f9   : > { %v2242_v51 = vpop.permute.xlu0 %2241 }
 0x2fa   : > { %v2554_v42 = vsel %vm2538_vm5, %v2521_v36, %v2242_v51 }
 0x2fb   : > { %3141 = vmatmul.mubr.msk.f32.gmra.mrb[14].mxu0 %vm2576_vm7, %v2554_v42 }
 0x30f   : > { %v3151_v45 = vpop.f32.mrb[4].mxu1 }
 0x310   : > { %2923 = vst.msk [vmem:[%s5867_s8 + $0xa8] sm:$0xff] %vm2340_vm14, %v3151_v45  ;;  %v2843_v43 = vpop.f32.mrb[5].mxu1 }
 0x311   : > { %2922 = vst.msk [vmem:[%s5867_s8 + $0xa0] sm:$0xff] %vm2340_vm14, %v2843_v43 }
 0x316   : > { %v3127_v16 = vpop.f32.mrb[4].mxu0 }
 0x317   : > { %2907 = vst.msk [vmem:[%s5867_s8 + $0x28] sm:$0xff] %vm2340_vm14, %v3127_v16  ;;  %v2763_v27 = vpop.f32.mrb[5].mxu0 }
 0x318   : > { %2906 = vst.msk [vmem:[%s5867_s8 + $0x20] sm:$0xff] %vm2340_vm14, %v2763_v27 }
 0x330   : > { %v3154_v10 = vpop.f32.mrb[6].mxu1 }
 0x331   : > { %2925 = vst.msk [vmem:[%s5867_s8 + $0xb8] sm:$0xff] %vm2340_vm14, %v3154_v10  ;;  %v2853_v18 = vpop.f32.mrb[7].mxu1 }
 0x332   : > { %2924 = vst.msk [vmem:[%s5867_s8 + $0xb0] sm:$0xff] %vm2340_vm14, %v2853_v18 }
 0x33e   : > { %v3130_v9 = vpop.f32.mrb[6].mxu0 }
 0x33f   : > { %2909 = vst.msk [vmem:[%s5867_s8 + $0x38] sm:$0xff] %vm2340_vm14, %v3130_v9  ;;  %v2773_v62 = vpop.f32.mrb[7].mxu0 }
 0x340   : > { %2908 = vst.msk [vmem:[%s5867_s8 + $0x30] sm:$0xff] %vm2340_vm14, %v2773_v62 }
 0x358   : > { %v3157_v46 = vpop.f32.mrb[8].mxu1 }
 0x359   : > { %2927 = vst.msk [vmem:[%s5867_s8 + $0xc8] sm:$0xff] %vm2340_vm14, %v3157_v46  ;;  %v2863_v47 = vpop.f32.mrb[9].mxu1 }
 0x35a   : > { %2926 = vst.msk [vmem:[%s5867_s8 + $0xc0] sm:$0xff] %vm2340_vm14, %v2863_v47 }
 0x366   : > { %v3133_v17 = vpop.f32.mrb[8].mxu0 }
 0x367   : > { %2911 = vst.msk [vmem:[%s5867_s8 + $0x48] sm:$0xff] %vm2340_vm14, %v3133_v17  ;;  %v2783_v39 = vpop.f32.mrb[9].mxu0 }
 0x368   : > { %2910 = vst.msk [vmem:[%s5867_s8 + $0x40] sm:$0xff] %vm2340_vm14, %v2783_v39 }
 0x380   : > { %v3160_v15 = vpop.f32.mrb[10].mxu1 }
 0x381   : > { %2929 = vst.msk [vmem:[%s5867_s8 + $0xd8] sm:$0xff] %vm2340_vm14, %v3160_v15  ;;  %v2873_v56 = vpop.f32.mrb[11].mxu1 }
 0x382   : > { %2928 = vst.msk [vmem:[%s5867_s8 + $0xd0] sm:$0xff] %vm2340_vm14, %v2873_v56 }
 0x38e   : > { %v3136_v2 = vpop.f32.mrb[10].mxu0 }
 0x38f   : > { %2913 = vst.msk [vmem:[%s5867_s8 + $0x58] sm:$0xff] %vm2340_vm14, %v3136_v2  ;;  %v2793_v57 = vpop.f32.mrb[11].mxu0 }
 0x390   : > { %2912 = vst.msk [vmem:[%s5867_s8 + $0x50] sm:$0xff] %vm2340_vm14, %v2793_v57 }
 0x3a8   : > { %v3163_v12 = vpop.f32.mrb[12].mxu1 }
 0x3a9   : > { %2931 = vst.msk [vmem:[%s5867_s8 + $0xe8] sm:$0xff] %vm2340_vm14, %v3163_v12  ;;  %v2883_v29 = vpop.f32.mrb[13].mxu1 }
 0x3aa   : > { %2930 = vst.msk [vmem:[%s5867_s8 + $0xe0] sm:$0xff] %vm2340_vm14, %v2883_v29 }
 0x3b6   : > { %v3139_v6 = vpop.f32.mrb[12].mxu0 }
 0x3b7   : > { %2915 = vst.msk [vmem:[%s5867_s8 + $0x68] sm:$0xff] %vm2340_vm14, %v3139_v6  ;;  %v2803_v4 = vpop.f32.mrb[13].mxu0 }
 0x3b8   : > { %2914 = vst.msk [vmem:[%s5867_s8 + $0x60] sm:$0xff] %vm2340_vm14, %v2803_v4 }
 0x3ca   : > { %v3166_v60 = vpop.f32.mrb[14].mxu1 }
 0x3cb   : > { %2933 = vst.msk [vmem:[%s5867_s8 + $0xf8] sm:$0xff] %vm2340_vm14, %v3166_v60  ;;  %v2893_v40 = vpop.f32.mrb[15].mxu1 }
 0x3cc   : > { %2932 = vst.msk [vmem:[%s5867_s8 + $0xf0] sm:$0xff] %vm2340_vm14, %v2893_v40 }
 0x3ce   : > { %v3142_v50 = vpop.f32.mrb[14].mxu0 }
 0x3cf   : > { %2917 = vst.msk [vmem:[%s5867_s8 + $0x78] sm:$0xff] %vm2340_vm14, %v3142_v50  ;;  %v2813_v52 = vpop.f32.mrb[15].mxu0 }
 0x3d0   : > { %2916 = vst.msk [vmem:[%s5867_s8 + $0x70] sm:$0xff] %vm2340_vm14, %v2813_v52 }
 0x3d1 PF: > { %s14_s17 = sadd.s32 1, %s3458_s17   ;;  %s6484_s15 = smov %s3454_s16 }
 0x3d2   : > { %p11_p5 = scmp.ge.s32.totalorder %s14_s17, 4   ;;  %s6485_s16 = smov %s6487_s18 }
 0x3d4   :  { %13 = sbr.rel (!%p11_p5) target bundleno = 2 (0x2), region = 66 }

</bundles_post_ra>
